<compile_context>
chip_gen: v7x
topology: tpu7x:2x2x1
jax: 0.10.0
libtpu: 0.0.40
codegen_flags: <defaults>
</compile_context>

<pallas_src>
import numpy as np
import jax
import jax.numpy as jnp
from jax import lax
from jax.experimental import pallas as pl
from jax.experimental.pallas import tpu as pltpu

IGNORE_INDEX = 255
DELTA_V = 0.5
DELTA_D = 1.5
REG_WEIGHT = 0.001


# ----------------------------------------------------------------------------
# Helpers
# ----------------------------------------------------------------------------
def _bilinear_matrix(out_size: int, in_size: int) -> np.ndarray:
    """Interpolation matrix (out_size, in_size), align_corners=True."""
    W = np.zeros((out_size, in_size), dtype=np.float32)
    if out_size == 1:
        W[0, 0] = 1.0
        return W
    scale = (in_size - 1) / (out_size - 1)
    src = np.arange(out_size, dtype=np.float64) * scale
    i0 = np.clip(np.floor(src).astype(np.int64), 0, in_size - 1)
    i1 = np.minimum(i0 + 1, in_size - 1)
    w1 = (src - i0).astype(np.float32)
    w0 = 1.0 - w1
    W[np.arange(out_size), i0] += w0
    W[np.arange(out_size), i1] += w1
    return W


def _vmem_capacity_bytes() -> int:
    """Per-chip VMEM capacity (conservative 64 MiB fallback, i.e. v7x-safe)."""
    try:
        info = pltpu.get_tpu_info()
        cap = int(getattr(info, "vmem_capacity_bytes", 0))
        if cap > 0:
            return cap
    except Exception:
        pass
    return 64 * 1024 * 1024


def _pick_tile_h(H: int, vmem_cap: int) -> int:
    """Largest row tile (multiple of 8) dividing H, capped per chip generation."""
    max_tile = 128 if vmem_cap <= (64 << 20) else 256   # smaller tiles on v7x
    if H % 8 != 0:
        return H
    for cand in (256, 128, 64, 32, 16, 8):
        if cand <= max_tile and H % cand == 0:
            return cand
    return H


def _bytes(shape, itemsize=4):
    n = 1
    for s in shape:
        n *= s
    return n * itemsize


def _vmem_limit(block_bytes: int, scratch_bytes: int, cap: int) -> int:
    """Derive vmem_limit_bytes from double-buffered blocks + scratch, with headroom."""
    need = 2 * block_bytes + scratch_bytes
    need = int(need * 1.5) + (4 << 20)
    return int(max(16 << 20, min(need, (cap * 3) // 4)))


def _sum_all(x):
    """Full reduction of a 2-D plane to a (1, 1) array (lane then sublane)."""
    return jnp.sum(jnp.sum(x, axis=-1, keepdims=True), axis=-2, keepdims=True)


# ----------------------------------------------------------------------------
# Fused bilinear-upsample + OHEM cross-entropy (keep-all-valid path)
# grid = (batch, row_tiles); per-tile (sum, count) packed into one (1,2) output.
# ----------------------------------------------------------------------------
def _make_ce_kernel(num_ch: int, low_h: int):
    def kernel(pred_ref, tgt_ref, wh_ref, wwt_ref, out_ref, col_ref):
        # Row-tile-invariant column interpolation, hoisted: one channel-flattened
        # (C*h, w)@(w, W) matmul per image, reused by every row tile.
        @pl.when(pl.program_id(1) == 0)
        def _():
            col_ref[...] = jnp.dot(pred_ref[0], wwt_ref[...],
                                   preferred_element_type=jnp.float32)

        wh = wh_ref[...]                      # (TH, h) rows for this tile
        t = tgt_ref[0]                        # (TH, W) int32 labels

        def plane(c):
            # lane-dense row interpolation: (TH, h) @ (h, W)
            return jnp.dot(wh, col_ref[c * low_h:(c + 1) * low_h, :],
                           preferred_element_type=jnp.float32)

        # Online log-sum-exp: running max / rescaled sum / target logit only.
        p0 = plane(0)
        m = p0
        s = jnp.ones_like(p0)
        tgt_logit = jnp.where(t == 0, p0, 0.0)
        for c in range(1, num_ch):
            pc = plane(c)
            m_new = jnp.maximum(m, pc)
            s = s * jnp.exp(m - m_new) + jnp.exp(pc - m_new)
            tgt_logit = tgt_logit + jnp.where(t == c, pc, 0.0)
            m = m_new
        lse = m + jnp.log(s)

        # Labels >= num_ch (other than ignore) are treated as ignored.
        valid = jnp.logical_and(t != IGNORE_INDEX, t < num_ch).astype(jnp.float32)
        nll = (lse - tgt_logit) * valid

        # Merged (sum, count) output in one small block.
        li = lax.broadcasted_iota(jnp.int32, (1, 2), 1)
        sel = (li == 0).astype(jnp.float32)
        out_ref[0, 0] = sel * _sum_all(nll) + (1.0 - sel) * _sum_all(valid)

    return kernel


def ohem_cross_entropy_fused(pred_nchw, target_nhw, wh, wwt, tile_h, vmem_cap):
    n, c, h, w = pred_nchw.shape
    H, W = target_nhw.shape[1], target_nhw.shape[2]
    n_tiles = H // tile_h
    pred_flat = pred_nchw.reshape(n, c * h, w)   # channel-flattened once, in XLA

    block_bytes = (_bytes((1, c * h, w)) + _bytes((1, tile_h, W)) +
                   _bytes((tile_h, h)) + _bytes((w, W)) + _bytes((1, 1, 1, 2)))
    scratch_bytes = _bytes((c * h, W))

    partials = pl.pallas_call(
        _make_ce_kernel(c, h),
        out_shape=jax.ShapeDtypeStruct((n, n_tiles, 1, 2), jnp.float32),
        grid=(n, n_tiles),
        in_specs=[
            pl.BlockSpec((1, c * h, w), lambda i, j: (i, 0, 0)),   # low-res logits (flat)
            pl.BlockSpec((1, tile_h, W), lambda i, j: (i, j, 0)),  # label row-tile
            pl.BlockSpec((tile_h, h), lambda i, j: (j, 0)),        # Wh rows for tile
            pl.BlockSpec((w, W), lambda i, j: (0, 0)),             # Ww^T
        ],
        out_specs=pl.BlockSpec((1, 1, 1, 2), lambda i, j: (i, j, 0, 0)),
        scratch_shapes=[pltpu.VMEM((c * h, W), jnp.float32)],      # hoisted col-interp
        compiler_params=pltpu.CompilerParams(
            dimension_semantics=("parallel", "arbitrary"),
            vmem_limit_bytes=_vmem_limit(block_bytes, scratch_bytes, vmem_cap)),
    )(pred_flat, target_nhw, wh, wwt)

    total = jnp.sum(partials[..., 0])
    count = jnp.sum(partials[..., 1])
    return total / jnp.maximum(count, 1.0)


# ----------------------------------------------------------------------------
# Discriminative loss, two row-tiled passes.
# Pass 0: per-(image, tile) class counts + per-channel masked embedding sums.
# Pass 1: variance term via per-pixel own-class mean (1 sqrt/pixel).
# ----------------------------------------------------------------------------
def _make_disc_stats_kernel(num_ch: int, num_classes: int, low_h: int):
    def kernel(pred_ref, tgt_ref, wh_ref, wwt_ref, stats_ref, col_ref):
        @pl.when(pl.program_id(1) == 0)
        def _():
            col_ref[...] = jnp.dot(pred_ref[0], wwt_ref[...],
                                   preferred_element_type=jnp.float32)

        wh = wh_ref[...]
        t = tgt_ref[0]                      # (TH, W) int32

        ri = lax.broadcasted_iota(jnp.int32, (num_ch + 1, num_classes), 0)
        ci = lax.broadcasted_iota(jnp.int32, (num_ch + 1, num_classes), 1)

        # Dense (C+1, K) stats tile: rows 0..C-1 masked embedding sums, row C counts.
        stats = jnp.zeros((num_ch + 1, num_classes), jnp.float32)
        for c in range(num_ch):
            emb_c = jnp.dot(wh, col_ref[c * low_h:(c + 1) * low_h, :],
                            preferred_element_type=jnp.float32)
            for k in range(num_classes):
                s = _sum_all(jnp.where(t == k, emb_c, 0.0))
                sel = jnp.logical_and(ri == c, ci == k).astype(jnp.float32)
                stats = stats + sel * s
        for k in range(num_classes):
            cnt = _sum_all(jnp.where(t == k, 1.0, 0.0))
            sel = jnp.logical_and(ri == num_ch, ci == k).astype(jnp.float32)
            stats = stats + sel * cnt

        stats_ref[0, 0] = stats

    return kernel


def _make_disc_var_kernel(num_ch: int, num_classes: int, low_h: int):
    def kernel(pred_ref, tgt_ref, wh_ref, wwt_ref, mu_ref, invc_ref, out_ref, col_ref):
        @pl.when(pl.program_id(1) == 0)
        def _():
            col_ref[...] = jnp.dot(pred_ref[0], wwt_ref[...],
                                   preferred_element_type=jnp.float32)

        wh = wh_ref[...]
        t = tgt_ref[0]                      # (TH, W) int32

        # Per-pixel 1/count of the pixel's own class (0 for ignore / out-of-range).
        invw = jnp.zeros(t.shape, jnp.float32)
        for k in range(num_classes):
            invw = invw + jnp.where(t == k, 1.0, 0.0) * invc_ref[0, 0:1, k:k + 1]

        # Distance to the own-class mean: single distance plane, single sqrt.
        d2 = jnp.zeros(t.shape, jnp.float32)
        for c in range(num_ch):
            emb_c = jnp.dot(wh, col_ref[c * low_h:(c + 1) * low_h, :],
                            preferred_element_type=jnp.float32)
            mu_pix = jnp.zeros(t.shape, jnp.float32)
            for k in range(num_classes):
                mu_pix = mu_pix + jnp.where(t == k, 1.0, 0.0) * mu_ref[0, c:c + 1, k:k + 1]
            diff = emb_c - mu_pix
            d2 = d2 + diff * diff

        # TODO(synk): add eps inside sqrt if this loss is ever differentiated (inf grad at 0).
        d = jnp.sqrt(d2)
        hinge = jnp.maximum(d - DELTA_V, 0.0)
        out_ref[0, 0] = _sum_all(hinge * hinge * invw)

    return kernel


def discriminative_loss_fused(pred_nchw, target_nhw, wh, wwt, tile_h, vmem_cap):
    n, c, h, w = pred_nchw.shape
    H, W = target_nhw.shape[1], target_nhw.shape[2]
    n_tiles = H // tile_h
    # TODO(synk): cluster count tied to embedding channel count, as in the reference impl.
    num_classes = c
    pred_flat = pred_nchw.reshape(n, c * h, w)

    common_in_specs = [
        pl.BlockSpec((1, c * h, w), lambda i, j: (i, 0, 0)),
        pl.BlockSpec((1, tile_h, W), lambda i, j: (i, j, 0)),
        pl.BlockSpec((tile_h, h), lambda i, j: (j, 0)),
        pl.BlockSpec((w, W), lambda i, j: (0, 0)),
    ]
    scratch = [pltpu.VMEM((c * h, W), jnp.float32)]
    block_bytes = (_bytes((1, c * h, w)) + _bytes((1, tile_h, W)) +
                   _bytes((tile_h, h)) + _bytes((w, W)) +
                   _bytes((1, 1, c + 1, num_classes)))
    scratch_bytes = _bytes((c * h, W))
    vmem_limit = _vmem_limit(block_bytes, scratch_bytes, vmem_cap)

    # ---- Pass 0: per-(image, row-tile) cluster statistics ----
    stats = pl.pallas_call(
        _make_disc_stats_kernel(c, num_classes, h),
        out_shape=jax.ShapeDtypeStruct((n, n_tiles, c + 1, num_classes), jnp.float32),
        grid=(n, n_tiles),
        in_specs=common_in_specs,
        out_specs=pl.BlockSpec((1, 1, c + 1, num_classes), lambda i, j: (i, j, 0, 0)),
        scratch_shapes=scratch,
        compiler_params=pltpu.CompilerParams(
            dimension_semantics=("parallel", "arbitrary"),
            vmem_limit_bytes=vmem_limit),
    )(pred_flat, target_nhw, wh, wwt)

    # ---- Tiny per-image combine in XLA (exact divisions, no approx reciprocal) ----
    stats_n = jnp.sum(stats, axis=1)                       # (n, C+1, K)
    cnt = stats_n[:, c, :]                                 # (n, K)
    sums = stats_n[:, :c, :]                               # (n, C, K)
    present = (cnt > 0.0).astype(jnp.float32)
    safe_cnt = jnp.maximum(cnt, 1.0)
    mu = sums / safe_cnt[:, None, :]                       # (n, C, K)
    inv_cnt = present / safe_cnt                           # (n, K)
    k_present = jnp.sum(present, axis=-1)                  # (n,)

    mu_norm = jnp.sqrt(jnp.sum(mu * mu, axis=1))           # (n, K)
    reg_term = jnp.sum(present * mu_norm, axis=-1) / jnp.maximum(k_present, 1.0)

    diff = mu[:, :, :, None] - mu[:, :, None, :]           # (n, C, K, K)
    dmu = jnp.sqrt(jnp.sum(diff * diff, axis=1))           # (n, K, K)
    pair = present[:, :, None] * present[:, None, :]
    offdiag = pair * (1.0 - jnp.eye(num_classes, dtype=jnp.float32)[None])
    hinge2 = jnp.maximum(2.0 * DELTA_D - dmu, 0.0) ** 2
    dist_sum = 0.5 * jnp.sum(offdiag * hinge2, axis=(1, 2))
    pair_cnt = 0.5 * jnp.sum(offdiag, axis=(1, 2))
    dist_term = dist_sum / jnp.maximum(pair_cnt, 1.0)

    # ---- Pass 1: variance term (recompute embedding tiles, accumulate hinge^2/cnt) ----
    var_block_bytes = (block_bytes + _bytes((1, c, num_classes)) +
                       _bytes((1, 1, num_classes)))
    var_partials = pl.pallas_call(
        _make_disc_var_kernel(c, num_classes, h),
        out_shape=jax.ShapeDtypeStruct((n, n_tiles, 1, 1), jnp.float32),
        grid=(n, n_tiles),
        in_specs=common_in_specs + [
            pl.BlockSpec((1, c, num_classes), lambda i, j: (i, 0, 0)),   # cluster means
            pl.BlockSpec((1, 1, num_classes), lambda i, j: (i, 0, 0)),   # 1/cnt per class
        ],
        out_specs=pl.BlockSpec((1, 1, 1, 1), lambda i, j: (i, j, 0, 0)),
        scratch_shapes=scratch,
        compiler_params=pltpu.CompilerParams(
            dimension_semantics=("parallel", "arbitrary"),
            vmem_limit_bytes=_vmem_limit(var_block_bytes, scratch_bytes, vmem_cap)),
    )(pred_flat, target_nhw, wh, wwt, mu, inv_cnt[:, None, :])

    var_term = jnp.sum(var_partials, axis=(1, 2, 3)) / jnp.maximum(k_present, 1.0)
    per_image = var_term + dist_term + REG_WEIGHT * reg_term
    return jnp.mean(per_image)


# ----------------------------------------------------------------------------
# Criterion.forward
# ----------------------------------------------------------------------------
def criterion_forward(preds, target):
    assert len(preds) == 2
    H, W = target.shape[1], target.shape[2]
    target_i32 = target.astype(jnp.int32)
    # TODO(synk): ship labels as uint8/int16 to cut the per-tile label DMA 4x (v5e/v6e win).

    vmem_cap = _vmem_capacity_bytes()
    tile_h = _pick_tile_h(H, vmem_cap)

    n0, c0, h0, w0 = preds[0].shape
    wh0 = jnp.asarray(_bilinear_matrix(H, h0))       # (H, h)
    wwt0 = jnp.asarray(_bilinear_matrix(W, w0).T)    # (w, W)
    loss1 = ohem_cross_entropy_fused(preds[0], target_i32, wh0, wwt0, tile_h, vmem_cap)

    n1, c1, h1, w1 = preds[1].shape
    wh1 = jnp.asarray(_bilinear_matrix(H, h1))
    wwt1 = jnp.asarray(_bilinear_matrix(W, w1).T)
    loss2 = discriminative_loss_fused(preds[1], target_i32, wh1, wwt1, tile_h, vmem_cap)

    return loss1 + loss2


if __name__ == "__main__":
    key = jax.random.PRNGKey(0)
    k1, k2, k3 = jax.random.split(key, 3)

    N, C, h, w = 2, 4, 8, 8     # low-res predictions (NCHW, like PyTorch)
    H, W = 16, 16               # target spatial size

    pred0 = jax.random.normal(k1, (N, C, h, w), dtype=jnp.float32)
    pred1 = jax.random.normal(k2, (N, C, h, w), dtype=jnp.float32)
    target = jax.random.randint(k3, (N, H, W), 0, C, dtype=jnp.int32)
    target = target.at[:, :2, :].set(IGNORE_INDEX)   # some ignored pixels

    loss = jax.jit(criterion_forward)((pred0, pred1), target)
    loss = jax.block_until_ready(loss)
    assert jnp.isfinite(loss)
    print("KERNEL_OK")
</pallas_src>

<mosaic_0001>
module attributes {stable_mosaic.version = 11 : i64} {
  func.func @kernel(%arg0: i32, %arg1: i32, %arg2: memref<1x32x8xf32, #tpu.memory_space<vmem>>, %arg3: memref<1x16x16xi32, #tpu.memory_space<vmem>>, %arg4: memref<16x8xf32, #tpu.memory_space<vmem>>, %arg5: memref<8x16xf32, #tpu.memory_space<vmem>>, %arg6: memref<1x1x1x2xf32, #tpu.memory_space<vmem>>, %arg7: memref<32x16xf32, #tpu.memory_space<vmem>>) attributes {dimension_semantics = [#tpu.dimension_semantics<parallel>, #tpu.dimension_semantics<arbitrary>], iteration_bounds = array<i64: 2, 1>, scalar_prefetch = 0 : i64, scratch_operands = 1 : i64, tpu.core_type = #tpu.core_type<tc>, window_params = [{transform_indices = @transform_0, window_bounds = array<i64: 1, 32, 8>}, {transform_indices = @transform_1, window_bounds = array<i64: 1, 16, 16>}, {transform_indices = @transform_2, window_bounds = array<i64: 16, 8>}, {pipeline_mode = #tpu.pipeline_mode<synchronous>, transform_indices = @transform_3, window_bounds = array<i64: 8, 16>}, {transform_indices = @transform_4, window_bounds = array<i64: 1, 1, 1, 2>}]} {
    %c0_i32 = arith.constant 0 : i32
    %0 = arith.cmpi eq, %arg1, %c0_i32 : i32
    %1 = arith.extui %0 : i1 to i32
    %c0_i32_0 = arith.constant 0 : i32
    %2 = arith.cmpi ne, %1, %c0_i32_0 : i32
    scf.if %2 {
      %c0_29 = arith.constant 0 : index
      %c0_30 = arith.constant 0 : index
      %c0_31 = arith.constant 0 : index
      %89 = vector.load %arg2[%c0_29, %c0_30, %c0_31] : memref<1x32x8xf32, #tpu.memory_space<vmem>>, vector<1x32x8xf32>
      %90 = vector.shape_cast %89 : vector<1x32x8xf32> to vector<32x8xf32>
      %c0_32 = arith.constant 0 : index
      %c0_33 = arith.constant 0 : index
      %91 = vector.load %arg5[%c0_32, %c0_33] : memref<8x16xf32, #tpu.memory_space<vmem>>, vector<8x16xf32>
      %cst_34 = arith.constant dense<0.000000e+00> : vector<32x16xf32>
      %92 = tpu.matmul %90, %91, %cst_34 {dimension_numbers = #tpu.dot_dimension_numbers<[1], [0], [0], [1], [0, 0, 1, 1], [], []>} : vector<32x8xf32>, vector<8x16xf32>, vector<32x16xf32> -> vector<32x16xf32>
      %c0_35 = arith.constant 0 : index
      %c0_36 = arith.constant 0 : index
      %93 = vector.load %arg7[%c0_35, %c0_36] : memref<32x16xf32, #tpu.memory_space<vmem>>, vector<32x16xf32>
      tpu.vector_store %arg7[%c0_35, %c0_36], %92 {strides = array<i32>} : memref<32x16xf32, #tpu.memory_space<vmem>>, vector<32x16xf32>,
    } else {
    }
    %c0 = arith.constant 0 : index
    %c0_1 = arith.constant 0 : index
    %3 = vector.load %arg4[%c0, %c0_1] : memref<16x8xf32, #tpu.memory_space<vmem>>, vector<16x8xf32>
    %c0_2 = arith.constant 0 : index
    %c0_3 = arith.constant 0 : index
    %c0_4 = arith.constant 0 : index
    %4 = vector.load %arg3[%c0_2, %c0_3, %c0_4] : memref<1x16x16xi32, #tpu.memory_space<vmem>>, vector<1x16x16xi32>
    %5 = vector.shape_cast %4 : vector<1x16x16xi32> to vector<16x16xi32>
    %c0_5 = arith.constant 0 : index
    %c0_6 = arith.constant 0 : index
    %6 = vector.load %arg7[%c0_5, %c0_6] : memref<32x16xf32, #tpu.memory_space<vmem>>, vector<8x16xf32>
    %cst = arith.constant dense<0.000000e+00> : vector<16x16xf32>
    %7 = tpu.matmul %3, %6, %cst {dimension_numbers = #tpu.dot_dimension_numbers<[1], [0], [0], [1], [0, 0, 1, 1], [], []>} : vector<16x8xf32>, vector<8x16xf32>, vector<16x16xf32> -> vector<16x16xf32>
    %cst_7 = arith.constant 1.000000e+00 : f32
    %8 = vector.broadcast %cst_7 : f32 to vector<16x16xf32>
    %c0_i32_8 = arith.constant 0 : i32
    %9 = vector.broadcast %c0_i32_8 : i32 to vector<16x16xi32>
    %10 = arith.cmpi eq, %5, %9 : vector<16x16xi32>
    %cst_9 = arith.constant 0.000000e+00 : f32
    %11 = vector.broadcast %cst_9 : f32 to vector<16x16xf32>
    %12 = arith.select %10, %7, %11 : vector<16x16xi1>, vector<16x16xf32>
    %c8 = arith.constant 8 : index
    %c0_10 = arith.constant 0 : index
    %13 = vector.load %arg7[%c8, %c0_10] : memref<32x16xf32, #tpu.memory_space<vmem>>, vector<8x16xf32>
    %cst_11 = arith.constant dense<0.000000e+00> : vector<16x16xf32>
    %14 = tpu.matmul %3, %13, %cst_11 {dimension_numbers = #tpu.dot_dimension_numbers<[1], [0], [0], [1], [0, 0, 1, 1], [], []>} : vector<16x8xf32>, vector<8x16xf32>, vector<16x16xf32> -> vector<16x16xf32>
    %15 = arith.maximumf %7, %14 : vector<16x16xf32>
    %16 = arith.subf %7, %15 : vector<16x16xf32>
    %17 = math.exp %16 : vector<16x16xf32>
    %18 = arith.mulf %8, %17 : vector<16x16xf32>
    %19 = arith.subf %14, %15 : vector<16x16xf32>
    %20 = math.exp %19 : vector<16x16xf32>
    %21 = arith.addf %18, %20 : vector<16x16xf32>
    %c1_i32 = arith.constant 1 : i32
    %22 = vector.broadcast %c1_i32 : i32 to vector<16x16xi32>
    %23 = arith.cmpi eq, %5, %22 : vector<16x16xi32>
    %cst_12 = arith.constant 0.000000e+00 : f32
    %24 = vector.broadcast %cst_12 : f32 to vector<16x16xf32>
    %25 = arith.select %23, %14, %24 : vector<16x16xi1>, vector<16x16xf32>
    %26 = arith.addf %12, %25 : vector<16x16xf32>
    %c16 = arith.constant 16 : index
    %c0_13 = arith.constant 0 : index
    %27 = vector.load %arg7[%c16, %c0_13] : memref<32x16xf32, #tpu.memory_space<vmem>>, vector<8x16xf32>
    %cst_14 = arith.constant dense<0.000000e+00> : vector<16x16xf32>
    %28 = tpu.matmul %3, %27, %cst_14 {dimension_numbers = #tpu.dot_dimension_numbers<[1], [0], [0], [1], [0, 0, 1, 1], [], []>} : vector<16x8xf32>, vector<8x16xf32>, vector<16x16xf32> -> vector<16x16xf32>
    %29 = arith.maximumf %15, %28 : vector<16x16xf32>
    %30 = arith.subf %15, %29 : vector<16x16xf32>
    %31 = math.exp %30 : vector<16x16xf32>
    %32 = arith.mulf %21, %31 : vector<16x16xf32>
    %33 = arith.subf %28, %29 : vector<16x16xf32>
    %34 = math.exp %33 : vector<16x16xf32>
    %35 = arith.addf %32, %34 : vector<16x16xf32>
    %c2_i32 = arith.constant 2 : i32
    %36 = vector.broadcast %c2_i32 : i32 to vector<16x16xi32>
    %37 = arith.cmpi eq, %5, %36 : vector<16x16xi32>
    %cst_15 = arith.constant 0.000000e+00 : f32
    %38 = vector.broadcast %cst_15 : f32 to vector<16x16xf32>
    %39 = arith.select %37, %28, %38 : vector<16x16xi1>, vector<16x16xf32>
    %40 = arith.addf %26, %39 : vector<16x16xf32>
    %c24 = arith.constant 24 : index
    %c0_16 = arith.constant 0 : index
    %41 = vector.load %arg7[%c24, %c0_16] : memref<32x16xf32, #tpu.memory_space<vmem>>, vector<8x16xf32>
    %cst_17 = arith.constant dense<0.000000e+00> : vector<16x16xf32>
    %42 = tpu.matmul %3, %41, %cst_17 {dimension_numbers = #tpu.dot_dimension_numbers<[1], [0], [0], [1], [0, 0, 1, 1], [], []>} : vector<16x8xf32>, vector<8x16xf32>, vector<16x16xf32> -> vector<16x16xf32>
    %43 = arith.maximumf %29, %42 : vector<16x16xf32>
    %44 = arith.subf %29, %43 : vector<16x16xf32>
    %45 = math.exp %44 : vector<16x16xf32>
    %46 = arith.mulf %35, %45 : vector<16x16xf32>
    %47 = arith.subf %42, %43 : vector<16x16xf32>
    %48 = math.exp %47 : vector<16x16xf32>
    %49 = arith.addf %46, %48 : vector<16x16xf32>
    %c3_i32 = arith.constant 3 : i32
    %50 = vector.broadcast %c3_i32 : i32 to vector<16x16xi32>
    %51 = arith.cmpi eq, %5, %50 : vector<16x16xi32>
    %cst_18 = arith.constant 0.000000e+00 : f32
    %52 = vector.broadcast %cst_18 : f32 to vector<16x16xf32>
    %53 = arith.select %51, %42, %52 : vector<16x16xi1>, vector<16x16xf32>
    %54 = arith.addf %40, %53 : vector<16x16xf32>
    %55 = math.log %49 : vector<16x16xf32>
    %56 = arith.addf %43, %55 : vector<16x16xf32>
    %c255_i32 = arith.constant 255 : i32
    %57 = vector.broadcast %c255_i32 : i32 to vector<16x16xi32>
    %58 = arith.cmpi ne, %5, %57 : vector<16x16xi32>
    %c4_i32 = arith.constant 4 : i32
    %59 = vector.broadcast %c4_i32 : i32 to vector<16x16xi32>
    %60 = arith.cmpi slt, %5, %59 : vector<16x16xi32>
    %61 = arith.andi %58, %60 : vector<16x16xi1>
    %62 = arith.extui %61 : vector<16x16xi1> to vector<16x16xi32>
    %63 = arith.sitofp %62 : vector<16x16xi32> to vector<16x16xf32>
    %64 = arith.subf %56, %54 : vector<16x16xf32>
    %65 = arith.mulf %64, %63 : vector<16x16xf32>
    %66 = tpu.iota {dimensions = array<i32: 1>} : vector<1x2xi32>
    %c0_i32_19 = arith.constant 0 : i32
    %67 = vector.broadcast %c0_i32_19 : i32 to vector<1x2xi32>
    %68 = arith.cmpi eq, %66, %67 : vector<1x2xi32>
    %69 = arith.extui %68 : vector<1x2xi1> to vector<1x2xi32>
    %70 = arith.sitofp %69 : vector<1x2xi32> to vector<1x2xf32>
    %cst_20 = arith.constant dense<0.000000e+00> : vector<16xf32>
    %71 = vector.multi_reduction <add>, %65, %cst_20 [1] : vector<16x16xf32> to vector<16xf32>
    %72 = vector.shape_cast %71 : vector<16xf32> to vector<16x1xf32>
    %cst_21 = arith.constant dense<0.000000e+00> : vector<1xf32>
    %73 = vector.multi_reduction <add>, %72, %cst_21 [0] : vector<16x1xf32> to vector<1xf32>
    %74 = vector.shape_cast %73 : vector<1xf32> to vector<1x1xf32>
    %75 = vector.broadcast %74 : vector<1x1xf32> to vector<1x2xf32>
    %76 = arith.mulf %70, %75 : vector<1x2xf32>
    %cst_22 = arith.constant 1.000000e+00 : f32
    %77 = vector.broadcast %cst_22 : f32 to vector<1x2xf32>
    %78 = arith.subf %77, %70 : vector<1x2xf32>
    %cst_23 = arith.constant dense<0.000000e+00> : vector<16xf32>
    %79 = vector.multi_reduction <add>, %63, %cst_23 [1] : vector<16x16xf32> to vector<16xf32>
    %80 = vector.shape_cast %79 : vector<16xf32> to vector<16x1xf32>
    %cst_24 = arith.constant dense<0.000000e+00> : vector<1xf32>
    %81 = vector.multi_reduction <add>, %80, %cst_24 [0] : vector<16x1xf32> to vector<1xf32>
    %82 = vector.shape_cast %81 : vector<1xf32> to vector<1x1xf32>
    %83 = vector.broadcast %82 : vector<1x1xf32> to vector<1x2xf32>
    %84 = arith.mulf %78, %83 : vector<1x2xf32>
    %85 = arith.addf %76, %84 : vector<1x2xf32>
    %c0_25 = arith.constant 0 : index
    %c0_26 = arith.constant 0 : index
    %c0_27 = arith.constant 0 : index
    %c0_28 = arith.constant 0 : index
    %86 = vector.load %arg6[%c0_25, %c0_26, %c0_27, %c0_28] : memref<1x1x1x2xf32, #tpu.memory_space<vmem>>, vector<1x1x1x2xf32>
    %87 = vector.shape_cast %86 : vector<1x1x1x2xf32> to vector<1x2xf32>
    %88 = vector.shape_cast %85 : vector<1x2xf32> to vector<1x1x1x2xf32>
    tpu.vector_store %arg6[%c0_25, %c0_26, %c0_27, %c0_28], %88 {strides = array<i32>} : memref<1x1x1x2xf32, #tpu.memory_space<vmem>>, vector<1x1x1x2xf32>,
    return
  }
  func.func @transform_0(%arg0: i32, %arg1: i32) -> (i32, i32, i32) {
    %c0_i32 = arith.constant 0 : i32
    %c0_i32_0 = arith.constant 0 : i32
    %c0_i32_1 = arith.constant 0 : i32
    return %arg0, %c0_i32, %c0_i32_0 : i32, i32, i32
  }
  func.func @transform_1(%arg0: i32, %arg1: i32) -> (i32, i32, i32) {
    %c0_i32 = arith.constant 0 : i32
    %c0_i32_0 = arith.constant 0 : i32
    return %arg0, %arg1, %c0_i32 : i32, i32, i32
  }
  func.func @transform_2(%arg0: i32, %arg1: i32) -> (i32, i32) {
    %c0_i32 = arith.constant 0 : i32
    %c0_i32_0 = arith.constant 0 : i32
    return %arg1, %c0_i32 : i32, i32
  }
  func.func @transform_3(%arg0: i32, %arg1: i32) -> (i32, i32) {
    %c0_i32 = arith.constant 0 : i32
    %c0_i32_0 = arith.constant 0 : i32
    %c0_i32_1 = arith.constant 0 : i32
    return %c0_i32, %c0_i32_0 : i32, i32
  }
  func.func @transform_4(%arg0: i32, %arg1: i32) -> (i32, i32, i32, i32) {
    %c0_i32 = arith.constant 0 : i32
    %c0_i32_0 = arith.constant 0 : i32
    %c0_i32_1 = arith.constant 0 : i32
    return %arg0, %arg1, %c0_i32, %c0_i32_0 : i32, i32, i32, i32
  }
}

module attributes {stable_mosaic.version = 11 : i64} {
  func.func @kernel(%arg0: i32, %arg1: i32, %arg2: memref<1x32x8xf32, #tpu.memory_space<vmem>>, %arg3: memref<1x16x16xi32, #tpu.memory_space<vmem>>, %arg4: memref<16x8xf32, #tpu.memory_space<vmem>>, %arg5: memref<8x16xf32, #tpu.memory_space<vmem>>, %arg6: memref<1x1x5x4xf32, #tpu.memory_space<vmem>>, %arg7: memref<32x16xf32, #tpu.memory_space<vmem>>) attributes {dimension_semantics = [#tpu.dimension_semantics<parallel>, #tpu.dimension_semantics<arbitrary>], iteration_bounds = array<i64: 2, 1>, scalar_prefetch = 0 : i64, scratch_operands = 1 : i64, tpu.core_type = #tpu.core_type<tc>, window_params = [{transform_indices = @transform_0, window_bounds = array<i64: 1, 32, 8>}, {transform_indices = @transform_1, window_bounds = array<i64: 1, 16, 16>}, {transform_indices = @transform_2, window_bounds = array<i64: 16, 8>}, {pipeline_mode = #tpu.pipeline_mode<synchronous>, transform_indices = @transform_3, window_bounds = array<i64: 8, 16>}, {transform_indices = @transform_4, window_bounds = array<i64: 1, 1, 5, 4>}]} {
    %c0_i32 = arith.constant 0 : i32
    %0 = arith.cmpi eq, %arg1, %c0_i32 : i32
    %1 = arith.extui %0 : i1 to i32
    %c0_i32_0 = arith.constant 0 : i32
    %2 = arith.cmpi ne, %1, %c0_i32_0 : i32
    scf.if %2 {
      %c0_138 = arith.constant 0 : index
      %c0_139 = arith.constant 0 : index
      %c0_140 = arith.constant 0 : index
      %384 = vector.load %arg2[%c0_138, %c0_139, %c0_140] : memref<1x32x8xf32, #tpu.memory_space<vmem>>, vector<1x32x8xf32>
      %385 = vector.shape_cast %384 : vector<1x32x8xf32> to vector<32x8xf32>
      %c0_141 = arith.constant 0 : index
      %c0_142 = arith.constant 0 : index
      %386 = vector.load %arg5[%c0_141, %c0_142] : memref<8x16xf32, #tpu.memory_space<vmem>>, vector<8x16xf32>
      %cst_143 = arith.constant dense<0.000000e+00> : vector<32x16xf32>
      %387 = tpu.matmul %385, %386, %cst_143 {dimension_numbers = #tpu.dot_dimension_numbers<[1], [0], [0], [1], [0, 0, 1, 1], [], []>} : vector<32x8xf32>, vector<8x16xf32>, vector<32x16xf32> -> vector<32x16xf32>
      %c0_144 = arith.constant 0 : index
      %c0_145 = arith.constant 0 : index
      %388 = vector.load %arg7[%c0_144, %c0_145] : memref<32x16xf32, #tpu.memory_space<vmem>>, vector<32x16xf32>
      tpu.vector_store %arg7[%c0_144, %c0_145], %387 {strides = array<i32>} : memref<32x16xf32, #tpu.memory_space<vmem>>, vector<32x16xf32>,
    } else {
    }
    %c0 = arith.constant 0 : index
    %c0_1 = arith.constant 0 : index
    %3 = vector.load %arg4[%c0, %c0_1] : memref<16x8xf32, #tpu.memory_space<vmem>>, vector<16x8xf32>
    %c0_2 = arith.constant 0 : index
    %c0_3 = arith.constant 0 : index
    %c0_4 = arith.constant 0 : index
    %4 = vector.load %arg3[%c0_2, %c0_3, %c0_4] : memref<1x16x16xi32, #tpu.memory_space<vmem>>, vector<1x16x16xi32>
    %5 = vector.shape_cast %4 : vector<1x16x16xi32> to vector<16x16xi32>
    %6 = tpu.iota {dimensions = array<i32: 0>} : vector<5x4xi32>
    %7 = tpu.iota {dimensions = array<i32: 1>} : vector<5x4xi32>
    %cst = arith.constant 0.000000e+00 : f32
    %8 = vector.broadcast %cst : f32 to vector<5x4xf32>
    %c0_5 = arith.constant 0 : index
    %c0_6 = arith.constant 0 : index
    %9 = vector.load %arg7[%c0_5, %c0_6] : memref<32x16xf32, #tpu.memory_space<vmem>>, vector<8x16xf32>
    %cst_7 = arith.constant dense<0.000000e+00> : vector<16x16xf32>
    %10 = tpu.matmul %3, %9, %cst_7 {dimension_numbers = #tpu.dot_dimension_numbers<[1], [0], [0], [1], [0, 0, 1, 1], [], []>} : vector<16x8xf32>, vector<8x16xf32>, vector<16x16xf32> -> vector<16x16xf32>
    %c0_i32_8 = arith.constant 0 : i32
    %11 = vector.broadcast %c0_i32_8 : i32 to vector<16x16xi32>
    %12 = arith.cmpi eq, %5, %11 : vector<16x16xi32>
    %cst_9 = arith.constant 0.000000e+00 : f32
    %13 = vector.broadcast %cst_9 : f32 to vector<16x16xf32>
    %14 = arith.select %12, %10, %13 : vector<16x16xi1>, vector<16x16xf32>
    %cst_10 = arith.constant dense<0.000000e+00> : vector<16xf32>
    %15 = vector.multi_reduction <add>, %14, %cst_10 [1] : vector<16x16xf32> to vector<16xf32>
    %16 = vector.shape_cast %15 : vector<16xf32> to vector<16x1xf32>
    %cst_11 = arith.constant dense<0.000000e+00> : vector<1xf32>
    %17 = vector.multi_reduction <add>, %16, %cst_11 [0] : vector<16x1xf32> to vector<1xf32>
    %18 = vector.shape_cast %17 : vector<1xf32> to vector<1x1xf32>
    %c0_i32_12 = arith.constant 0 : i32
    %19 = vector.broadcast %c0_i32_12 : i32 to vector<5x4xi32>
    %20 = arith.cmpi eq, %6, %19 : vector<5x4xi32>
    %c0_i32_13 = arith.constant 0 : i32
    %21 = vector.broadcast %c0_i32_13 : i32 to vector<5x4xi32>
    %22 = arith.cmpi eq, %7, %21 : vector<5x4xi32>
    %23 = arith.andi %20, %22 : vector<5x4xi1>
    %24 = arith.extui %23 : vector<5x4xi1> to vector<5x4xi32>
    %25 = arith.sitofp %24 : vector<5x4xi32> to vector<5x4xf32>
    %26 = vector.broadcast %18 : vector<1x1xf32> to vector<5x4xf32>
    %27 = arith.mulf %25, %26 : vector<5x4xf32>
    %28 = arith.addf %8, %27 : vector<5x4xf32>
    %c1_i32 = arith.constant 1 : i32
    %29 = vector.broadcast %c1_i32 : i32 to vector<16x16xi32>
    %30 = arith.cmpi eq, %5, %29 : vector<16x16xi32>
    %cst_14 = arith.constant 0.000000e+00 : f32
    %31 = vector.broadcast %cst_14 : f32 to vector<16x16xf32>
    %32 = arith.select %30, %10, %31 : vector<16x16xi1>, vector<16x16xf32>
    %cst_15 = arith.constant dense<0.000000e+00> : vector<16xf32>
    %33 = vector.multi_reduction <add>, %32, %cst_15 [1] : vector<16x16xf32> to vector<16xf32>
    %34 = vector.shape_cast %33 : vector<16xf32> to vector<16x1xf32>
    %cst_16 = arith.constant dense<0.000000e+00> : vector<1xf32>
    %35 = vector.multi_reduction <add>, %34, %cst_16 [0] : vector<16x1xf32> to vector<1xf32>
    %36 = vector.shape_cast %35 : vector<1xf32> to vector<1x1xf32>
    %c0_i32_17 = arith.constant 0 : i32
    %37 = vector.broadcast %c0_i32_17 : i32 to vector<5x4xi32>
    %38 = arith.cmpi eq, %6, %37 : vector<5x4xi32>
    %c1_i32_18 = arith.constant 1 : i32
    %39 = vector.broadcast %c1_i32_18 : i32 to vector<5x4xi32>
    %40 = arith.cmpi eq, %7, %39 : vector<5x4xi32>
    %41 = arith.andi %38, %40 : vector<5x4xi1>
    %42 = arith.extui %41 : vector<5x4xi1> to vector<5x4xi32>
    %43 = arith.sitofp %42 : vector<5x4xi32> to vector<5x4xf32>
    %44 = vector.broadcast %36 : vector<1x1xf32> to vector<5x4xf32>
    %45 = arith.mulf %43, %44 : vector<5x4xf32>
    %46 = arith.addf %28, %45 : vector<5x4xf32>
    %c2_i32 = arith.constant 2 : i32
    %47 = vector.broadcast %c2_i32 : i32 to vector<16x16xi32>
    %48 = arith.cmpi eq, %5, %47 : vector<16x16xi32>
    %cst_19 = arith.constant 0.000000e+00 : f32
    %49 = vector.broadcast %cst_19 : f32 to vector<16x16xf32>
    %50 = arith.select %48, %10, %49 : vector<16x16xi1>, vector<16x16xf32>
    %cst_20 = arith.constant dense<0.000000e+00> : vector<16xf32>
    %51 = vector.multi_reduction <add>, %50, %cst_20 [1] : vector<16x16xf32> to vector<16xf32>
    %52 = vector.shape_cast %51 : vector<16xf32> to vector<16x1xf32>
    %cst_21 = arith.constant dense<0.000000e+00> : vector<1xf32>
    %53 = vector.multi_reduction <add>, %52, %cst_21 [0] : vector<16x1xf32> to vector<1xf32>
    %54 = vector.shape_cast %53 : vector<1xf32> to vector<1x1xf32>
    %c0_i32_22 = arith.constant 0 : i32
    %55 = vector.broadcast %c0_i32_22 : i32 to vector<5x4xi32>
    %56 = arith.cmpi eq, %6, %55 : vector<5x4xi32>
    %c2_i32_23 = arith.constant 2 : i32
    %57 = vector.broadcast %c2_i32_23 : i32 to vector<5x4xi32>
    %58 = arith.cmpi eq, %7, %57 : vector<5x4xi32>
    %59 = arith.andi %56, %58 : vector<5x4xi1>
    %60 = arith.extui %59 : vector<5x4xi1> to vector<5x4xi32>
    %61 = arith.sitofp %60 : vector<5x4xi32> to vector<5x4xf32>
    %62 = vector.broadcast %54 : vector<1x1xf32> to vector<5x4xf32>
    %63 = arith.mulf %61, %62 : vector<5x4xf32>
    %64 = arith.addf %46, %63 : vector<5x4xf32>
    %c3_i32 = arith.constant 3 : i32
    %65 = vector.broadcast %c3_i32 : i32 to vector<16x16xi32>
    %66 = arith.cmpi eq, %5, %65 : vector<16x16xi32>
    %cst_24 = arith.constant 0.000000e+00 : f32
    %67 = vector.broadcast %cst_24 : f32 to vector<16x16xf32>
    %68 = arith.select %66, %10, %67 : vector<16x16xi1>, vector<16x16xf32>
    %cst_25 = arith.constant dense<0.000000e+00> : vector<16xf32>
    %69 = vector.multi_reduction <add>, %68, %cst_25 [1] : vector<16x16xf32> to vector<16xf32>
    %70 = vector.shape_cast %69 : vector<16xf32> to vector<16x1xf32>
    %cst_26 = arith.constant dense<0.000000e+00> : vector<1xf32>
    %71 = vector.multi_reduction <add>, %70, %cst_26 [0] : vector<16x1xf32> to vector<1xf32>
    %72 = vector.shape_cast %71 : vector<1xf32> to vector<1x1xf32>
    %c0_i32_27 = arith.constant 0 : i32
    %73 = vector.broadcast %c0_i32_27 : i32 to vector<5x4xi32>
    %74 = arith.cmpi eq, %6, %73 : vector<5x4xi32>
    %c3_i32_28 = arith.constant 3 : i32
    %75 = vector.broadcast %c3_i32_28 : i32 to vector<5x4xi32>
    %76 = arith.cmpi eq, %7, %75 : vector<5x4xi32>
    %77 = arith.andi %74, %76 : vector<5x4xi1>
    %78 = arith.extui %77 : vector<5x4xi1> to vector<5x4xi32>
    %79 = arith.sitofp %78 : vector<5x4xi32> to vector<5x4xf32>
    %80 = vector.broadcast %72 : vector<1x1xf32> to vector<5x4xf32>
    %81 = arith.mulf %79, %80 : vector<5x4xf32>
    %82 = arith.addf %64, %81 : vector<5x4xf32>
    %c8 = arith.constant 8 : index
    %c0_29 = arith.constant 0 : index
    %83 = vector.load %arg7[%c8, %c0_29] : memref<32x16xf32, #tpu.memory_space<vmem>>, vector<8x16xf32>
    %cst_30 = arith.constant dense<0.000000e+00> : vector<16x16xf32>
    %84 = tpu.matmul %3, %83, %cst_30 {dimension_numbers = #tpu.dot_dimension_numbers<[1], [0], [0], [1], [0, 0, 1, 1], [], []>} : vector<16x8xf32>, vector<8x16xf32>, vector<16x16xf32> -> vector<16x16xf32>
    %c0_i32_31 = arith.constant 0 : i32
    %85 = vector.broadcast %c0_i32_31 : i32 to vector<16x16xi32>
    %86 = arith.cmpi eq, %5, %85 : vector<16x16xi32>
    %cst_32 = arith.constant 0.000000e+00 : f32
    %87 = vector.broadcast %cst_32 : f32 to vector<16x16xf32>
    %88 = arith.select %86, %84, %87 : vector<16x16xi1>, vector<16x16xf32>
    %cst_33 = arith.constant dense<0.000000e+00> : vector<16xf32>
    %89 = vector.multi_reduction <add>, %88, %cst_33 [1] : vector<16x16xf32> to vector<16xf32>
    %90 = vector.shape_cast %89 : vector<16xf32> to vector<16x1xf32>
    %cst_34 = arith.constant dense<0.000000e+00> : vector<1xf32>
    %91 = vector.multi_reduction <add>, %90, %cst_34 [0] : vector<16x1xf32> to vector<1xf32>
    %92 = vector.shape_cast %91 : vector<1xf32> to vector<1x1xf32>
    %c1_i32_35 = arith.constant 1 : i32
    %93 = vector.broadcast %c1_i32_35 : i32 to vector<5x4xi32>
    %94 = arith.cmpi eq, %6, %93 : vector<5x4xi32>
    %c0_i32_36 = arith.constant 0 : i32
    %95 = vector.broadcast %c0_i32_36 : i32 to vector<5x4xi32>
    %96 = arith.cmpi eq, %7, %95 : vector<5x4xi32>
    %97 = arith.andi %94, %96 : vector<5x4xi1>
    %98 = arith.extui %97 : vector<5x4xi1> to vector<5x4xi32>
    %99 = arith.sitofp %98 : vector<5x4xi32> to vector<5x4xf32>
    %100 = vector.broadcast %92 : vector<1x1xf32> to vector<5x4xf32>
    %101 = arith.mulf %99, %100 : vector<5x4xf32>
    %102 = arith.addf %82, %101 : vector<5x4xf32>
    %c1_i32_37 = arith.constant 1 : i32
    %103 = vector.broadcast %c1_i32_37 : i32 to vector<16x16xi32>
    %104 = arith.cmpi eq, %5, %103 : vector<16x16xi32>
    %cst_38 = arith.constant 0.000000e+00 : f32
    %105 = vector.broadcast %cst_38 : f32 to vector<16x16xf32>
    %106 = arith.select %104, %84, %105 : vector<16x16xi1>, vector<16x16xf32>
    %cst_39 = arith.constant dense<0.000000e+00> : vector<16xf32>
    %107 = vector.multi_reduction <add>, %106, %cst_39 [1] : vector<16x16xf32> to vector<16xf32>
    %108 = vector.shape_cast %107 : vector<16xf32> to vector<16x1xf32>
    %cst_40 = arith.constant dense<0.000000e+00> : vector<1xf32>
    %109 = vector.multi_reduction <add>, %108, %cst_40 [0] : vector<16x1xf32> to vector<1xf32>
    %110 = vector.shape_cast %109 : vector<1xf32> to vector<1x1xf32>
    %c1_i32_41 = arith.constant 1 : i32
    %111 = vector.broadcast %c1_i32_41 : i32 to vector<5x4xi32>
    %112 = arith.cmpi eq, %6, %111 : vector<5x4xi32>
    %c1_i32_42 = arith.constant 1 : i32
    %113 = vector.broadcast %c1_i32_42 : i32 to vector<5x4xi32>
    %114 = arith.cmpi eq, %7, %113 : vector<5x4xi32>
    %115 = arith.andi %112, %114 : vector<5x4xi1>
    %116 = arith.extui %115 : vector<5x4xi1> to vector<5x4xi32>
    %117 = arith.sitofp %116 : vector<5x4xi32> to vector<5x4xf32>
    %118 = vector.broadcast %110 : vector<1x1xf32> to vector<5x4xf32>
    %119 = arith.mulf %117, %118 : vector<5x4xf32>
    %120 = arith.addf %102, %119 : vector<5x4xf32>
    %c2_i32_43 = arith.constant 2 : i32
    %121 = vector.broadcast %c2_i32_43 : i32 to vector<16x16xi32>
    %122 = arith.cmpi eq, %5, %121 : vector<16x16xi32>
    %cst_44 = arith.constant 0.000000e+00 : f32
    %123 = vector.broadcast %cst_44 : f32 to vector<16x16xf32>
    %124 = arith.select %122, %84, %123 : vector<16x16xi1>, vector<16x16xf32>
    %cst_45 = arith.constant dense<0.000000e+00> : vector<16xf32>
    %125 = vector.multi_reduction <add>, %124, %cst_45 [1] : vector<16x16xf32> to vector<16xf32>
    %126 = vector.shape_cast %125 : vector<16xf32> to vector<16x1xf32>
    %cst_46 = arith.constant dense<0.000000e+00> : vector<1xf32>
    %127 = vector.multi_reduction <add>, %126, %cst_46 [0] : vector<16x1xf32> to vector<1xf32>
    %128 = vector.shape_cast %127 : vector<1xf32> to vector<1x1xf32>
    %c1_i32_47 = arith.constant 1 : i32
    %129 = vector.broadcast %c1_i32_47 : i32 to vector<5x4xi32>
    %130 = arith.cmpi eq, %6, %129 : vector<5x4xi32>
    %c2_i32_48 = arith.constant 2 : i32
    %131 = vector.broadcast %c2_i32_48 : i32 to vector<5x4xi32>
    %132 = arith.cmpi eq, %7, %131 : vector<5x4xi32>
    %133 = arith.andi %130, %132 : vector<5x4xi1>
    %134 = arith.extui %133 : vector<5x4xi1> to vector<5x4xi32>
    %135 = arith.sitofp %134 : vector<5x4xi32> to vector<5x4xf32>
    %136 = vector.broadcast %128 : vector<1x1xf32> to vector<5x4xf32>
    %137 = arith.mulf %135, %136 : vector<5x4xf32>
    %138 = arith.addf %120, %137 : vector<5x4xf32>
    %c3_i32_49 = arith.constant 3 : i32
    %139 = vector.broadcast %c3_i32_49 : i32 to vector<16x16xi32>
    %140 = arith.cmpi eq, %5, %139 : vector<16x16xi32>
    %cst_50 = arith.constant 0.000000e+00 : f32
    %141 = vector.broadcast %cst_50 : f32 to vector<16x16xf32>
    %142 = arith.select %140, %84, %141 : vector<16x16xi1>, vector<16x16xf32>
    %cst_51 = arith.constant dense<0.000000e+00> : vector<16xf32>
    %143 = vector.multi_reduction <add>, %142, %cst_51 [1] : vector<16x16xf32> to vector<16xf32>
    %144 = vector.shape_cast %143 : vector<16xf32> to vector<16x1xf32>
    %cst_52 = arith.constant dense<0.000000e+00> : vector<1xf32>
    %145 = vector.multi_reduction <add>, %144, %cst_52 [0] : vector<16x1xf32> to vector<1xf32>
    %146 = vector.shape_cast %145 : vector<1xf32> to vector<1x1xf32>
    %c1_i32_53 = arith.constant 1 : i32
    %147 = vector.broadcast %c1_i32_53 : i32 to vector<5x4xi32>
    %148 = arith.cmpi eq, %6, %147 : vector<5x4xi32>
    %c3_i32_54 = arith.constant 3 : i32
    %149 = vector.broadcast %c3_i32_54 : i32 to vector<5x4xi32>
    %150 = arith.cmpi eq, %7, %149 : vector<5x4xi32>
    %151 = arith.andi %148, %150 : vector<5x4xi1>
    %152 = arith.extui %151 : vector<5x4xi1> to vector<5x4xi32>
    %153 = arith.sitofp %152 : vector<5x4xi32> to vector<5x4xf32>
    %154 = vector.broadcast %146 : vector<1x1xf32> to vector<5x4xf32>
    %155 = arith.mulf %153, %154 : vector<5x4xf32>
    %156 = arith.addf %138, %155 : vector<5x4xf32>
    %c16 = arith.constant 16 : index
    %c0_55 = arith.constant 0 : index
    %157 = vector.load %arg7[%c16, %c0_55] : memref<32x16xf32, #tpu.memory_space<vmem>>, vector<8x16xf32>
    %cst_56 = arith.constant dense<0.000000e+00> : vector<16x16xf32>
    %158 = tpu.matmul %3, %157, %cst_56 {dimension_numbers = #tpu.dot_dimension_numbers<[1], [0], [0], [1], [0, 0, 1, 1], [], []>} : vector<16x8xf32>, vector<8x16xf32>, vector<16x16xf32> -> vector<16x16xf32>
    %c0_i32_57 = arith.constant 0 : i32
    %159 = vector.broadcast %c0_i32_57 : i32 to vector<16x16xi32>
    %160 = arith.cmpi eq, %5, %159 : vector<16x16xi32>
    %cst_58 = arith.constant 0.000000e+00 : f32
    %161 = vector.broadcast %cst_58 : f32 to vector<16x16xf32>
    %162 = arith.select %160, %158, %161 : vector<16x16xi1>, vector<16x16xf32>
    %cst_59 = arith.constant dense<0.000000e+00> : vector<16xf32>
    %163 = vector.multi_reduction <add>, %162, %cst_59 [1] : vector<16x16xf32> to vector<16xf32>
    %164 = vector.shape_cast %163 : vector<16xf32> to vector<16x1xf32>
    %cst_60 = arith.constant dense<0.000000e+00> : vector<1xf32>
    %165 = vector.multi_reduction <add>, %164, %cst_60 [0] : vector<16x1xf32> to vector<1xf32>
    %166 = vector.shape_cast %165 : vector<1xf32> to vector<1x1xf32>
    %c2_i32_61 = arith.constant 2 : i32
    %167 = vector.broadcast %c2_i32_61 : i32 to vector<5x4xi32>
    %168 = arith.cmpi eq, %6, %167 : vector<5x4xi32>
    %c0_i32_62 = arith.constant 0 : i32
    %169 = vector.broadcast %c0_i32_62 : i32 to vector<5x4xi32>
    %170 = arith.cmpi eq, %7, %169 : vector<5x4xi32>
    %171 = arith.andi %168, %170 : vector<5x4xi1>
    %172 = arith.extui %171 : vector<5x4xi1> to vector<5x4xi32>
    %173 = arith.sitofp %172 : vector<5x4xi32> to vector<5x4xf32>
    %174 = vector.broadcast %166 : vector<1x1xf32> to vector<5x4xf32>
    %175 = arith.mulf %173, %174 : vector<5x4xf32>
    %176 = arith.addf %156, %175 : vector<5x4xf32>
    %c1_i32_63 = arith.constant 1 : i32
    %177 = vector.broadcast %c1_i32_63 : i32 to vector<16x16xi32>
    %178 = arith.cmpi eq, %5, %177 : vector<16x16xi32>
    %cst_64 = arith.constant 0.000000e+00 : f32
    %179 = vector.broadcast %cst_64 : f32 to vector<16x16xf32>
    %180 = arith.select %178, %158, %179 : vector<16x16xi1>, vector<16x16xf32>
    %cst_65 = arith.constant dense<0.000000e+00> : vector<16xf32>
    %181 = vector.multi_reduction <add>, %180, %cst_65 [1] : vector<16x16xf32> to vector<16xf32>
    %182 = vector.shape_cast %181 : vector<16xf32> to vector<16x1xf32>
    %cst_66 = arith.constant dense<0.000000e+00> : vector<1xf32>
    %183 = vector.multi_reduction <add>, %182, %cst_66 [0] : vector<16x1xf32> to vector<1xf32>
    %184 = vector.shape_cast %183 : vector<1xf32> to vector<1x1xf32>
    %c2_i32_67 = arith.constant 2 : i32
    %185 = vector.broadcast %c2_i32_67 : i32 to vector<5x4xi32>
    %186 = arith.cmpi eq, %6, %185 : vector<5x4xi32>
    %c1_i32_68 = arith.constant 1 : i32
    %187 = vector.broadcast %c1_i32_68 : i32 to vector<5x4xi32>
    %188 = arith.cmpi eq, %7, %187 : vector<5x4xi32>
    %189 = arith.andi %186, %188 : vector<5x4xi1>
    %190 = arith.extui %189 : vector<5x4xi1> to vector<5x4xi32>
    %191 = arith.sitofp %190 : vector<5x4xi32> to vector<5x4xf32>
    %192 = vector.broadcast %184 : vector<1x1xf32> to vector<5x4xf32>
    %193 = arith.mulf %191, %192 : vector<5x4xf32>
    %194 = arith.addf %176, %193 : vector<5x4xf32>
    %c2_i32_69 = arith.constant 2 : i32
    %195 = vector.broadcast %c2_i32_69 : i32 to vector<16x16xi32>
    %196 = arith.cmpi eq, %5, %195 : vector<16x16xi32>
    %cst_70 = arith.constant 0.000000e+00 : f32
    %197 = vector.broadcast %cst_70 : f32 to vector<16x16xf32>
    %198 = arith.select %196, %158, %197 : vector<16x16xi1>, vector<16x16xf32>
    %cst_71 = arith.constant dense<0.000000e+00> : vector<16xf32>
    %199 = vector.multi_reduction <add>, %198, %cst_71 [1] : vector<16x16xf32> to vector<16xf32>
    %200 = vector.shape_cast %199 : vector<16xf32> to vector<16x1xf32>
    %cst_72 = arith.constant dense<0.000000e+00> : vector<1xf32>
    %201 = vector.multi_reduction <add>, %200, %cst_72 [0] : vector<16x1xf32> to vector<1xf32>
    %202 = vector.shape_cast %201 : vector<1xf32> to vector<1x1xf32>
    %c2_i32_73 = arith.constant 2 : i32
    %203 = vector.broadcast %c2_i32_73 : i32 to vector<5x4xi32>
    %204 = arith.cmpi eq, %6, %203 : vector<5x4xi32>
    %c2_i32_74 = arith.constant 2 : i32
    %205 = vector.broadcast %c2_i32_74 : i32 to vector<5x4xi32>
    %206 = arith.cmpi eq, %7, %205 : vector<5x4xi32>
    %207 = arith.andi %204, %206 : vector<5x4xi1>
    %208 = arith.extui %207 : vector<5x4xi1> to vector<5x4xi32>
    %209 = arith.sitofp %208 : vector<5x4xi32> to vector<5x4xf32>
    %210 = vector.broadcast %202 : vector<1x1xf32> to vector<5x4xf32>
    %211 = arith.mulf %209, %210 : vector<5x4xf32>
    %212 = arith.addf %194, %211 : vector<5x4xf32>
    %c3_i32_75 = arith.constant 3 : i32
    %213 = vector.broadcast %c3_i32_75 : i32 to vector<16x16xi32>
    %214 = arith.cmpi eq, %5, %213 : vector<16x16xi32>
    %cst_76 = arith.constant 0.000000e+00 : f32
    %215 = vector.broadcast %cst_76 : f32 to vector<16x16xf32>
    %216 = arith.select %214, %158, %215 : vector<16x16xi1>, vector<16x16xf32>
    %cst_77 = arith.constant dense<0.000000e+00> : vector<16xf32>
    %217 = vector.multi_reduction <add>, %216, %cst_77 [1] : vector<16x16xf32> to vector<16xf32>
    %218 = vector.shape_cast %217 : vector<16xf32> to vector<16x1xf32>
    %cst_78 = arith.constant dense<0.000000e+00> : vector<1xf32>
    %219 = vector.multi_reduction <add>, %218, %cst_78 [0] : vector<16x1xf32> to vector<1xf32>
    %220 = vector.shape_cast %219 : vector<1xf32> to vector<1x1xf32>
    %c2_i32_79 = arith.constant 2 : i32
    %221 = vector.broadcast %c2_i32_79 : i32 to vector<5x4xi32>
    %222 = arith.cmpi eq, %6, %221 : vector<5x4xi32>
    %c3_i32_80 = arith.constant 3 : i32
    %223 = vector.broadcast %c3_i32_80 : i32 to vector<5x4xi32>
    %224 = arith.cmpi eq, %7, %223 : vector<5x4xi32>
    %225 = arith.andi %222, %224 : vector<5x4xi1>
    %226 = arith.extui %225 : vector<5x4xi1> to vector<5x4xi32>
    %227 = arith.sitofp %226 : vector<5x4xi32> to vector<5x4xf32>
    %228 = vector.broadcast %220 : vector<1x1xf32> to vector<5x4xf32>
    %229 = arith.mulf %227, %228 : vector<5x4xf32>
    %230 = arith.addf %212, %229 : vector<5x4xf32>
    %c24 = arith.constant 24 : index
    %c0_81 = arith.constant 0 : index
    %231 = vector.load %arg7[%c24, %c0_81] : memref<32x16xf32, #tpu.memory_space<vmem>>, vector<8x16xf32>
    %cst_82 = arith.constant dense<0.000000e+00> : vector<16x16xf32>
    %232 = tpu.matmul %3, %231, %cst_82 {dimension_numbers = #tpu.dot_dimension_numbers<[1], [0], [0], [1], [0, 0, 1, 1], [], []>} : vector<16x8xf32>, vector<8x16xf32>, vector<16x16xf32> -> vector<16x16xf32>
    %c0_i32_83 = arith.constant 0 : i32
    %233 = vector.broadcast %c0_i32_83 : i32 to vector<16x16xi32>
    %234 = arith.cmpi eq, %5, %233 : vector<16x16xi32>
    %cst_84 = arith.constant 0.000000e+00 : f32
    %235 = vector.broadcast %cst_84 : f32 to vector<16x16xf32>
    %236 = arith.select %234, %232, %235 : vector<16x16xi1>, vector<16x16xf32>
    %cst_85 = arith.constant dense<0.000000e+00> : vector<16xf32>
    %237 = vector.multi_reduction <add>, %236, %cst_85 [1] : vector<16x16xf32> to vector<16xf32>
    %238 = vector.shape_cast %237 : vector<16xf32> to vector<16x1xf32>
    %cst_86 = arith.constant dense<0.000000e+00> : vector<1xf32>
    %239 = vector.multi_reduction <add>, %238, %cst_86 [0] : vector<16x1xf32> to vector<1xf32>
    %240 = vector.shape_cast %239 : vector<1xf32> to vector<1x1xf32>
    %c3_i32_87 = arith.constant 3 : i32
    %241 = vector.broadcast %c3_i32_87 : i32 to vector<5x4xi32>
    %242 = arith.cmpi eq, %6, %241 : vector<5x4xi32>
    %c0_i32_88 = arith.constant 0 : i32
    %243 = vector.broadcast %c0_i32_88 : i32 to vector<5x4xi32>
    %244 = arith.cmpi eq, %7, %243 : vector<5x4xi32>
    %245 = arith.andi %242, %244 : vector<5x4xi1>
    %246 = arith.extui %245 : vector<5x4xi1> to vector<5x4xi32>
    %247 = arith.sitofp %246 : vector<5x4xi32> to vector<5x4xf32>
    %248 = vector.broadcast %240 : vector<1x1xf32> to vector<5x4xf32>
    %249 = arith.mulf %247, %248 : vector<5x4xf32>
    %250 = arith.addf %230, %249 : vector<5x4xf32>
    %c1_i32_89 = arith.constant 1 : i32
    %251 = vector.broadcast %c1_i32_89 : i32 to vector<16x16xi32>
    %252 = arith.cmpi eq, %5, %251 : vector<16x16xi32>
    %cst_90 = arith.constant 0.000000e+00 : f32
    %253 = vector.broadcast %cst_90 : f32 to vector<16x16xf32>
    %254 = arith.select %252, %232, %253 : vector<16x16xi1>, vector<16x16xf32>
    %cst_91 = arith.constant dense<0.000000e+00> : vector<16xf32>
    %255 = vector.multi_reduction <add>, %254, %cst_91 [1] : vector<16x16xf32> to vector<16xf32>
    %256 = vector.shape_cast %255 : vector<16xf32> to vector<16x1xf32>
    %cst_92 = arith.constant dense<0.000000e+00> : vector<1xf32>
    %257 = vector.multi_reduction <add>, %256, %cst_92 [0] : vector<16x1xf32> to vector<1xf32>
    %258 = vector.shape_cast %257 : vector<1xf32> to vector<1x1xf32>
    %c3_i32_93 = arith.constant 3 : i32
    %259 = vector.broadcast %c3_i32_93 : i32 to vector<5x4xi32>
    %260 = arith.cmpi eq, %6, %259 : vector<5x4xi32>
    %c1_i32_94 = arith.constant 1 : i32
    %261 = vector.broadcast %c1_i32_94 : i32 to vector<5x4xi32>
    %262 = arith.cmpi eq, %7, %261 : vector<5x4xi32>
    %263 = arith.andi %260, %262 : vector<5x4xi1>
    %264 = arith.extui %263 : vector<5x4xi1> to vector<5x4xi32>
    %265 = arith.sitofp %264 : vector<5x4xi32> to vector<5x4xf32>
    %266 = vector.broadcast %258 : vector<1x1xf32> to vector<5x4xf32>
    %267 = arith.mulf %265, %266 : vector<5x4xf32>
    %268 = arith.addf %250, %267 : vector<5x4xf32>
    %c2_i32_95 = arith.constant 2 : i32
    %269 = vector.broadcast %c2_i32_95 : i32 to vector<16x16xi32>
    %270 = arith.cmpi eq, %5, %269 : vector<16x16xi32>
    %cst_96 = arith.constant 0.000000e+00 : f32
    %271 = vector.broadcast %cst_96 : f32 to vector<16x16xf32>
    %272 = arith.select %270, %232, %271 : vector<16x16xi1>, vector<16x16xf32>
    %cst_97 = arith.constant dense<0.000000e+00> : vector<16xf32>
    %273 = vector.multi_reduction <add>, %272, %cst_97 [1] : vector<16x16xf32> to vector<16xf32>
    %274 = vector.shape_cast %273 : vector<16xf32> to vector<16x1xf32>
    %cst_98 = arith.constant dense<0.000000e+00> : vector<1xf32>
    %275 = vector.multi_reduction <add>, %274, %cst_98 [0] : vector<16x1xf32> to vector<1xf32>
    %276 = vector.shape_cast %275 : vector<1xf32> to vector<1x1xf32>
    %c3_i32_99 = arith.constant 3 : i32
    %277 = vector.broadcast %c3_i32_99 : i32 to vector<5x4xi32>
    %278 = arith.cmpi eq, %6, %277 : vector<5x4xi32>
    %c2_i32_100 = arith.constant 2 : i32
    %279 = vector.broadcast %c2_i32_100 : i32 to vector<5x4xi32>
    %280 = arith.cmpi eq, %7, %279 : vector<5x4xi32>
    %281 = arith.andi %278, %280 : vector<5x4xi1>
    %282 = arith.extui %281 : vector<5x4xi1> to vector<5x4xi32>
    %283 = arith.sitofp %282 : vector<5x4xi32> to vector<5x4xf32>
    %284 = vector.broadcast %276 : vector<1x1xf32> to vector<5x4xf32>
    %285 = arith.mulf %283, %284 : vector<5x4xf32>
    %286 = arith.addf %268, %285 : vector<5x4xf32>
    %c3_i32_101 = arith.constant 3 : i32
    %287 = vector.broadcast %c3_i32_101 : i32 to vector<16x16xi32>
    %288 = arith.cmpi eq, %5, %287 : vector<16x16xi32>
    %cst_102 = arith.constant 0.000000e+00 : f32
    %289 = vector.broadcast %cst_102 : f32 to vector<16x16xf32>
    %290 = arith.select %288, %232, %289 : vector<16x16xi1>, vector<16x16xf32>
    %cst_103 = arith.constant dense<0.000000e+00> : vector<16xf32>
    %291 = vector.multi_reduction <add>, %290, %cst_103 [1] : vector<16x16xf32> to vector<16xf32>
    %292 = vector.shape_cast %291 : vector<16xf32> to vector<16x1xf32>
    %cst_104 = arith.constant dense<0.000000e+00> : vector<1xf32>
    %293 = vector.multi_reduction <add>, %292, %cst_104 [0] : vector<16x1xf32> to vector<1xf32>
    %294 = vector.shape_cast %293 : vector<1xf32> to vector<1x1xf32>
    %c3_i32_105 = arith.constant 3 : i32
    %295 = vector.broadcast %c3_i32_105 : i32 to vector<5x4xi32>
    %296 = arith.cmpi eq, %6, %295 : vector<5x4xi32>
    %c3_i32_106 = arith.constant 3 : i32
    %297 = vector.broadcast %c3_i32_106 : i32 to vector<5x4xi32>
    %298 = arith.cmpi eq, %7, %297 : vector<5x4xi32>
    %299 = arith.andi %296, %298 : vector<5x4xi1>
    %300 = arith.extui %299 : vector<5x4xi1> to vector<5x4xi32>
    %301 = arith.sitofp %300 : vector<5x4xi32> to vector<5x4xf32>
    %302 = vector.broadcast %294 : vector<1x1xf32> to vector<5x4xf32>
    %303 = arith.mulf %301, %302 : vector<5x4xf32>
    %304 = arith.addf %286, %303 : vector<5x4xf32>
    %c0_i32_107 = arith.constant 0 : i32
    %305 = vector.broadcast %c0_i32_107 : i32 to vector<16x16xi32>
    %306 = arith.cmpi eq, %5, %305 : vector<16x16xi32>
    %cst_108 = arith.constant 1.000000e+00 : f32
    %cst_109 = arith.constant 0.000000e+00 : f32
    %307 = vector.broadcast %cst_108 : f32 to vector<16x16xf32>
    %308 = vector.broadcast %cst_109 : f32 to vector<16x16xf32>
    %309 = arith.select %306, %307, %308 : vector<16x16xi1>, vector<16x16xf32>
    %cst_110 = arith.constant dense<0.000000e+00> : vector<16xf32>
    %310 = vector.multi_reduction <add>, %309, %cst_110 [1] : vector<16x16xf32> to vector<16xf32>
    %311 = vector.shape_cast %310 : vector<16xf32> to vector<16x1xf32>
    %cst_111 = arith.constant dense<0.000000e+00> : vector<1xf32>
    %312 = vector.multi_reduction <add>, %311, %cst_111 [0] : vector<16x1xf32> to vector<1xf32>
    %313 = vector.shape_cast %312 : vector<1xf32> to vector<1x1xf32>
    %c4_i32 = arith.constant 4 : i32
    %314 = vector.broadcast %c4_i32 : i32 to vector<5x4xi32>
    %315 = arith.cmpi eq, %6, %314 : vector<5x4xi32>
    %c0_i32_112 = arith.constant 0 : i32
    %316 = vector.broadcast %c0_i32_112 : i32 to vector<5x4xi32>
    %317 = arith.cmpi eq, %7, %316 : vector<5x4xi32>
    %318 = arith.andi %315, %317 : vector<5x4xi1>
    %319 = arith.extui %318 : vector<5x4xi1> to vector<5x4xi32>
    %320 = arith.sitofp %319 : vector<5x4xi32> to vector<5x4xf32>
    %321 = vector.broadcast %313 : vector<1x1xf32> to vector<5x4xf32>
    %322 = arith.mulf %320, %321 : vector<5x4xf32>
    %323 = arith.addf %304, %322 : vector<5x4xf32>
    %c1_i32_113 = arith.constant 1 : i32
    %324 = vector.broadcast %c1_i32_113 : i32 to vector<16x16xi32>
    %325 = arith.cmpi eq, %5, %324 : vector<16x16xi32>
    %cst_114 = arith.constant 1.000000e+00 : f32
    %cst_115 = arith.constant 0.000000e+00 : f32
    %326 = vector.broadcast %cst_114 : f32 to vector<16x16xf32>
    %327 = vector.broadcast %cst_115 : f32 to vector<16x16xf32>
    %328 = arith.select %325, %326, %327 : vector<16x16xi1>, vector<16x16xf32>
    %cst_116 = arith.constant dense<0.000000e+00> : vector<16xf32>
    %329 = vector.multi_reduction <add>, %328, %cst_116 [1] : vector<16x16xf32> to vector<16xf32>
    %330 = vector.shape_cast %329 : vector<16xf32> to vector<16x1xf32>
    %cst_117 = arith.constant dense<0.000000e+00> : vector<1xf32>
    %331 = vector.multi_reduction <add>, %330, %cst_117 [0] : vector<16x1xf32> to vector<1xf32>
    %332 = vector.shape_cast %331 : vector<1xf32> to vector<1x1xf32>
    %c4_i32_118 = arith.constant 4 : i32
    %333 = vector.broadcast %c4_i32_118 : i32 to vector<5x4xi32>
    %334 = arith.cmpi eq, %6, %333 : vector<5x4xi32>
    %c1_i32_119 = arith.constant 1 : i32
    %335 = vector.broadcast %c1_i32_119 : i32 to vector<5x4xi32>
    %336 = arith.cmpi eq, %7, %335 : vector<5x4xi32>
    %337 = arith.andi %334, %336 : vector<5x4xi1>
    %338 = arith.extui %337 : vector<5x4xi1> to vector<5x4xi32>
    %339 = arith.sitofp %338 : vector<5x4xi32> to vector<5x4xf32>
    %340 = vector.broadcast %332 : vector<1x1xf32> to vector<5x4xf32>
    %341 = arith.mulf %339, %340 : vector<5x4xf32>
    %342 = arith.addf %323, %341 : vector<5x4xf32>
    %c2_i32_120 = arith.constant 2 : i32
    %343 = vector.broadcast %c2_i32_120 : i32 to vector<16x16xi32>
    %344 = arith.cmpi eq, %5, %343 : vector<16x16xi32>
    %cst_121 = arith.constant 1.000000e+00 : f32
    %cst_122 = arith.constant 0.000000e+00 : f32
    %345 = vector.broadcast %cst_121 : f32 to vector<16x16xf32>
    %346 = vector.broadcast %cst_122 : f32 to vector<16x16xf32>
    %347 = arith.select %344, %345, %346 : vector<16x16xi1>, vector<16x16xf32>
    %cst_123 = arith.constant dense<0.000000e+00> : vector<16xf32>
    %348 = vector.multi_reduction <add>, %347, %cst_123 [1] : vector<16x16xf32> to vector<16xf32>
    %349 = vector.shape_cast %348 : vector<16xf32> to vector<16x1xf32>
    %cst_124 = arith.constant dense<0.000000e+00> : vector<1xf32>
    %350 = vector.multi_reduction <add>, %349, %cst_124 [0] : vector<16x1xf32> to vector<1xf32>
    %351 = vector.shape_cast %350 : vector<1xf32> to vector<1x1xf32>
    %c4_i32_125 = arith.constant 4 : i32
    %352 = vector.broadcast %c4_i32_125 : i32 to vector<5x4xi32>
    %353 = arith.cmpi eq, %6, %352 : vector<5x4xi32>
    %c2_i32_126 = arith.constant 2 : i32
    %354 = vector.broadcast %c2_i32_126 : i32 to vector<5x4xi32>
    %355 = arith.cmpi eq, %7, %354 : vector<5x4xi32>
    %356 = arith.andi %353, %355 : vector<5x4xi1>
    %357 = arith.extui %356 : vector<5x4xi1> to vector<5x4xi32>
    %358 = arith.sitofp %357 : vector<5x4xi32> to vector<5x4xf32>
    %359 = vector.broadcast %351 : vector<1x1xf32> to vector<5x4xf32>
    %360 = arith.mulf %358, %359 : vector<5x4xf32>
    %361 = arith.addf %342, %360 : vector<5x4xf32>
    %c3_i32_127 = arith.constant 3 : i32
    %362 = vector.broadcast %c3_i32_127 : i32 to vector<16x16xi32>
    %363 = arith.cmpi eq, %5, %362 : vector<16x16xi32>
    %cst_128 = arith.constant 1.000000e+00 : f32
    %cst_129 = arith.constant 0.000000e+00 : f32
    %364 = vector.broadcast %cst_128 : f32 to vector<16x16xf32>
    %365 = vector.broadcast %cst_129 : f32 to vector<16x16xf32>
    %366 = arith.select %363, %364, %365 : vector<16x16xi1>, vector<16x16xf32>
    %cst_130 = arith.constant dense<0.000000e+00> : vector<16xf32>
    %367 = vector.multi_reduction <add>, %366, %cst_130 [1] : vector<16x16xf32> to vector<16xf32>
    %368 = vector.shape_cast %367 : vector<16xf32> to vector<16x1xf32>
    %cst_131 = arith.constant dense<0.000000e+00> : vector<1xf32>
    %369 = vector.multi_reduction <add>, %368, %cst_131 [0] : vector<16x1xf32> to vector<1xf32>
    %370 = vector.shape_cast %369 : vector<1xf32> to vector<1x1xf32>
    %c4_i32_132 = arith.constant 4 : i32
    %371 = vector.broadcast %c4_i32_132 : i32 to vector<5x4xi32>
    %372 = arith.cmpi eq, %6, %371 : vector<5x4xi32>
    %c3_i32_133 = arith.constant 3 : i32
    %373 = vector.broadcast %c3_i32_133 : i32 to vector<5x4xi32>
    %374 = arith.cmpi eq, %7, %373 : vector<5x4xi32>
    %375 = arith.andi %372, %374 : vector<5x4xi1>
    %376 = arith.extui %375 : vector<5x4xi1> to vector<5x4xi32>
    %377 = arith.sitofp %376 : vector<5x4xi32> to vector<5x4xf32>
    %378 = vector.broadcast %370 : vector<1x1xf32> to vector<5x4xf32>
    %379 = arith.mulf %377, %378 : vector<5x4xf32>
    %380 = arith.addf %361, %379 : vector<5x4xf32>
    %c0_134 = arith.constant 0 : index
    %c0_135 = arith.constant 0 : index
    %c0_136 = arith.constant 0 : index
    %c0_137 = arith.constant 0 : index
    %381 = vector.load %arg6[%c0_134, %c0_135, %c0_136, %c0_137] : memref<1x1x5x4xf32, #tpu.memory_space<vmem>>, vector<1x1x5x4xf32>
    %382 = vector.shape_cast %381 : vector<1x1x5x4xf32> to vector<5x4xf32>
    %383 = vector.shape_cast %380 : vector<5x4xf32> to vector<1x1x5x4xf32>
    tpu.vector_store %arg6[%c0_134, %c0_135, %c0_136, %c0_137], %383 {strides = array<i32>} : memref<1x1x5x4xf32, #tpu.memory_space<vmem>>, vector<1x1x5x4xf32>,
    return
  }
  func.func @transform_0(%arg0: i32, %arg1: i32) -> (i32, i32, i32) {
    %c0_i32 = arith.constant 0 : i32
    %c0_i32_0 = arith.constant 0 : i32
    %c0_i32_1 = arith.constant 0 : i32
    return %arg0, %c0_i32, %c0_i32_0 : i32, i32, i32
  }
  func.func @transform_1(%arg0: i32, %arg1: i32) -> (i32, i32, i32) {
    %c0_i32 = arith.constant 0 : i32
    %c0_i32_0 = arith.constant 0 : i32
    return %arg0, %arg1, %c0_i32 : i32, i32, i32
  }
  func.func @transform_2(%arg0: i32, %arg1: i32) -> (i32, i32) {
    %c0_i32 = arith.constant 0 : i32
    %c0_i32_0 = arith.constant 0 : i32
    return %arg1, %c0_i32 : i32, i32
  }
  func.func @transform_3(%arg0: i32, %arg1: i32) -> (i32, i32) {
    %c0_i32 = arith.constant 0 : i32
    %c0_i32_0 = arith.constant 0 : i32
    %c0_i32_1 = arith.constant 0 : i32
    return %c0_i32, %c0_i32_0 : i32, i32
  }
  func.func @transform_4(%arg0: i32, %arg1: i32) -> (i32, i32, i32, i32) {
    %c0_i32 = arith.constant 0 : i32
    %c0_i32_0 = arith.constant 0 : i32
    %c0_i32_1 = arith.constant 0 : i32
    return %arg0, %arg1, %c0_i32, %c0_i32_0 : i32, i32, i32, i32
  }
}

module attributes {stable_mosaic.version = 11 : i64} {
  func.func @kernel(%arg0: i32, %arg1: i32, %arg2: memref<1x32x8xf32, #tpu.memory_space<vmem>>, %arg3: memref<1x16x16xi32, #tpu.memory_space<vmem>>, %arg4: memref<16x8xf32, #tpu.memory_space<vmem>>, %arg5: memref<8x16xf32, #tpu.memory_space<vmem>>, %arg6: memref<1x4x4xf32, #tpu.memory_space<vmem>>, %arg7: memref<1x1x4xf32, #tpu.memory_space<vmem>>, %arg8: memref<1x1x1x1xf32, #tpu.memory_space<vmem>>, %arg9: memref<32x16xf32, #tpu.memory_space<vmem>>) attributes {dimension_semantics = [#tpu.dimension_semantics<parallel>, #tpu.dimension_semantics<arbitrary>], iteration_bounds = array<i64: 2, 1>, scalar_prefetch = 0 : i64, scratch_operands = 1 : i64, tpu.core_type = #tpu.core_type<tc>, window_params = [{transform_indices = @transform_0, window_bounds = array<i64: 1, 32, 8>}, {transform_indices = @transform_1, window_bounds = array<i64: 1, 16, 16>}, {transform_indices = @transform_2, window_bounds = array<i64: 16, 8>}, {pipeline_mode = #tpu.pipeline_mode<synchronous>, transform_indices = @transform_3, window_bounds = array<i64: 8, 16>}, {transform_indices = @transform_4, window_bounds = array<i64: 1, 4, 4>}, {transform_indices = @transform_5, window_bounds = array<i64: 1, 1, 4>}, {transform_indices = @transform_6, window_bounds = array<i64: 1, 1, 1, 1>}]} {
    %c0_i32 = arith.constant 0 : i32
    %0 = arith.cmpi eq, %arg1, %c0_i32 : i32
    %1 = arith.extui %0 : i1 to i32
    %c0_i32_0 = arith.constant 0 : i32
    %2 = arith.cmpi ne, %1, %c0_i32_0 : i32
    scf.if %2 {
      %c0_141 = arith.constant 0 : index
      %c0_142 = arith.constant 0 : index
      %c0_143 = arith.constant 0 : index
      %246 = vector.load %arg2[%c0_141, %c0_142, %c0_143] : memref<1x32x8xf32, #tpu.memory_space<vmem>>, vector<1x32x8xf32>
      %247 = vector.shape_cast %246 : vector<1x32x8xf32> to vector<32x8xf32>
      %c0_144 = arith.constant 0 : index
      %c0_145 = arith.constant 0 : index
      %248 = vector.load %arg5[%c0_144, %c0_145] : memref<8x16xf32, #tpu.memory_space<vmem>>, vector<8x16xf32>
      %cst_146 = arith.constant dense<0.000000e+00> : vector<32x16xf32>
      %249 = tpu.matmul %247, %248, %cst_146 {dimension_numbers = #tpu.dot_dimension_numbers<[1], [0], [0], [1], [0, 0, 1, 1], [], []>} : vector<32x8xf32>, vector<8x16xf32>, vector<32x16xf32> -> vector<32x16xf32>
      %c0_147 = arith.constant 0 : index
      %c0_148 = arith.constant 0 : index
      %250 = vector.load %arg9[%c0_147, %c0_148] : memref<32x16xf32, #tpu.memory_space<vmem>>, vector<32x16xf32>
      tpu.vector_store %arg9[%c0_147, %c0_148], %249 {strides = array<i32>} : memref<32x16xf32, #tpu.memory_space<vmem>>, vector<32x16xf32>,
    } else {
    }
    %c0 = arith.constant 0 : index
    %c0_1 = arith.constant 0 : index
    %3 = vector.load %arg4[%c0, %c0_1] : memref<16x8xf32, #tpu.memory_space<vmem>>, vector<16x8xf32>
    %c0_2 = arith.constant 0 : index
    %c0_3 = arith.constant 0 : index
    %c0_4 = arith.constant 0 : index
    %4 = vector.load %arg3[%c0_2, %c0_3, %c0_4] : memref<1x16x16xi32, #tpu.memory_space<vmem>>, vector<1x16x16xi32>
    %5 = vector.shape_cast %4 : vector<1x16x16xi32> to vector<16x16xi32>
    %cst = arith.constant 0.000000e+00 : f32
    %6 = vector.broadcast %cst : f32 to vector<16x16xf32>
    %c0_i32_5 = arith.constant 0 : i32
    %7 = vector.broadcast %c0_i32_5 : i32 to vector<16x16xi32>
    %8 = arith.cmpi eq, %5, %7 : vector<16x16xi32>
    %cst_6 = arith.constant 1.000000e+00 : f32
    %cst_7 = arith.constant 0.000000e+00 : f32
    %9 = vector.broadcast %cst_6 : f32 to vector<16x16xf32>
    %10 = vector.broadcast %cst_7 : f32 to vector<16x16xf32>
    %11 = arith.select %8, %9, %10 : vector<16x16xi1>, vector<16x16xf32>
    %c0_8 = arith.constant 0 : index
    %c0_9 = arith.constant 0 : index
    %c0_10 = arith.constant 0 : index
    %12 = vector.load %arg7[%c0_8, %c0_9, %c0_10] : memref<1x1x4xf32, #tpu.memory_space<vmem>>, vector<1x1x1xf32>
    %13 = vector.shape_cast %12 : vector<1x1x1xf32> to vector<1x1xf32>
    %14 = vector.broadcast %13 : vector<1x1xf32> to vector<16x16xf32>
    %15 = arith.mulf %11, %14 : vector<16x16xf32>
    %16 = arith.addf %6, %15 : vector<16x16xf32>
    %c1_i32 = arith.constant 1 : i32
    %17 = vector.broadcast %c1_i32 : i32 to vector<16x16xi32>
    %18 = arith.cmpi eq, %5, %17 : vector<16x16xi32>
    %cst_11 = arith.constant 1.000000e+00 : f32
    %cst_12 = arith.constant 0.000000e+00 : f32
    %19 = vector.broadcast %cst_11 : f32 to vector<16x16xf32>
    %20 = vector.broadcast %cst_12 : f32 to vector<16x16xf32>
    %21 = arith.select %18, %19, %20 : vector<16x16xi1>, vector<16x16xf32>
    %c0_13 = arith.constant 0 : index
    %c0_14 = arith.constant 0 : index
    %c1 = arith.constant 1 : index
    %22 = vector.load %arg7[%c0_13, %c0_14, %c1] : memref<1x1x4xf32, #tpu.memory_space<vmem>>, vector<1x1x1xf32>
    %23 = vector.shape_cast %22 : vector<1x1x1xf32> to vector<1x1xf32>
    %24 = vector.broadcast %23 : vector<1x1xf32> to vector<16x16xf32>
    %25 = arith.mulf %21, %24 : vector<16x16xf32>
    %26 = arith.addf %16, %25 : vector<16x16xf32>
    %c2_i32 = arith.constant 2 : i32
    %27 = vector.broadcast %c2_i32 : i32 to vector<16x16xi32>
    %28 = arith.cmpi eq, %5, %27 : vector<16x16xi32>
    %cst_15 = arith.constant 1.000000e+00 : f32
    %cst_16 = arith.constant 0.000000e+00 : f32
    %29 = vector.broadcast %cst_15 : f32 to vector<16x16xf32>
    %30 = vector.broadcast %cst_16 : f32 to vector<16x16xf32>
    %31 = arith.select %28, %29, %30 : vector<16x16xi1>, vector<16x16xf32>
    %c0_17 = arith.constant 0 : index
    %c0_18 = arith.constant 0 : index
    %c2 = arith.constant 2 : index
    %32 = vector.load %arg7[%c0_17, %c0_18, %c2] : memref<1x1x4xf32, #tpu.memory_space<vmem>>, vector<1x1x1xf32>
    %33 = vector.shape_cast %32 : vector<1x1x1xf32> to vector<1x1xf32>
    %34 = vector.broadcast %33 : vector<1x1xf32> to vector<16x16xf32>
    %35 = arith.mulf %31, %34 : vector<16x16xf32>
    %36 = arith.addf %26, %35 : vector<16x16xf32>
    %c3_i32 = arith.constant 3 : i32
    %37 = vector.broadcast %c3_i32 : i32 to vector<16x16xi32>
    %38 = arith.cmpi eq, %5, %37 : vector<16x16xi32>
    %cst_19 = arith.constant 1.000000e+00 : f32
    %cst_20 = arith.constant 0.000000e+00 : f32
    %39 = vector.broadcast %cst_19 : f32 to vector<16x16xf32>
    %40 = vector.broadcast %cst_20 : f32 to vector<16x16xf32>
    %41 = arith.select %38, %39, %40 : vector<16x16xi1>, vector<16x16xf32>
    %c0_21 = arith.constant 0 : index
    %c0_22 = arith.constant 0 : index
    %c3 = arith.constant 3 : index
    %42 = vector.load %arg7[%c0_21, %c0_22, %c3] : memref<1x1x4xf32, #tpu.memory_space<vmem>>, vector<1x1x1xf32>
    %43 = vector.shape_cast %42 : vector<1x1x1xf32> to vector<1x1xf32>
    %44 = vector.broadcast %43 : vector<1x1xf32> to vector<16x16xf32>
    %45 = arith.mulf %41, %44 : vector<16x16xf32>
    %46 = arith.addf %36, %45 : vector<16x16xf32>
    %cst_23 = arith.constant 0.000000e+00 : f32
    %47 = vector.broadcast %cst_23 : f32 to vector<16x16xf32>
    %c0_24 = arith.constant 0 : index
    %c0_25 = arith.constant 0 : index
    %48 = vector.load %arg9[%c0_24, %c0_25] : memref<32x16xf32, #tpu.memory_space<vmem>>, vector<8x16xf32>
    %cst_26 = arith.constant dense<0.000000e+00> : vector<16x16xf32>
    %49 = tpu.matmul %3, %48, %cst_26 {dimension_numbers = #tpu.dot_dimension_numbers<[1], [0], [0], [1], [0, 0, 1, 1], [], []>} : vector<16x8xf32>, vector<8x16xf32>, vector<16x16xf32> -> vector<16x16xf32>
    %cst_27 = arith.constant 0.000000e+00 : f32
    %50 = vector.broadcast %cst_27 : f32 to vector<16x16xf32>
    %c0_i32_28 = arith.constant 0 : i32
    %51 = vector.broadcast %c0_i32_28 : i32 to vector<16x16xi32>
    %52 = arith.cmpi eq, %5, %51 : vector<16x16xi32>
    %cst_29 = arith.constant 1.000000e+00 : f32
    %cst_30 = arith.constant 0.000000e+00 : f32
    %53 = vector.broadcast %cst_29 : f32 to vector<16x16xf32>
    %54 = vector.broadcast %cst_30 : f32 to vector<16x16xf32>
    %55 = arith.select %52, %53, %54 : vector<16x16xi1>, vector<16x16xf32>
    %c0_31 = arith.constant 0 : index
    %c0_32 = arith.constant 0 : index
    %c0_33 = arith.constant 0 : index
    %56 = vector.load %arg6[%c0_31, %c0_32, %c0_33] : memref<1x4x4xf32, #tpu.memory_space<vmem>>, vector<1x1x1xf32>
    %57 = vector.shape_cast %56 : vector<1x1x1xf32> to vector<1x1xf32>
    %58 = vector.broadcast %57 : vector<1x1xf32> to vector<16x16xf32>
    %59 = arith.mulf %55, %58 : vector<16x16xf32>
    %60 = arith.addf %50, %59 : vector<16x16xf32>
    %c1_i32_34 = arith.constant 1 : i32
    %61 = vector.broadcast %c1_i32_34 : i32 to vector<16x16xi32>
    %62 = arith.cmpi eq, %5, %61 : vector<16x16xi32>
    %cst_35 = arith.constant 1.000000e+00 : f32
    %cst_36 = arith.constant 0.000000e+00 : f32
    %63 = vector.broadcast %cst_35 : f32 to vector<16x16xf32>
    %64 = vector.broadcast %cst_36 : f32 to vector<16x16xf32>
    %65 = arith.select %62, %63, %64 : vector<16x16xi1>, vector<16x16xf32>
    %c0_37 = arith.constant 0 : index
    %c0_38 = arith.constant 0 : index
    %c1_39 = arith.constant 1 : index
    %66 = vector.load %arg6[%c0_37, %c0_38, %c1_39] : memref<1x4x4xf32, #tpu.memory_space<vmem>>, vector<1x1x1xf32>
    %67 = vector.shape_cast %66 : vector<1x1x1xf32> to vector<1x1xf32>
    %68 = vector.broadcast %67 : vector<1x1xf32> to vector<16x16xf32>
    %69 = arith.mulf %65, %68 : vector<16x16xf32>
    %70 = arith.addf %60, %69 : vector<16x16xf32>
    %c2_i32_40 = arith.constant 2 : i32
    %71 = vector.broadcast %c2_i32_40 : i32 to vector<16x16xi32>
    %72 = arith.cmpi eq, %5, %71 : vector<16x16xi32>
    %cst_41 = arith.constant 1.000000e+00 : f32
    %cst_42 = arith.constant 0.000000e+00 : f32
    %73 = vector.broadcast %cst_41 : f32 to vector<16x16xf32>
    %74 = vector.broadcast %cst_42 : f32 to vector<16x16xf32>
    %75 = arith.select %72, %73, %74 : vector<16x16xi1>, vector<16x16xf32>
    %c0_43 = arith.constant 0 : index
    %c0_44 = arith.constant 0 : index
    %c2_45 = arith.constant 2 : index
    %76 = vector.load %arg6[%c0_43, %c0_44, %c2_45] : memref<1x4x4xf32, #tpu.memory_space<vmem>>, vector<1x1x1xf32>
    %77 = vector.shape_cast %76 : vector<1x1x1xf32> to vector<1x1xf32>
    %78 = vector.broadcast %77 : vector<1x1xf32> to vector<16x16xf32>
    %79 = arith.mulf %75, %78 : vector<16x16xf32>
    %80 = arith.addf %70, %79 : vector<16x16xf32>
    %c3_i32_46 = arith.constant 3 : i32
    %81 = vector.broadcast %c3_i32_46 : i32 to vector<16x16xi32>
    %82 = arith.cmpi eq, %5, %81 : vector<16x16xi32>
    %cst_47 = arith.constant 1.000000e+00 : f32
    %cst_48 = arith.constant 0.000000e+00 : f32
    %83 = vector.broadcast %cst_47 : f32 to vector<16x16xf32>
    %84 = vector.broadcast %cst_48 : f32 to vector<16x16xf32>
    %85 = arith.select %82, %83, %84 : vector<16x16xi1>, vector<16x16xf32>
    %c0_49 = arith.constant 0 : index
    %c0_50 = arith.constant 0 : index
    %c3_51 = arith.constant 3 : index
    %86 = vector.load %arg6[%c0_49, %c0_50, %c3_51] : memref<1x4x4xf32, #tpu.memory_space<vmem>>, vector<1x1x1xf32>
    %87 = vector.shape_cast %86 : vector<1x1x1xf32> to vector<1x1xf32>
    %88 = vector.broadcast %87 : vector<1x1xf32> to vector<16x16xf32>
    %89 = arith.mulf %85, %88 : vector<16x16xf32>
    %90 = arith.addf %80, %89 : vector<16x16xf32>
    %91 = arith.subf %49, %90 : vector<16x16xf32>
    %92 = arith.mulf %91, %91 : vector<16x16xf32>
    %93 = arith.addf %47, %92 : vector<16x16xf32>
    %c8 = arith.constant 8 : index
    %c0_52 = arith.constant 0 : index
    %94 = vector.load %arg9[%c8, %c0_52] : memref<32x16xf32, #tpu.memory_space<vmem>>, vector<8x16xf32>
    %cst_53 = arith.constant dense<0.000000e+00> : vector<16x16xf32>
    %95 = tpu.matmul %3, %94, %cst_53 {dimension_numbers = #tpu.dot_dimension_numbers<[1], [0], [0], [1], [0, 0, 1, 1], [], []>} : vector<16x8xf32>, vector<8x16xf32>, vector<16x16xf32> -> vector<16x16xf32>
    %cst_54 = arith.constant 0.000000e+00 : f32
    %96 = vector.broadcast %cst_54 : f32 to vector<16x16xf32>
    %c0_i32_55 = arith.constant 0 : i32
    %97 = vector.broadcast %c0_i32_55 : i32 to vector<16x16xi32>
    %98 = arith.cmpi eq, %5, %97 : vector<16x16xi32>
    %cst_56 = arith.constant 1.000000e+00 : f32
    %cst_57 = arith.constant 0.000000e+00 : f32
    %99 = vector.broadcast %cst_56 : f32 to vector<16x16xf32>
    %100 = vector.broadcast %cst_57 : f32 to vector<16x16xf32>
    %101 = arith.select %98, %99, %100 : vector<16x16xi1>, vector<16x16xf32>
    %c0_58 = arith.constant 0 : index
    %c1_59 = arith.constant 1 : index
    %c0_60 = arith.constant 0 : index
    %102 = vector.load %arg6[%c0_58, %c1_59, %c0_60] : memref<1x4x4xf32, #tpu.memory_space<vmem>>, vector<1x1x1xf32>
    %103 = vector.shape_cast %102 : vector<1x1x1xf32> to vector<1x1xf32>
    %104 = vector.broadcast %103 : vector<1x1xf32> to vector<16x16xf32>
    %105 = arith.mulf %101, %104 : vector<16x16xf32>
    %106 = arith.addf %96, %105 : vector<16x16xf32>
    %c1_i32_61 = arith.constant 1 : i32
    %107 = vector.broadcast %c1_i32_61 : i32 to vector<16x16xi32>
    %108 = arith.cmpi eq, %5, %107 : vector<16x16xi32>
    %cst_62 = arith.constant 1.000000e+00 : f32
    %cst_63 = arith.constant 0.000000e+00 : f32
    %109 = vector.broadcast %cst_62 : f32 to vector<16x16xf32>
    %110 = vector.broadcast %cst_63 : f32 to vector<16x16xf32>
    %111 = arith.select %108, %109, %110 : vector<16x16xi1>, vector<16x16xf32>
    %c0_64 = arith.constant 0 : index
    %c1_65 = arith.constant 1 : index
    %c1_66 = arith.constant 1 : index
    %112 = vector.load %arg6[%c0_64, %c1_65, %c1_66] : memref<1x4x4xf32, #tpu.memory_space<vmem>>, vector<1x1x1xf32>
    %113 = vector.shape_cast %112 : vector<1x1x1xf32> to vector<1x1xf32>
    %114 = vector.broadcast %113 : vector<1x1xf32> to vector<16x16xf32>
    %115 = arith.mulf %111, %114 : vector<16x16xf32>
    %116 = arith.addf %106, %115 : vector<16x16xf32>
    %c2_i32_67 = arith.constant 2 : i32
    %117 = vector.broadcast %c2_i32_67 : i32 to vector<16x16xi32>
    %118 = arith.cmpi eq, %5, %117 : vector<16x16xi32>
    %cst_68 = arith.constant 1.000000e+00 : f32
    %cst_69 = arith.constant 0.000000e+00 : f32
    %119 = vector.broadcast %cst_68 : f32 to vector<16x16xf32>
    %120 = vector.broadcast %cst_69 : f32 to vector<16x16xf32>
    %121 = arith.select %118, %119, %120 : vector<16x16xi1>, vector<16x16xf32>
    %c0_70 = arith.constant 0 : index
    %c1_71 = arith.constant 1 : index
    %c2_72 = arith.constant 2 : index
    %122 = vector.load %arg6[%c0_70, %c1_71, %c2_72] : memref<1x4x4xf32, #tpu.memory_space<vmem>>, vector<1x1x1xf32>
    %123 = vector.shape_cast %122 : vector<1x1x1xf32> to vector<1x1xf32>
    %124 = vector.broadcast %123 : vector<1x1xf32> to vector<16x16xf32>
    %125 = arith.mulf %121, %124 : vector<16x16xf32>
    %126 = arith.addf %116, %125 : vector<16x16xf32>
    %c3_i32_73 = arith.constant 3 : i32
    %127 = vector.broadcast %c3_i32_73 : i32 to vector<16x16xi32>
    %128 = arith.cmpi eq, %5, %127 : vector<16x16xi32>
    %cst_74 = arith.constant 1.000000e+00 : f32
    %cst_75 = arith.constant 0.000000e+00 : f32
    %129 = vector.broadcast %cst_74 : f32 to vector<16x16xf32>
    %130 = vector.broadcast %cst_75 : f32 to vector<16x16xf32>
    %131 = arith.select %128, %129, %130 : vector<16x16xi1>, vector<16x16xf32>
    %c0_76 = arith.constant 0 : index
    %c1_77 = arith.constant 1 : index
    %c3_78 = arith.constant 3 : index
    %132 = vector.load %arg6[%c0_76, %c1_77, %c3_78] : memref<1x4x4xf32, #tpu.memory_space<vmem>>, vector<1x1x1xf32>
    %133 = vector.shape_cast %132 : vector<1x1x1xf32> to vector<1x1xf32>
    %134 = vector.broadcast %133 : vector<1x1xf32> to vector<16x16xf32>
    %135 = arith.mulf %131, %134 : vector<16x16xf32>
    %136 = arith.addf %126, %135 : vector<16x16xf32>
    %137 = arith.subf %95, %136 : vector<16x16xf32>
    %138 = arith.mulf %137, %137 : vector<16x16xf32>
    %139 = arith.addf %93, %138 : vector<16x16xf32>
    %c16 = arith.constant 16 : index
    %c0_79 = arith.constant 0 : index
    %140 = vector.load %arg9[%c16, %c0_79] : memref<32x16xf32, #tpu.memory_space<vmem>>, vector<8x16xf32>
    %cst_80 = arith.constant dense<0.000000e+00> : vector<16x16xf32>
    %141 = tpu.matmul %3, %140, %cst_80 {dimension_numbers = #tpu.dot_dimension_numbers<[1], [0], [0], [1], [0, 0, 1, 1], [], []>} : vector<16x8xf32>, vector<8x16xf32>, vector<16x16xf32> -> vector<16x16xf32>
    %cst_81 = arith.constant 0.000000e+00 : f32
    %142 = vector.broadcast %cst_81 : f32 to vector<16x16xf32>
    %c0_i32_82 = arith.constant 0 : i32
    %143 = vector.broadcast %c0_i32_82 : i32 to vector<16x16xi32>
    %144 = arith.cmpi eq, %5, %143 : vector<16x16xi32>
    %cst_83 = arith.constant 1.000000e+00 : f32
    %cst_84 = arith.constant 0.000000e+00 : f32
    %145 = vector.broadcast %cst_83 : f32 to vector<16x16xf32>
    %146 = vector.broadcast %cst_84 : f32 to vector<16x16xf32>
    %147 = arith.select %144, %145, %146 : vector<16x16xi1>, vector<16x16xf32>
    %c0_85 = arith.constant 0 : index
    %c2_86 = arith.constant 2 : index
    %c0_87 = arith.constant 0 : index
    %148 = vector.load %arg6[%c0_85, %c2_86, %c0_87] : memref<1x4x4xf32, #tpu.memory_space<vmem>>, vector<1x1x1xf32>
    %149 = vector.shape_cast %148 : vector<1x1x1xf32> to vector<1x1xf32>
    %150 = vector.broadcast %149 : vector<1x1xf32> to vector<16x16xf32>
    %151 = arith.mulf %147, %150 : vector<16x16xf32>
    %152 = arith.addf %142, %151 : vector<16x16xf32>
    %c1_i32_88 = arith.constant 1 : i32
    %153 = vector.broadcast %c1_i32_88 : i32 to vector<16x16xi32>
    %154 = arith.cmpi eq, %5, %153 : vector<16x16xi32>
    %cst_89 = arith.constant 1.000000e+00 : f32
    %cst_90 = arith.constant 0.000000e+00 : f32
    %155 = vector.broadcast %cst_89 : f32 to vector<16x16xf32>
    %156 = vector.broadcast %cst_90 : f32 to vector<16x16xf32>
    %157 = arith.select %154, %155, %156 : vector<16x16xi1>, vector<16x16xf32>
    %c0_91 = arith.constant 0 : index
    %c2_92 = arith.constant 2 : index
    %c1_93 = arith.constant 1 : index
    %158 = vector.load %arg6[%c0_91, %c2_92, %c1_93] : memref<1x4x4xf32, #tpu.memory_space<vmem>>, vector<1x1x1xf32>
    %159 = vector.shape_cast %158 : vector<1x1x1xf32> to vector<1x1xf32>
    %160 = vector.broadcast %159 : vector<1x1xf32> to vector<16x16xf32>
    %161 = arith.mulf %157, %160 : vector<16x16xf32>
    %162 = arith.addf %152, %161 : vector<16x16xf32>
    %c2_i32_94 = arith.constant 2 : i32
    %163 = vector.broadcast %c2_i32_94 : i32 to vector<16x16xi32>
    %164 = arith.cmpi eq, %5, %163 : vector<16x16xi32>
    %cst_95 = arith.constant 1.000000e+00 : f32
    %cst_96 = arith.constant 0.000000e+00 : f32
    %165 = vector.broadcast %cst_95 : f32 to vector<16x16xf32>
    %166 = vector.broadcast %cst_96 : f32 to vector<16x16xf32>
    %167 = arith.select %164, %165, %166 : vector<16x16xi1>, vector<16x16xf32>
    %c0_97 = arith.constant 0 : index
    %c2_98 = arith.constant 2 : index
    %c2_99 = arith.constant 2 : index
    %168 = vector.load %arg6[%c0_97, %c2_98, %c2_99] : memref<1x4x4xf32, #tpu.memory_space<vmem>>, vector<1x1x1xf32>
    %169 = vector.shape_cast %168 : vector<1x1x1xf32> to vector<1x1xf32>
    %170 = vector.broadcast %169 : vector<1x1xf32> to vector<16x16xf32>
    %171 = arith.mulf %167, %170 : vector<16x16xf32>
    %172 = arith.addf %162, %171 : vector<16x16xf32>
    %c3_i32_100 = arith.constant 3 : i32
    %173 = vector.broadcast %c3_i32_100 : i32 to vector<16x16xi32>
    %174 = arith.cmpi eq, %5, %173 : vector<16x16xi32>
    %cst_101 = arith.constant 1.000000e+00 : f32
    %cst_102 = arith.constant 0.000000e+00 : f32
    %175 = vector.broadcast %cst_101 : f32 to vector<16x16xf32>
    %176 = vector.broadcast %cst_102 : f32 to vector<16x16xf32>
    %177 = arith.select %174, %175, %176 : vector<16x16xi1>, vector<16x16xf32>
    %c0_103 = arith.constant 0 : index
    %c2_104 = arith.constant 2 : index
    %c3_105 = arith.constant 3 : index
    %178 = vector.load %arg6[%c0_103, %c2_104, %c3_105] : memref<1x4x4xf32, #tpu.memory_space<vmem>>, vector<1x1x1xf32>
    %179 = vector.shape_cast %178 : vector<1x1x1xf32> to vector<1x1xf32>
    %180 = vector.broadcast %179 : vector<1x1xf32> to vector<16x16xf32>
    %181 = arith.mulf %177, %180 : vector<16x16xf32>
    %182 = arith.addf %172, %181 : vector<16x16xf32>
    %183 = arith.subf %141, %182 : vector<16x16xf32>
    %184 = arith.mulf %183, %183 : vector<16x16xf32>
    %185 = arith.addf %139, %184 : vector<16x16xf32>
    %c24 = arith.constant 24 : index
    %c0_106 = arith.constant 0 : index
    %186 = vector.load %arg9[%c24, %c0_106] : memref<32x16xf32, #tpu.memory_space<vmem>>, vector<8x16xf32>
    %cst_107 = arith.constant dense<0.000000e+00> : vector<16x16xf32>
    %187 = tpu.matmul %3, %186, %cst_107 {dimension_numbers = #tpu.dot_dimension_numbers<[1], [0], [0], [1], [0, 0, 1, 1], [], []>} : vector<16x8xf32>, vector<8x16xf32>, vector<16x16xf32> -> vector<16x16xf32>
    %cst_108 = arith.constant 0.000000e+00 : f32
    %188 = vector.broadcast %cst_108 : f32 to vector<16x16xf32>
    %c0_i32_109 = arith.constant 0 : i32
    %189 = vector.broadcast %c0_i32_109 : i32 to vector<16x16xi32>
    %190 = arith.cmpi eq, %5, %189 : vector<16x16xi32>
    %cst_110 = arith.constant 1.000000e+00 : f32
    %cst_111 = arith.constant 0.000000e+00 : f32
    %191 = vector.broadcast %cst_110 : f32 to vector<16x16xf32>
    %192 = vector.broadcast %cst_111 : f32 to vector<16x16xf32>
    %193 = arith.select %190, %191, %192 : vector<16x16xi1>, vector<16x16xf32>
    %c0_112 = arith.constant 0 : index
    %c3_113 = arith.constant 3 : index
    %c0_114 = arith.constant 0 : index
    %194 = vector.load %arg6[%c0_112, %c3_113, %c0_114] : memref<1x4x4xf32, #tpu.memory_space<vmem>>, vector<1x1x1xf32>
    %195 = vector.shape_cast %194 : vector<1x1x1xf32> to vector<1x1xf32>
    %196 = vector.broadcast %195 : vector<1x1xf32> to vector<16x16xf32>
    %197 = arith.mulf %193, %196 : vector<16x16xf32>
    %198 = arith.addf %188, %197 : vector<16x16xf32>
    %c1_i32_115 = arith.constant 1 : i32
    %199 = vector.broadcast %c1_i32_115 : i32 to vector<16x16xi32>
    %200 = arith.cmpi eq, %5, %199 : vector<16x16xi32>
    %cst_116 = arith.constant 1.000000e+00 : f32
    %cst_117 = arith.constant 0.000000e+00 : f32
    %201 = vector.broadcast %cst_116 : f32 to vector<16x16xf32>
    %202 = vector.broadcast %cst_117 : f32 to vector<16x16xf32>
    %203 = arith.select %200, %201, %202 : vector<16x16xi1>, vector<16x16xf32>
    %c0_118 = arith.constant 0 : index
    %c3_119 = arith.constant 3 : index
    %c1_120 = arith.constant 1 : index
    %204 = vector.load %arg6[%c0_118, %c3_119, %c1_120] : memref<1x4x4xf32, #tpu.memory_space<vmem>>, vector<1x1x1xf32>
    %205 = vector.shape_cast %204 : vector<1x1x1xf32> to vector<1x1xf32>
    %206 = vector.broadcast %205 : vector<1x1xf32> to vector<16x16xf32>
    %207 = arith.mulf %203, %206 : vector<16x16xf32>
    %208 = arith.addf %198, %207 : vector<16x16xf32>
    %c2_i32_121 = arith.constant 2 : i32
    %209 = vector.broadcast %c2_i32_121 : i32 to vector<16x16xi32>
    %210 = arith.cmpi eq, %5, %209 : vector<16x16xi32>
    %cst_122 = arith.constant 1.000000e+00 : f32
    %cst_123 = arith.constant 0.000000e+00 : f32
    %211 = vector.broadcast %cst_122 : f32 to vector<16x16xf32>
    %212 = vector.broadcast %cst_123 : f32 to vector<16x16xf32>
    %213 = arith.select %210, %211, %212 : vector<16x16xi1>, vector<16x16xf32>
    %c0_124 = arith.constant 0 : index
    %c3_125 = arith.constant 3 : index
    %c2_126 = arith.constant 2 : index
    %214 = vector.load %arg6[%c0_124, %c3_125, %c2_126] : memref<1x4x4xf32, #tpu.memory_space<vmem>>, vector<1x1x1xf32>
    %215 = vector.shape_cast %214 : vector<1x1x1xf32> to vector<1x1xf32>
    %216 = vector.broadcast %215 : vector<1x1xf32> to vector<16x16xf32>
    %217 = arith.mulf %213, %216 : vector<16x16xf32>
    %218 = arith.addf %208, %217 : vector<16x16xf32>
    %c3_i32_127 = arith.constant 3 : i32
    %219 = vector.broadcast %c3_i32_127 : i32 to vector<16x16xi32>
    %220 = arith.cmpi eq, %5, %219 : vector<16x16xi32>
    %cst_128 = arith.constant 1.000000e+00 : f32
    %cst_129 = arith.constant 0.000000e+00 : f32
    %221 = vector.broadcast %cst_128 : f32 to vector<16x16xf32>
    %222 = vector.broadcast %cst_129 : f32 to vector<16x16xf32>
    %223 = arith.select %220, %221, %222 : vector<16x16xi1>, vector<16x16xf32>
    %c0_130 = arith.constant 0 : index
    %c3_131 = arith.constant 3 : index
    %c3_132 = arith.constant 3 : index
    %224 = vector.load %arg6[%c0_130, %c3_131, %c3_132] : memref<1x4x4xf32, #tpu.memory_space<vmem>>, vector<1x1x1xf32>
    %225 = vector.shape_cast %224 : vector<1x1x1xf32> to vector<1x1xf32>
    %226 = vector.broadcast %225 : vector<1x1xf32> to vector<16x16xf32>
    %227 = arith.mulf %223, %226 : vector<16x16xf32>
    %228 = arith.addf %218, %227 : vector<16x16xf32>
    %229 = arith.subf %187, %228 : vector<16x16xf32>
    %230 = arith.mulf %229, %229 : vector<16x16xf32>
    %231 = arith.addf %185, %230 : vector<16x16xf32>
    %232 = math.sqrt %231 : vector<16x16xf32>
    %cst_133 = arith.constant 5.000000e-01 : f32
    %233 = vector.broadcast %cst_133 : f32 to vector<16x16xf32>
    %234 = arith.subf %232, %233 : vector<16x16xf32>
    %cst_134 = arith.constant 0.000000e+00 : f32
    %235 = vector.broadcast %cst_134 : f32 to vector<16x16xf32>
    %236 = arith.maximumf %234, %235 : vector<16x16xf32>
    %237 = arith.mulf %236, %236 : vector<16x16xf32>
    %238 = arith.mulf %237, %46 : vector<16x16xf32>
    %cst_135 = arith.constant dense<0.000000e+00> : vector<16xf32>
    %239 = vector.multi_reduction <add>, %238, %cst_135 [1] : vector<16x16xf32> to vector<16xf32>
    %240 = vector.shape_cast %239 : vector<16xf32> to vector<16x1xf32>
    %cst_136 = arith.constant dense<0.000000e+00> : vector<1xf32>
    %241 = vector.multi_reduction <add>, %240, %cst_136 [0] : vector<16x1xf32> to vector<1xf32>
    %242 = vector.shape_cast %241 : vector<1xf32> to vector<1x1xf32>
    %c0_137 = arith.constant 0 : index
    %c0_138 = arith.constant 0 : index
    %c0_139 = arith.constant 0 : index
    %c0_140 = arith.constant 0 : index
    %243 = vector.load %arg8[%c0_137, %c0_138, %c0_139, %c0_140] : memref<1x1x1x1xf32, #tpu.memory_space<vmem>>, vector<1x1x1x1xf32>
    %244 = vector.shape_cast %243 : vector<1x1x1x1xf32> to vector<1x1xf32>
    %245 = vector.shape_cast %242 : vector<1x1xf32> to vector<1x1x1x1xf32>
    tpu.vector_store %arg8[%c0_137, %c0_138, %c0_139, %c0_140], %245 {strides = array<i32>} : memref<1x1x1x1xf32, #tpu.memory_space<vmem>>, vector<1x1x1x1xf32>,
    return
  }
  func.func @transform_0(%arg0: i32, %arg1: i32) -> (i32, i32, i32) {
    %c0_i32 = arith.constant 0 : i32
    %c0_i32_0 = arith.constant 0 : i32
    %c0_i32_1 = arith.constant 0 : i32
    return %arg0, %c0_i32, %c0_i32_0 : i32, i32, i32
  }
  func.func @transform_1(%arg0: i32, %arg1: i32) -> (i32, i32, i32) {
    %c0_i32 = arith.constant 0 : i32
    %c0_i32_0 = arith.constant 0 : i32
    return %arg0, %arg1, %c0_i32 : i32, i32, i32
  }
  func.func @transform_2(%arg0: i32, %arg1: i32) -> (i32, i32) {
    %c0_i32 = arith.constant 0 : i32
    %c0_i32_0 = arith.constant 0 : i32
    return %arg1, %c0_i32 : i32, i32
  }
  func.func @transform_3(%arg0: i32, %arg1: i32) -> (i32, i32) {
    %c0_i32 = arith.constant 0 : i32
    %c0_i32_0 = arith.constant 0 : i32
    %c0_i32_1 = arith.constant 0 : i32
    return %c0_i32, %c0_i32_0 : i32, i32
  }
  func.func @transform_4(%arg0: i32, %arg1: i32) -> (i32, i32, i32) {
    %c0_i32 = arith.constant 0 : i32
    %c0_i32_0 = arith.constant 0 : i32
    %c0_i32_1 = arith.constant 0 : i32
    return %arg0, %c0_i32, %c0_i32_0 : i32, i32, i32
  }
  func.func @transform_5(%arg0: i32, %arg1: i32) -> (i32, i32, i32) {
    %c0_i32 = arith.constant 0 : i32
    %c0_i32_0 = arith.constant 0 : i32
    %c0_i32_1 = arith.constant 0 : i32
    return %arg0, %c0_i32, %c0_i32_0 : i32, i32, i32
  }
  func.func @transform_6(%arg0: i32, %arg1: i32) -> (i32, i32, i32, i32) {
    %c0_i32 = arith.constant 0 : i32
    %c0_i32_0 = arith.constant 0 : i32
    %c0_i32_1 = arith.constant 0 : i32
    return %arg0, %arg1, %c0_i32, %c0_i32_0 : i32, i32, i32, i32
  }
}

</mosaic_0001>

<bundles_post_ra>
// kernel: criterion_forward.4
= control target key start
LH: loop header
LB: loop body
LE: loop exit
PB: predicated region body
PF: predicated region fallthrough
CT: control target
= control target key end

     0   :  { %s1397_s15 = smov 0   ;;  %s1399_s16 = smov 0   ;;  %s1750_s0 = inlined_call_operand.vmem [shape: f32[2,32,8], index: 0, kind: input, shape index: {}]   ;;  %s1751_s1 = inlined_call_operand.vmem [shape: s32[2,16,16], index: 1, kind: input, shape index: {}]   ;;  %s1752_s2 = inlined_call_operand.vmem [shape: f32[16,8], index: 2, kind: input, shape index: {}]   ;;  %s1753_s3 = inlined_call_operand.vmem [shape: f32[8,16], index: 3, kind: input, shape index: {}]   ;;  %s1754_s4 = inlined_call_operand.vmem [shape: f32[2,1,5,4], index: 4, kind: output, shape index: {}]  }
   0x1   :  { %s1401_s17 = smov 0  }
   0x2 LB: > { %s26_s18 = sadd.s32 1, %s1365_s16  ;;  %p1235_p0 = scmp.ge.s32.totalorder %s1369_s17, 1  ;;  %s1369_s17 = sphi %s1401_s17, %s14_s17   ;;  %s1365_s16 = sphi %s1399_s16, %s1756_s16   ;;  %s1361_s15 = sphi %s1397_s15, %s1755_s15  }
   0x3   : > { %p28_p1 = scmp.ge.s32.totalorder %s26_s18, 2  ;;  %p204_p2 = scmp.lt.s32.totalorder %s1369_s17, 3 }
   0x5   : > { %s1758_s18 = smov (%p28_p1, %s26_s18), 0  ;;  %p205_p3 = pnand %p1235_p0, %p204_p2 }
   0x6   : > { %v282_v0 = vld [vmem:[%s1753_s3] sm:$0xff] (!%p205_p3)  ;;  %p246_p4 = scmp.lt.s32.totalorder (!%p205_p3), %s1361_s15, 1  ;;  %vm283_vm0 = vcmask (!%p205_p3), 64512   ;;  %vm381_vm1 = vcmask (!%p205_p3), 130048   ;;  %v1371_v8 = vmov (!%p205_p3), 0.0   ;;  %v387_v22 = vld [vmem:[%s1752_s2 + $0x8] sm:$0xff] (!%p205_p3) }
   0x7   : > { %208 = sbr.rel (%p205_p3) target bundleno = 685 (0x2ad), region = 36  ;;  %1294 = vmatprep.subr.mxu0 (!%p205_p3), %v282_v0  ;;  %v386_v5 = vld [vmem:[%s1752_s2] sm:$0xff] (!%p205_p3) }
   0x8   : > { %1295 = vmatpush3.msra.mxu0 (!%p205_p3), %v282_v0  ;;  %1304 = vmatprep.mubr.msk.f32.mxu1 (!%p205_p3), %vm283_vm0, %v386_v5 }
   0xe   : > { %s1760_s15 = smov (!%p246_p4, %s1361_s15), 1 }
   0xf   : > { %s1275_s21 = sshll.u32 %s1760_s15, 5  ;;  %s1276_s27 = sshll.u32 %s1760_s15, 4 }
  0x10   : > { %s250_s24 = scalar_lea.vmem %s1750_s0, %s1275_s21  ;;  %s259_s30 = scalar_lea.vmem %s1751_s1, %s1276_s27 }
  0x11   : > { %v278_v1 = vld [vmem:[%s250_s24] sm:$0xff]  ;;  %v279_v2 = vld [vmem:[%s250_s24 + $0x8] sm:$0xff]  ;;  %v280_v3 = vld [vmem:[%s250_s24 + $0x10] sm:$0xff]  ;;  %s1240_s7 = sshll.u32 %s1760_s15, 3 }
  0x12   : > { %1296 = vmatprep.mubr.msk.f32.mxu0 %vm283_vm0, %v278_v1  ;;  %v281_v4 = vld [vmem:[%s250_s24 + $0x18] sm:$0xff]  ;;  %v1437_v6 = vld [vmem:[%s259_s30 + $0x8] sm:$0xff]  ;;  %v1439_v7 = vld [vmem:[%s259_s30] sm:$0xff]  ;;  %s273_s10 = scalar_lea.vmem %s1754_s4, %s1240_s7 }
  0x13   : > { %1297 = vmatmul.mubr.msk.f32.vlgmr.msra.gmra.mrb[0].mxu0 %vm283_vm0, %v279_v2  ;;  %vm478_vm2 = vcmp.eq.s32.totalorder %v1437_v6, 0  ;;  %vm477_vm3 = vcmp.eq.s32.totalorder %v1439_v7, 0  ;;  %vm503_vm4 = vcmp.eq.s32.totalorder %v1437_v6, 1  ;;  %vm502_vm5 = vcmp.eq.s32.totalorder %v1439_v7, 1 }
  0x14   : > { %1299 = vmatprep.mubr.msk.f32.mxu0 %vm283_vm0, %v280_v3  ;;  %v1043_v9 = vsel %vm478_vm2, 1.0, %v1371_v8  ;;  %v1042_v10 = vsel %vm477_vm3, 1.0, %v1371_v8  ;;  %v1064_v11 = vsel %vm503_vm4, 1.0, %v1371_v8  ;;  %v1063_v12 = vsel %vm502_vm5, 1.0, %v1371_v8 }
  0x15   : > { %v1047_v13 = vsel %vm381_vm1, %v1043_v9, 0.0  ;;  %v1044_v14 = vsel %vm381_vm1, %v1042_v10, 0.0  ;;  %v1068_v15 = vsel %vm381_vm1, %v1064_v11, 0.0  ;;  %v1065_v16 = vsel %vm381_vm1, %v1063_v12, 0.0 }
  0x16   : > { %1048 = vadd.xlane.f32.xlu1 %v1047_v13  ;;  %1045 = vadd.xlane.f32.xlu0 %v1044_v14  ;;  %vm526_vm6 = vcmp.eq.s32.totalorder %v1437_v6, 2  ;;  %vm549_vm7 = vcmp.eq.s32.totalorder %v1437_v6, 3  ;;  %vm525_vm8 = vcmp.eq.s32.totalorder %v1439_v7, 2  ;;  %vm548_vm9 = vcmp.eq.s32.totalorder %v1439_v7, 3 }
  0x17   : > { %1300 = vmatmul.mubr.msk.f32.gmra.mrb[2].mxu0 %vm283_vm0, %v281_v4 }
  0x18   : > { %1314 = vmatprep.mubr.msk.f32.mxu0 %vm283_vm0, %v386_v5 }
  0x1a   : > { %1069 = vadd.xlane.f32.xlu1 %v1068_v15  ;;  %1066 = vadd.xlane.f32.xlu0 %v1065_v16 }
  0xa3   : > { %v1049_v26 = vpop.xlane.xlu1 %1048  ;;  %v1046_v27 = vpop.xlane.xlu0 %1045 }
  0xa4   : > { %v1474_v28 = vadd.f32 %v1049_v26, %v1046_v27 }
  0xe6   : > { %v1298_v17 = vpop.f32.mrb[0].mxu0 }
  0xe7   : > { %383 = vst.msk [vmem:[#allocation2 + $0x8] sm:$0xff] %vm381_vm1, %v1298_v17  ;;  %v362_v18 = vpop.f32.mrb[1].mxu0 }
  0xe8   : > { %382 = vst.msk [vmem:[#allocation2] sm:$0xff] %vm381_vm1, %v362_v18 }
  0xea   : > { %v1301_v19 = vpop.f32.mrb[2].mxu0 }
  0xeb   : > { %385 = vst.msk [vmem:[#allocation2 + $0x18] sm:$0xff] %vm381_vm1, %v1301_v19  ;;  %v372_v20 = vpop.f32.mrb[3].mxu0 }
  0xec   : > { %384 = vst.msk [vmem:[#allocation2 + $0x10] sm:$0xff] %vm381_vm1, %v372_v20 }
  0xee   : > { %v571_v23 = vld [vmem:[#allocation2 + $0x8] sm:$0xff] }
  0xef   : > { %v394_v21 = vld [vmem:[#allocation2] sm:$0xff] }
  0xf0   : > { %1302 = vmatprep.subr.mxu1 %v394_v21 }
  0xf1   : > { %1303 = vmatpush3.msra.mxu1 %v394_v21 }
  0xf2   : > { %1305 = vmatmul.mubr.msk.f32.vlgmr.msra.gmra.mrb[0].mxu1 %vm283_vm0, %v387_v22  ;;  %1307 = vmatprep.subr.mxu1 %v571_v23  ;;  %v885_v24 = vld [vmem:[#allocation2 + $0x18] sm:$0xff] }
  0xf3   : > { %1308 = vmatpush3.msra.mxu1 %v571_v23  ;;  %1309 = vmatprep.mubr.msk.f32.mxu1 %vm283_vm0, %v386_v5  ;;  %v728_v25 = vld [vmem:[#allocation2 + $0x10] sm:$0xff] }
  0xf4   : > { %1312 = vmatprep.subr.mxu0 %v728_v25  ;;  %1317 = vmatprep.subr.mxu1 %v885_v24 }
  0xf5   : > { %1313 = vmatpush3.msra.mxu0 %v728_v25 }
  0xf6   : > { %1310 = vmatmul.mubr.msk.f32.vlgmr.msra.gmra.mrb[2].mxu1 %vm283_vm0, %v387_v22  ;;  %1315 = vmatmul.mubr.msk.f32.vlgmr.msra.gmra.mrb[4].mxu0 %vm283_vm0, %v387_v22 }
  0xf7   : > { %1318 = vmatpush3.msra.mxu1 %v885_v24  ;;  %1319 = vmatprep.mubr.msk.f32.mxu1 %vm283_vm0, %v386_v5 }
  0xfa   : > { %1320 = vmatmul.mubr.msk.f32.vlgmr.msra.gmra.mrb[4].mxu1 %vm283_vm0, %v387_v22 }
 0x1c5   : > { %v1306_v29 = vpop.f32.mrb[0].mxu1 }
 0x1c6   : > { %v468_v30 = vpop.f32.mrb[1].mxu1  ;;  %v505_v31 = vsel %vm503_vm4, %v1306_v29, 0.0  ;;  %v480_v32 = vsel %vm478_vm2, %v1306_v29, 0.0  ;;  %v528_v35 = vsel %vm526_vm6, %v1306_v29, 0.0  ;;  %v551_v43 = vsel %vm549_vm7, %v1306_v29, 0.0 }
 0x1c7   : > { %v509_v33 = vsel %vm381_vm1, %v505_v31, 0.0  ;;  %v485_v34 = vsel %vm381_vm1, %v480_v32, 0.0  ;;  %v479_v36 = vsel %vm477_vm3, %v468_v30, 0.0  ;;  %v532_v41 = vsel %vm381_vm1, %v528_v35, 0.0 }
 0x1c8   : > { %510 = vadd.xlane.f32.xlu1 %v509_v33  ;;  %486 = vadd.xlane.f32.xlu0 %v485_v34  ;;  %v482_v42 = vsel %vm381_vm1, %v479_v36, 0.0  ;;  %v527_v44 = vsel %vm525_vm8, %v468_v30, 0.0  ;;  %v555_v47 = vsel %vm381_vm1, %v551_v43, 0.0  ;;  %v504_v49 = vsel %vm502_vm5, %v468_v30, 0.0 }
 0x1c9   : > { %v1311_v37 = vpop.f32.mrb[2].mxu1  ;;  %v1489_v38 = vpop.f32.mrb[4].mxu0  ;;  %v529_v48 = vsel %vm381_vm1, %v527_v44, 0.0  ;;  %v550_v50 = vsel %vm548_vm9, %v468_v30, 0.0  ;;  %v506_v53 = vsel %vm381_vm1, %v504_v49, 0.0 }
 0x1ca   : > { %v638_v39 = vpop.f32.mrb[3].mxu1  ;;  %v1491_v40 = vpop.f32.mrb[5].mxu0  ;;  %v648_v51 = vsel %vm478_vm2, %v1311_v37, 0.0  ;;  %v552_v54 = vsel %vm381_vm1, %v550_v50, 0.0  ;;  %v669_v57 = vsel %vm503_vm4, %v1311_v37, 0.0  ;;  %v689_v61 = vsel %vm526_vm6, %v1311_v37, 0.0 }
 0x1cb   : > { %v647_v52 = vsel %vm477_vm3, %v638_v39, 0.0  ;;  %v652_v55 = vsel %vm381_vm1, %v648_v51, 0.0  ;;  %v668_v58 = vsel %vm502_vm5, %v638_v39, 0.0  ;;  %v673_v59 = vsel %vm381_vm1, %v669_v57, 0.0  ;;  %v1616_v49 = vpop.xlane.xlu1 %1069  ;;  %v1618_v50 = vpop.xlane.xlu0 %1066 }
 0x1cc   : > { %533 = vadd.xlane.f32.xlu1 %v532_v41  ;;  %483 = vadd.xlane.f32.xlu0 %v482_v42  ;;  %v649_v56 = vsel %vm381_vm1, %v647_v52, 0.0  ;;  %v670_v60 = vsel %vm381_vm1, %v668_v58, 0.0  ;;  %v688_v62 = vsel %vm525_vm8, %v638_v39, 0.0  ;;  %v693_v63 = vsel %vm381_vm1, %v689_v61, 0.0 }
 0x1cd   : > { %v1500_v45 = vpop.f32.mrb[4].mxu1  ;;  %v690_v0 = vsel %vm381_vm1, %v688_v62, 0.0  ;;  %v709_v1 = vsel %vm549_vm7, %v1311_v37, 0.0  ;;  %v708_v2 = vsel %vm548_vm9, %v638_v39, 0.0  ;;  %v805_v3 = vsel %vm478_vm2, %v1489_v38, 0.0 }
 0x1ce   : > { %v1502_v46 = vpop.f32.mrb[5].mxu1  ;;  %v804_v4 = vsel %vm477_vm3, %v1491_v40, 0.0  ;;  %v713_v5 = vsel %vm381_vm1, %v709_v1, 0.0  ;;  %v710_v9 = vsel %vm381_vm1, %v708_v2, 0.0  ;;  %v809_v10 = vsel %vm381_vm1, %v805_v3, 0.0 }
 0x1cf   : > { %v806_v11 = vsel %vm381_vm1, %v804_v4, 0.0  ;;  %v826_v12 = vsel %vm503_vm4, %v1489_v38, 0.0  ;;  %v825_v13 = vsel %vm502_vm5, %v1491_v40, 0.0  ;;  %v846_v16 = vsel %vm526_vm6, %v1489_v38, 0.0 }
 0x1d0   : > { %556 = vadd.xlane.f32.xlu1 %v555_v47  ;;  %530 = vadd.xlane.f32.xlu0 %v529_v48  ;;  %v830_v14 = vsel %vm381_vm1, %v826_v12, 0.0  ;;  %v827_v15 = vsel %vm381_vm1, %v825_v13, 0.0  ;;  %v845_v17 = vsel %vm525_vm8, %v1491_v40, 0.0  ;;  %v850_v18 = vsel %vm381_vm1, %v846_v16, 0.0 }
 0x1d1   : > { %v847_v19 = vsel %vm381_vm1, %v845_v17, 0.0  ;;  %v866_v20 = vsel %vm549_vm7, %v1489_v38, 0.0  ;;  %v865_v21 = vsel %vm548_vm9, %v1491_v40, 0.0  ;;  %v962_v22 = vsel %vm478_vm2, %v1500_v45, 0.0 }
 0x1d2   : > { %v961_v23 = vsel %vm477_vm3, %v1502_v46, 0.0  ;;  %v870_v24 = vsel %vm381_vm1, %v866_v20, 0.0  ;;  %v867_v25 = vsel %vm381_vm1, %v865_v21, 0.0  ;;  %v966_v26 = vsel %vm381_vm1, %v962_v22, 0.0 }
 0x1d3   : > { %v963_v27 = vsel %vm381_vm1, %v961_v23, 0.0  ;;  %v983_v29 = vsel %vm503_vm4, %v1500_v45, 0.0  ;;  %v982_v30 = vsel %vm502_vm5, %v1502_v46, 0.0  ;;  %v1003_v33 = vsel %vm526_vm6, %v1500_v45, 0.0 }
 0x1d4   : > { %507 = vadd.xlane.f32.xlu1 %v506_v53  ;;  %553 = vadd.xlane.f32.xlu0 %v552_v54  ;;  %v987_v31 = vsel %vm381_vm1, %v983_v29, 0.0  ;;  %v984_v32 = vsel %vm381_vm1, %v982_v30, 0.0  ;;  %v1002_v34 = vsel %vm525_vm8, %v1502_v46, 0.0  ;;  %v1007_v35 = vsel %vm381_vm1, %v1003_v33, 0.0 }
 0x1d5   : > { %v1004_v36 = vsel %vm381_vm1, %v1002_v34, 0.0  ;;  %v1023_v37 = vsel %vm549_vm7, %v1500_v45, 0.0  ;;  %v1022_v38 = vsel %vm548_vm9, %v1502_v46, 0.0  ;;  %v1084_v39 = vsel %vm526_vm6, 1.0, %v1371_v8 }
 0x1d6   : > { %v1083_v40 = vsel %vm525_vm8, 1.0, %v1371_v8  ;;  %v1027_v41 = vsel %vm381_vm1, %v1023_v37, 0.0  ;;  %v1024_v42 = vsel %vm381_vm1, %v1022_v38, 0.0  ;;  %v1088_v43 = vsel %vm381_vm1, %v1084_v39, 0.0 }
 0x1d7   : > { %v1085_v44 = vsel %vm381_vm1, %v1083_v40, 0.0  ;;  %v1104_v45 = vsel %vm549_vm7, 1.0, %v1371_v8  ;;  %v1103_v46 = vsel %vm548_vm9, 1.0, %v1371_v8 }
 0x1d8   : > { %653 = vadd.xlane.f32.xlu1 %v652_v55  ;;  %650 = vadd.xlane.f32.xlu0 %v649_v56  ;;  %v1108_v47 = vsel %vm381_vm1, %v1104_v45, 0.0  ;;  %v1105_v48 = vsel %vm381_vm1, %v1103_v46, 0.0 }
 0x1dc   : > { %674 = vadd.xlane.f32.xlu1 %v673_v59  ;;  %671 = vadd.xlane.f32.xlu0 %v670_v60 }
 0x1e0   : > { %694 = vadd.xlane.f32.xlu1 %v693_v63  ;;  %691 = vadd.xlane.f32.xlu0 %v690_v0 }
 0x1e4   : > { %714 = vadd.xlane.f32.xlu1 %v713_v5  ;;  %711 = vadd.xlane.f32.xlu0 %v710_v9 }
 0x1e8   : > { %810 = vadd.xlane.f32.xlu1 %v809_v10  ;;  %807 = vadd.xlane.f32.xlu0 %v806_v11 }
 0x1ec   : > { %831 = vadd.xlane.f32.xlu1 %v830_v14  ;;  %828 = vadd.xlane.f32.xlu0 %v827_v15  ;;  %v390_v14 = vlaneseq }
 0x1ee   : > { %v1620_v23 = vshrl.u32 %v390_v14, 7 }
 0x1f0   : > { %851 = vadd.xlane.f32.xlu1 %v850_v18  ;;  %848 = vadd.xlane.f32.xlu0 %v847_v19  ;;  %vm495_vm11 = vcmp.eq.s32.totalorder %v1620_v23, 0  ;;  %vm662_vm3 = vcmp.eq.s32.totalorder %v1620_v23, 1  ;;  %vm819_vm7 = vcmp.eq.s32.totalorder %v1620_v23, 2 }
 0x1f4   : > { %871 = vadd.xlane.f32.xlu1 %v870_v24  ;;  %868 = vadd.xlane.f32.xlu0 %v867_v25  ;;  %v1622_v24 = vand.u32 127, %v390_v14 }
 0x1f6   : > { %vm519_vm10 = vcmp.eq.s32.totalorder %v1622_v24, 1  ;;  %vm542_vm12 = vcmp.eq.s32.totalorder %v1622_v24, 2  ;;  %vm496_vm14 = vcmp.eq.s32.totalorder %v1622_v24, 0  ;;  %vm565_vm1 = vcmp.eq.s32.totalorder %v1622_v24, 3 }
 0x1f7   : > { %vm520_vm13 = vmand %vm495_vm11, %vm519_vm10 }
 0x1f8   : > { %967 = vadd.xlane.f32.xlu1 %v966_v26  ;;  %964 = vadd.xlane.f32.xlu0 %v963_v27  ;;  %vm497_vm15 = vmand %vm495_vm11, %vm496_vm14  ;;  %v1248_v40 = vsel %vm520_vm13, 1.0, %v1371_v8 }
 0x1f9   : > { %vm543_vm0 = vmand %vm495_vm11, %vm542_vm12 }
 0x1fa   : > { %vm566_vm2 = vmand %vm495_vm11, %vm565_vm1 }
 0x1fb   : > { %v1250_v14 = vsel %vm566_vm2, 1.0, %v1371_v8  ;;  %vm663_vm4 = vmand %vm662_vm3, %vm496_vm14 }
 0x1fc   : > { %988 = vadd.xlane.f32.xlu1 %v987_v31  ;;  %985 = vadd.xlane.f32.xlu0 %v984_v32  ;;  %vm683_vm5 = vmand %vm662_vm3, %vm519_vm10 }
 0x1fd   : > { %vm703_vm6 = vmand %vm662_vm3, %vm542_vm12 }
 0x1fe   : > { %vm723_vm8 = vmand %vm662_vm3, %vm565_vm1 }
 0x1ff   : > { %vm820_vm9 = vmand %vm819_vm7, %vm496_vm14 }
 0x200   : > { %1008 = vadd.xlane.f32.xlu1 %v1007_v35  ;;  %1005 = vadd.xlane.f32.xlu0 %v1004_v36  ;;  %vm840_vm11 = vmand %vm819_vm7, %vm519_vm10 }
 0x201   : > { %vm860_vm13 = vmand %vm819_vm7, %vm542_vm12 }
 0x204   : > { %1028 = vadd.xlane.f32.xlu1 %v1027_v41  ;;  %1025 = vadd.xlane.f32.xlu0 %v1024_v42 }
 0x208   : > { %1089 = vadd.xlane.f32.xlu1 %v1088_v43  ;;  %1086 = vadd.xlane.f32.xlu0 %v1085_v44 }
 0x20c   : > { %1109 = vadd.xlane.f32.xlu1 %v1108_v47  ;;  %1106 = vadd.xlane.f32.xlu0 %v1105_v48  ;;  %v1247_v47 = vsel %vm497_vm15, 1.0, %v1371_v8  ;;  %vm976_vm15 = vcmp.eq.s32.totalorder %v1620_v23, 3 }
 0x20d   : > { %vm977_vm2 = vmand %vm976_vm15, %vm496_vm14 }
 0x20e   : > { %vm997_vm3 = vmand %vm976_vm15, %vm519_vm10 }
 0x255   : > { %v511_v51 = vpop.xlane.xlu1 %510  ;;  %v487_v52 = vpop.xlane.xlu0 %486 }
 0x259   : > { %v534_v6 = vpop.xlane.xlu1 %533  ;;  %v484_v53 = vpop.xlane.xlu0 %483 }
 0x25a   : > { %v488_v7 = vadd.f32 %v487_v52, %v484_v53  ;;  %v1249_v52 = vsel %vm543_vm0, 1.0, %v1371_v8  ;;  %vm880_vm0 = vmand %vm819_vm7, %vm565_vm1 }
 0x25c   : > { %v489_v59 = vrot.slane %v488_v7, 4 }
 0x25d   : > { %v557_v54 = vpop.xlane.xlu1 %556  ;;  %v531_v55 = vpop.xlane.xlu0 %530 }
 0x25e   : > { %v535_v56 = vadd.f32 %v534_v6, %v531_v55  ;;  %v490_v1 = vadd.f32 %v489_v59, %v488_v7 }
 0x260   : > { %v536_v62 = vrot.slane %v535_v56, 4  ;;  %v491_v11 = vrot.slane %v490_v1, 2 }
 0x261   : > { %v508_v57 = vpop.xlane.xlu1 %507  ;;  %v554_v58 = vpop.xlane.xlu0 %553 }
 0x262   : > { %v512_v60 = vadd.f32 %v511_v51, %v508_v57  ;;  %v558_v3 = vadd.f32 %v557_v54, %v554_v58  ;;  %v537_v5 = vadd.f32 %v536_v62, %v535_v56  ;;  %v492_v20 = vadd.f32 %v491_v11, %v490_v1 }
 0x264   : > { %v513_v61 = vrot.slane %v512_v60, 4  ;;  %v559_v12 = vrot.slane %v558_v3, 4  ;;  %v538_v17 = vrot.slane %v537_v5, 2  ;;  %v493_v32 = vrot.slane %v492_v20, 1 }
 0x265   : > { %v654_v63 = vpop.xlane.xlu1 %653  ;;  %v651_v0 = vpop.xlane.xlu0 %650 }
 0x266   : > { %v514_v2 = vadd.f32 %v513_v61, %v512_v60  ;;  %v655_v13 = vadd.f32 %v654_v63, %v651_v0  ;;  %v560_v21 = vadd.f32 %v559_v12, %v558_v3  ;;  %v539_v29 = vadd.f32 %v538_v17, %v537_v5 }
 0x267   : > { %v494_v44 = vadd.f32 %v493_v32, %v492_v20  ;;  %v1071_v20 = vadd.f32 %v1616_v49, %v1618_v50  ;;  %v1051_v32 = vrot.slane %v1474_v28, 4 }
 0x268   : > { %v515_v4 = vrot.slane %v514_v2, 2  ;;  %v656_v22 = vrot.slane %v655_v13, 4  ;;  %v561_v33 = vrot.slane %v560_v21, 2  ;;  %v540_v39 = vrot.slane %v539_v29, 1 }
 0x269   : > { %v675_v9 = vpop.xlane.xlu1 %674  ;;  %v672_v10 = vpop.xlane.xlu0 %671  ;;  %v500_v58 = vmul.f32 %v1247_v47, %v494_v44  ;;  %v1255_v47 = vsel %vm703_vm6, 1.0, %v1371_v8  ;;  %vm1037_vm6 = vmand %vm976_vm15, %vm565_vm1 }
 0x26a   : > { %v516_v15 = vadd.f32 %v515_v4, %v514_v2  ;;  %v676_v16 = vadd.f32 %v675_v9, %v672_v10  ;;  %v657_v34 = vadd.f32 %v656_v22, %v655_v13  ;;  %v562_v45 = vadd.f32 %v561_v33, %v560_v21 }
 0x26b   : > { %v541_v54 = vadd.f32 %v540_v39, %v539_v29  ;;  %v1253_v33 = vsel %vm663_vm4, 1.0, %v1371_v8  ;;  %v1254_v39 = vsel %vm683_vm5, 1.0, %v1371_v8  ;;  %vm1017_vm4 = vmand %vm976_vm15, %vm542_vm12  ;;  %vm1057_vm5 = vcmp.eq.s32.totalorder %v1620_v23, 4 }
 0x26c   : > { %v517_v26 = vrot.slane %v516_v15, 1  ;;  %v677_v27 = vrot.slane %v676_v16, 4  ;;  %v658_v46 = vrot.slane %v657_v34, 2  ;;  %v563_v59 = vrot.slane %v562_v45, 1  ;;  %vm1058_vm7 = vmand %vm1057_vm5, %vm496_vm14 }
 0x26d   : > { %v695_v18 = vpop.xlane.xlu1 %694  ;;  %v692_v19 = vpop.xlane.xlu0 %691  ;;  %v546_v3 = vmul.f32 %v1249_v52, %v541_v54  ;;  %vm1098_vm14 = vmand %vm1057_vm5, %vm542_vm12  ;;  %vm1123_vm12 = vcmask 28672  }
 0x26e   : > { %v696_v25 = vadd.f32 %v695_v18, %v692_v19  ;;  %v518_v37 = vadd.f32 %v517_v26, %v516_v15  ;;  %v678_v38 = vadd.f32 %v677_v27, %v676_v16  ;;  %v659_v60 = vadd.f32 %v658_v46, %v657_v34 }
 0x26f   : > { %v564_v10 = vadd.f32 %v563_v59, %v562_v45  ;;  %v1052_v59 = vadd.f32 %v1051_v32, %v1474_v28 }
 0x270   : > { %v697_v36 = vrot.slane %v696_v25, 4  ;;  %v523_v6 = vmul.f32 %v1248_v40, %v518_v37  ;;  %v679_v53 = vrot.slane %v678_v38, 2  ;;  %v660_v11 = vrot.slane %v659_v60, 1 }
 0x271   : > { %v715_v30 = vpop.xlane.xlu1 %714  ;;  %v712_v31 = vpop.xlane.xlu0 %711  ;;  %v569_v27 = vmul.f32 %v1250_v14, %v564_v10 }
 0x272   : > { %v716_v35 = vadd.f32 %v715_v30, %v712_v31  ;;  %v698_v48 = vadd.f32 %v697_v36, %v696_v25  ;;  %v524_v0 = vadd.f32 %v523_v6, %v500_v58  ;;  %v680_v1 = vadd.f32 %v679_v53, %v678_v38 }
 0x273   : > { %v661_v29 = vadd.f32 %v660_v11, %v659_v60  ;;  %v1072_v38 = vrot.slane %v1071_v20, 4  ;;  %v1256_v60 = vsel %vm723_vm8, 1.0, %v1371_v8  ;;  %vm1078_vm8 = vmand %vm1057_vm5, %vm519_vm10 }
 0x274   : > { %v717_v41 = vrot.slane %v716_v35, 4  ;;  %v699_v62 = vrot.slane %v698_v48, 2  ;;  %v547_v17 = vadd.f32 %v546_v3, %v524_v0  ;;  %v681_v18 = vrot.slane %v680_v1, 1  ;;  %vm1118_vm10 = vmand %vm1057_vm5, %vm565_vm1 }
 0x275   : > { %v811_v42 = vpop.xlane.xlu1 %810  ;;  %v808_v43 = vpop.xlane.xlu0 %807  ;;  %v666_v44 = vmul.f32 %v1253_v33, %v661_v29  ;;  %v1073_v3 = vadd.f32 %v1072_v38, %v1071_v20 }
 0x276   : > { %v812_v51 = vadd.f32 %v811_v42, %v808_v43  ;;  %v718_v55 = vadd.f32 %v717_v41, %v716_v35  ;;  %v700_v15 = vadd.f32 %v699_v62, %v698_v48  ;;  %v570_v49 = vadd.f32 %v569_v27, %v547_v17 }
 0x277   : > { %v682_v50 = vadd.f32 %v681_v18, %v680_v1 }
 0x278   : > { %v813_v7 = vrot.slane %v812_v51, 4  ;;  %v719_v4 = vrot.slane %v718_v55, 2  ;;  %v701_v34 = vrot.slane %v700_v15, 1  ;;  %v667_v6 = vadd.f32 %v666_v44, %v570_v49 }
 0x279   : > { %v832_v56 = vpop.xlane.xlu1 %831  ;;  %v829_v57 = vpop.xlane.xlu0 %828  ;;  %v686_v53 = vmul.f32 %v1254_v39, %v682_v50  ;;  %v1262_v49 = vsel %vm880_vm0, 1.0, %v1371_v8 }
 0x27a   : > { %v833_v61 = vadd.f32 %v832_v56, %v829_v57  ;;  %v814_v63 = vadd.f32 %v813_v7, %v812_v51  ;;  %v720_v21 = vadd.f32 %v719_v4, %v718_v55  ;;  %v702_v48 = vadd.f32 %v701_v34, %v700_v15 }
 0x27b   : > { %v687_v4 = vadd.f32 %v686_v53, %v667_v6  ;;  %v1260_v15 = vsel %vm840_vm11, 1.0, %v1371_v8 }
 0x27c   : > { %v834_v2 = vrot.slane %v833_v61, 4  ;;  %v815_v16 = vrot.slane %v814_v63, 2  ;;  %v721_v40 = vrot.slane %v720_v21, 1 }
 0x27d   : > { %v852_v5 = vpop.xlane.xlu1 %851  ;;  %v849_v9 = vpop.xlane.xlu0 %848 }
 0x27e   : > { %v835_v12 = vadd.f32 %v834_v2, %v833_v61  ;;  %v853_v13 = vadd.f32 %v852_v5, %v849_v9  ;;  %v816_v35 = vadd.f32 %v815_v16, %v814_v63  ;;  %v722_v7 = vadd.f32 %v721_v40, %v720_v21 }
 0x27f   : > { %v706_v63 = vmul.f32 %v1255_v47, %v702_v48  ;;  %v1259_v5 = vsel %vm820_vm9, 1.0, %v1371_v8 }
 0x280   : > { %v854_v19 = vrot.slane %v853_v13, 4  ;;  %v836_v22 = vrot.slane %v835_v12, 2  ;;  %v817_v51 = vrot.slane %v816_v35, 1  ;;  %v726_v10 = vmul.f32 %v1256_v60, %v722_v7 }
 0x281   : > { %v872_v25 = vpop.xlane.xlu1 %871  ;;  %v869_v26 = vpop.xlane.xlu0 %868  ;;  %v707_v18 = vadd.f32 %v706_v63, %v687_v4 }
 0x282   : > { %v855_v30 = vadd.f32 %v854_v19, %v853_v13  ;;  %v873_v31 = vadd.f32 %v872_v25, %v869_v26  ;;  %v837_v41 = vadd.f32 %v836_v22, %v835_v12  ;;  %v818_v0 = vadd.f32 %v817_v51, %v816_v35 }
 0x283   : > { %v1053_v22 = vrot.slane %v1052_v59, 2  ;;  %v1261_v25 = vsel %vm860_vm13, 1.0, %v1371_v8  ;;  %v727_v29 = vadd.f32 %v726_v10, %v707_v18  ;;  %v1074_v35 = vrot.slane %v1073_v3, 2 }
 0x284   : > { %v856_v36 = vrot.slane %v855_v30, 2  ;;  %v874_v37 = vrot.slane %v873_v31, 4  ;;  %v838_v56 = vrot.slane %v837_v41, 1  ;;  %v823_v19 = vmul.f32 %v1259_v5, %v818_v0 }
 0x285   : > { %v968_v42 = vpop.xlane.xlu1 %967  ;;  %v965_v43 = vpop.xlane.xlu0 %964  ;;  %v1054_v44 = vadd.f32 %v1053_v22, %v1052_v59  ;;  %v1267_v0 = vsel %vm1017_vm4, 1.0, %v1371_v8 }
 0x286   : > { %v875_v45 = vadd.f32 %v874_v37, %v873_v31  ;;  %v969_v46 = vadd.f32 %v968_v42, %v965_v43  ;;  %v857_v52 = vadd.f32 %v856_v36, %v855_v30  ;;  %v839_v28 = vadd.f32 %v838_v56, %v837_v41 }
 0x287   : > { %v824_v37 = vadd.f32 %v823_v19, %v727_v29  ;;  %v1265_v41 = vsel %vm977_vm2, 1.0, %v1371_v8 }
 0x288   : > { %v876_v54 = vrot.slane %v875_v45, 2  ;;  %v970_v55 = vrot.slane %v969_v46, 4  ;;  %v858_v1 = vrot.slane %v857_v52, 1  ;;  %v843_v30 = vmul.f32 %v1260_v15, %v839_v28 }
 0x289   : > { %v989_v57 = vpop.xlane.xlu1 %988  ;;  %v986_v58 = vpop.xlane.xlu0 %985 }
 0x28a   : > { %v877_v61 = vadd.f32 %v876_v54, %v875_v45  ;;  %v971_v62 = vadd.f32 %v970_v55, %v969_v46  ;;  %v990_v2 = vadd.f32 %v989_v57, %v986_v58  ;;  %v859_v20 = vadd.f32 %v858_v1, %v857_v52 }
 0x28b   : > { %v844_v45 = vadd.f32 %v843_v30, %v824_v37  ;;  %v1266_v52 = vsel %vm997_vm3, 1.0, %v1371_v8  ;;  %v1075_v55 = vadd.f32 %v1074_v35, %v1073_v3  ;;  %v1270_v30 = vsel %vm1078_vm8, 1.0, %v1371_v8 }
 0x28c   : > { %v972_v9 = vrot.slane %v971_v62, 2  ;;  %v878_v11 = vrot.slane %v877_v61, 1  ;;  %v991_v12 = vrot.slane %v990_v2, 4  ;;  %v863_v38 = vmul.f32 %v1261_v25, %v859_v20 }
 0x28d   : > { %v1009_v13 = vpop.xlane.xlu1 %1008  ;;  %v1006_v14 = vpop.xlane.xlu0 %1005  ;;  %v1076_v10 = vrot.slane %v1075_v55, 1  ;;  %v1271_v35 = vsel %vm1098_vm14, 1.0, %v1371_v8  ;;  %v1272_v37 = vsel %vm1118_vm10, 1.0, %v1371_v8 }
 0x28e   : > { %v973_v16 = vadd.f32 %v972_v9, %v971_v62  ;;  %v1010_v17 = vadd.f32 %v1009_v13, %v1006_v14  ;;  %v992_v21 = vadd.f32 %v991_v12, %v990_v2  ;;  %v879_v31 = vadd.f32 %v878_v11, %v877_v61 }
 0x28f   : > { %v864_v7 = vadd.f32 %v863_v38, %v844_v45  ;;  %v1055_v61 = vrot.slane %v1054_v44, 1  ;;  %v1077_v22 = vadd.f32 %v1076_v10, %v1075_v55 }
 0x290   : > { %v974_v26 = vrot.slane %v973_v16, 1  ;;  %v1011_v27 = vrot.slane %v1010_v17, 4  ;;  %v993_v32 = vrot.slane %v992_v21, 2  ;;  %v883_v46 = vmul.f32 %v1262_v49, %v879_v31 }
 0x291   : > { %v1029_v33 = vpop.xlane.xlu1 %1028  ;;  %v1026_v34 = vpop.xlane.xlu0 %1025  ;;  %v1056_v15 = vadd.f32 %v1055_v61, %v1054_v44  ;;  %v1081_v49 = vmul.f32 %v1270_v30, %v1077_v22 }
 0x292   : > { %v1012_v50 = vadd.f32 %v1011_v27, %v1010_v17  ;;  %v1030_v36 = vadd.f32 %v1029_v33, %v1026_v34  ;;  %v975_v39 = vadd.f32 %v974_v26, %v973_v16  ;;  %v994_v40 = vadd.f32 %v993_v32, %v992_v21 }
 0x293   : > { %v884_v62 = vadd.f32 %v883_v46, %v864_v7  ;;  %v1268_v16 = vsel %vm1037_vm6, 1.0, %v1371_v8  ;;  %v1269_v21 = vsel %vm1058_vm7, 1.0, %v1371_v8 }
 0x294   : > { %v1013_v42 = vrot.slane %v1012_v50, 2  ;;  %v1031_v43 = vrot.slane %v1030_v36, 4  ;;  %v995_v47 = vrot.slane %v994_v40, 1  ;;  %v980_v56 = vmul.f32 %v1265_v41, %v975_v39 }
 0x295   : > { %v1090_v48 = vpop.xlane.xlu1 %1089  ;;  %v1087_v51 = vpop.xlane.xlu0 %1086  ;;  %v1061_v31 = vmul.f32 %v1269_v21, %v1056_v15 }
 0x296   : > { %v1014_v6 = vadd.f32 %v1013_v42, %v1012_v50  ;;  %v1032_v53 = vadd.f32 %v1031_v43, %v1030_v36  ;;  %v1091_v54 = vadd.f32 %v1090_v48, %v1087_v51  ;;  %v996_v57 = vadd.f32 %v995_v47, %v994_v40 }
 0x297   : > { %v981_v28 = vadd.f32 %v980_v56, %v884_v62 }
 0x298   : > { %v1015_v58 = vrot.slane %v1014_v6, 1  ;;  %v1033_v59 = vrot.slane %v1032_v53, 2  ;;  %v1092_v60 = vrot.slane %v1091_v54, 4  ;;  %v1000_v63 = vmul.f32 %v1266_v52, %v996_v57 }
 0x299   : > { %v1110_v1 = vpop.xlane.xlu1 %1109  ;;  %v1107_v2 = vpop.xlane.xlu0 %1106 }
 0x29a   : > { %v1016_v4 = vadd.f32 %v1015_v58, %v1014_v6  ;;  %v1034_v3 = vadd.f32 %v1033_v59, %v1032_v53  ;;  %v1093_v5 = vadd.f32 %v1092_v60, %v1091_v54  ;;  %v1111_v9 = vadd.f32 %v1110_v1, %v1107_v2 }
 0x29b   : > { %v1001_v17 = vadd.f32 %v1000_v63, %v981_v28 }
 0x29c   : > { %v1020_v11 = vmul.f32 %v1267_v0, %v1016_v4  ;;  %v1035_v12 = vrot.slane %v1034_v3, 1  ;;  %v1094_v13 = vrot.slane %v1093_v5, 2  ;;  %v1112_v14 = vrot.slane %v1111_v9, 4 }
 0x29e   : > { %v1036_v18 = vadd.f32 %v1035_v12, %v1034_v3  ;;  %v1095_v19 = vadd.f32 %v1094_v13, %v1093_v5  ;;  %v1113_v20 = vadd.f32 %v1112_v14, %v1111_v9  ;;  %v1021_v25 = vadd.f32 %v1020_v11, %v1001_v17 }
 0x2a0   : > { %v1040_v26 = vmul.f32 %v1268_v16, %v1036_v18  ;;  %v1096_v27 = vrot.slane %v1095_v19, 1  ;;  %v1114_v29 = vrot.slane %v1113_v20, 2 }
 0x2a2   : > { %v1041_v32 = vadd.f32 %v1040_v26, %v1021_v25  ;;  %v1097_v33 = vadd.f32 %v1096_v27, %v1095_v19  ;;  %v1115_v34 = vadd.f32 %v1114_v29, %v1113_v20 }
 0x2a4   : > { %v1062_v50 = vadd.f32 %v1061_v31, %v1041_v32  ;;  %v1116_v36 = vrot.slane %v1115_v34, 1  ;;  %v1101_v39 = vmul.f32 %v1271_v35, %v1097_v33 }
 0x2a6   : > { %v1082_v38 = vadd.f32 %v1081_v49, %v1062_v50  ;;  %v1117_v40 = vadd.f32 %v1116_v36, %v1115_v34 }
 0x2a8   : > { %v1102_v41 = vadd.f32 %v1101_v39, %v1082_v38  ;;  %v1121_v42 = vmul.f32 %v1272_v37, %v1117_v40 }
 0x2aa   : > { %v1122_v23 = vadd.f32 %v1121_v42, %v1102_v41 }
 0x2ac   : > { %1124 = vst.msk [vmem:[%s273_s10] sm:$0x1f] %vm1123_vm12, %v1122_v23 }
 0x2ad PF: > { %s14_s17 = sadd.s32 1, %s1369_s17   ;;  %s1755_s15 = smov %s1365_s16 }
 0x2ae   : > { %p11_p5 = scmp.ge.s32.totalorder %s14_s17, 4   ;;  %s1756_s16 = smov %s1758_s18 }
 0x2b0   :  { %13 = sbr.rel (!%p11_p5) target bundleno = 2 (0x2), region = 76 }

// kernel: criterion_forward.3
= control target key start
LH: loop header
LB: loop body
LE: loop exit
PB: predicated region body
PF: predicated region fallthrough
CT: control target
= control target key end

     0   :  { %9 = vsyncpa [#allocation4], 0  ;;  %s1535_s0 = inlined_call_operand.hbm [shape: f32[2,32,8], index: 0, kind: input, shape index: {}]   ;;  %s1536_s1 = inlined_call_operand.hbm [shape: s32[2,16,16], index: 1, kind: input, shape index: {}]   ;;  %s1537_s2 = inlined_call_operand.vmem [shape: f32[16,8], index: 2, kind: input, shape index: {}]   ;;  %s1538_s3 = inlined_call_operand.vmem [shape: f32[8,16], index: 3, kind: input, shape index: {}]   ;;  %s1539_s4 = inlined_call_operand.vmem [shape: f32[2,1,1,2], index: 4, kind: output, shape index: {}]  }
   0x1   :  { %11 = vsyncpa [#allocation4 + $0x1], 0 }
   0x2   :  { %12 = vsyncpa [#allocation6], 0 }
   0x3   :  { %14 = vsyncpa [#allocation6 + $0x1], 0  ;;  %s1293_s15 = smov 0   ;;  %s1295_s16 = smov 0  }
   0x4   :  { %s1297_s17 = smov 0   ;;  %s1299_s18 = smov 0  }
   0x5   :  { %s1301_s19 = smov 0   ;;  %s1303_s20 = smov 0  }
   0x6 LB: > { %s978_s21 = sadd.s32 4294967295, %s1261_s20   ;;  %s32_s22 = sadd.s32 1, %s1257_s19  ;;  %s1261_s20 = sphi %s1303_s20, %s20_s20   ;;  %s1257_s19 = sphi %s1301_s19, %s1550_s19   ;;  %s1253_s18 = sphi %s1299_s18, %s1549_s18   ;;  %s1249_s17 = sphi %s1297_s17, %s1548_s17   ;;  %s1245_s16 = sphi %s1295_s16, %s1547_s16   ;;  %s1241_s15 = sphi %s1293_s15, %s1546_s15  }
   0x7   : > { %p34_p0 = scmp.ge.s32.totalorder %s32_s22, 2  ;;  %s39_s23 = sadd.s32 1, %s1249_s17 }
   0x8   : > { %p46_p1 = scmp.ne.s32.totalorder %s1249_s17, %s1245_s16  ;;  %p47_p2 = scmp.eq.s32.totalorder %s1261_s20, 0 }
   0x9   : > { %s1552_s22 = smov (%p34_p0, %s32_s22), 0  ;;  %p52_p4 = scmp.ne.s32.totalorder %s1245_s16, %s1241_s15 }
   0xa   : > { %p1329_p3 = por %p47_p2, %p46_p1  ;;  %s36_s25 = ssub.s32 %s1257_s19, %s1552_s22 }
   0xb   : > { %p53_p5 = scmp.eq.s32.totalorder %s978_s21, 0  ;;  %p37_p6 = scmp.eq.s32.totalorder %s36_s25, 0 }
   0xc   : > { %p1067_p8 = scmp.lt.s32.totalorder %s1261_s20, 2  ;;  %s1345_s28 = sand.u32 1, %s1249_s17  }
   0xd   : > { %p1336_p7 = por %p53_p5, %p52_p4  ;;  %s1009_s29 = sshll.u32 %s1257_s19, 9 }
   0xe   : > { %s1342_s27 = scalar_select %p37_p6, %s1249_s17, %s39_s23  }
   0xf   : > { %s1542_s26 = scalar_select %p1336_p7, 1, 0 }
  0x10   : > { %s983_s30 = sshll.u32 %s1345_s28, 5  ;;  %s1352_s7 = scalar_lea.hbm %s1535_s0, %s1009_s29 }
  0x11   : > { %s195_s8 = scalar_lea.vmem [#allocation3], %s983_s30  ;;  %p1356_p9 = pnand %p1067_p8, %p1329_p3 }
  0x12   : > { %s202_s9 = sshll.u32 %s195_s8, 4  ;;  %s192_s11 = scalar_lea.sflag [#allocation4], %s1345_s28  ;;  %s1360_s9 = int_to_ptr.vmem [resolvable:$true] %s202_s9 }
  0x13   : > { %s1147_s12 = scalar_lea.hbm %s1352_s7, 512  ;;  %p1149_p11 = pneg %p1356_p9 }
  0x14   : > { %p1148_p10 = scmp.ne.s32.totalorder %s1352_s7, %s1147_s12  ;;  %s1152_s15 = scalar_lea.hbm %s1535_s0, 1024 }
  0x15   : > { %p1153_p0 = scmp.lt.u32.totalorder %s1352_s7, %s1535_s0  ;;  %p1154_p1 = scmp.lt.u32.totalorder %s1152_s15, %s1147_s12 }
  0x16   : > { %p1150_p12 = pnand %p1149_p11, %p1148_p10  ;;  %p1156_p3 = scmp.lt.u32.totalorder %s1147_s12, %s1352_s7 }
  0x17   : > { %p1155_p2 = por %p1154_p1, %p1153_p0 }
  0x18   : > { %p1151_p13 = pneg %p1150_p12 }
  0x19   : > { %p1157_p4 = por %p1156_p3, %p1155_p2 }
  0x1b   : > { %p1158_p5 = pnand %p1157_p4, %p1151_p13 }
  0x1d   : > { %1161 = shalt.err (!%p1158_p5)
}
  0x1e   : > { %s1162_s24 = scalar_lea.vmem %s1360_s9, 512  ;;  %s1263_s25 = smov [#allocation3]  }
  0x1f   : > { %p1163_p6 = scmp.ne.s32.totalorder %s1360_s9, %s1162_s24  ;;  %s1167_s29 = sshll.u32 %s1263_s25, 4  ;;  %s1168_s29 = int_to_ptr.vmem [resolvable:$false] %s1167_s29 }
  0x20   : > { %s1169_s30 = scalar_lea.vmem %s1168_s29, 1024  ;;  %p1170_p12 = scmp.lt.s32.totalorder %s1360_s9, %s1168_s29 }
  0x21   : > { %p1165_p8 = pnand %p1163_p6, %p1149_p11  ;;  %p1171_p0 = scmp.lt.s32.totalorder %s1169_s30, %s1162_s24 }
  0x23   : > { %p1166_p10 = pneg %p1165_p8  ;;  %p1172_p1 = por %p1171_p0, %p1170_p12 }
  0x25   : > { %p1173_p2 = pnand %p1172_p1, %p1166_p10 }
  0x27   : > { %1176 = shalt.err (!%p1173_p2)
}
  0x28   : > { %s1264_s5 = smov 128   ;;  %s1265_s6 = smov 8  }
  0x29   : > { %1063 = dma.hbm_to_vmem [thread:$0]  (!%p1356_p9), %s1352_s7, 512, %s1360_s9, %s192_s11, %s1264_s5, %s1264_s5, %s1265_s6  }
  0x2a   : > { %p989_p13 = scmp.ge.s32.totalorder %s1261_s20, 1  ;;  %p233_p3 = scmp.lt.s32.totalorder %s1261_s20, 3 }
  0x2b   : > { %s986_s8 = sshll.u32 %s1345_s28, 4  ;;  %s1010_s13 = sshll.u32 %s1257_s19, 8 }
  0x2c   : > { %p1396_p4 = pnand %p989_p13, %p233_p3  ;;  %s216_s14 = scalar_lea.vmem [#allocation5], %s986_s8 }
  0x2d   : > { %s225_s15 = sshll.u32 %s216_s14, 4  ;;  %s1404_s24 = scalar_lea.hbm %s1536_s1, %s1010_s13  ;;  %s1406_s15 = int_to_ptr.vmem [resolvable:$true] %s225_s15 }
  0x2e   : > { %s213_s7 = scalar_lea.sflag [#allocation6], %s1345_s28  ;;  %s1177_s9 = scalar_lea.hbm %s1404_s24, 256 }
  0x2f   : > { %p1178_p5 = scmp.ne.s32.totalorder %s1404_s24, %s1177_s9  ;;  %s1182_s29 = scalar_lea.hbm %s1536_s1, 512 }
  0x30   : > { %p1183_p10 = scmp.lt.u32.totalorder %s1404_s24, %s1536_s1  ;;  %p1184_p12 = scmp.lt.u32.totalorder %s1182_s29, %s1177_s9 }
  0x31   : > { %p1180_p6 = pnand %p1178_p5, %p1149_p11  ;;  %p1186_p1 = scmp.lt.u32.totalorder %s1177_s9, %s1404_s24 }
  0x32   : > { %p1185_p0 = por %p1184_p12, %p1183_p10 }
  0x33   : > { %p1181_p8 = pneg %p1180_p6 }
  0x34   : > { %p1187_p2 = por %p1186_p1, %p1185_p0 }
  0x36   : > { %p1188_p13 = pnand %p1187_p2, %p1181_p8 }
  0x38   : > { %1191 = shalt.err (!%p1188_p13)
}
  0x39   : > { %s1192_s13 = scalar_lea.vmem %s1406_s15, 256  ;;  %s1266_s14 = smov [#allocation5]  }
  0x3a   : > { %p1193_p3 = scmp.ne.s32.totalorder %s1406_s15, %s1192_s13  ;;  %s1197_s21 = sshll.u32 %s1266_s14, 4  ;;  %s1198_s21 = int_to_ptr.vmem [resolvable:$false] %s1197_s21 }
  0x3b   : > { %s1199_s23 = scalar_lea.vmem %s1198_s21, 512  ;;  %p1200_p7 = scmp.lt.s32.totalorder %s1406_s15, %s1198_s21 }
  0x3c   : > { %p1195_p5 = pnand %p1193_p3, %p1149_p11  ;;  %p1201_p10 = scmp.lt.s32.totalorder %s1199_s23, %s1192_s13 }
  0x3e   : > { %p1196_p6 = pneg %p1195_p5  ;;  %p1202_p12 = por %p1201_p10, %p1200_p7 }
  0x40   : > { %p1203_p0 = pnand %p1202_p12, %p1196_p6 }
  0x42   : > { %1206 = shalt.err (!%p1203_p0)
}
  0x43   : > { %1066 = dma.hbm_to_vmem [thread:$0]  (!%p1356_p9), %s1404_s24, 256, %s1406_s15, %s213_s7, %s1264_s5, %s1264_s5, %s1265_s6  }
  0x44   : > { %237 = sbr.rel (%p1396_p4) target bundleno = 737 (0x2e1), region = 36  ;;  %s239_s9 = sand.u32 (!%p1396_p4), 1, %s1245_s16  }
  0x45   : > { %s990_s11 = sshll.u32 (!%p1396_p4), %s239_s9, 5  ;;  %s240_s25 = scalar_lea.sflag (!%p1396_p4), [#allocation4], %s239_s9 }
  0x46   : > { %s243_s29 = scalar_lea.vmem (!%p1396_p4), [#allocation3], %s990_s11  ;;  %p1545_p7 = scmp.ne.s32.totalorder (!%p1396_p4), %s1542_s26, 0 }
  0x4b   : > { %1232 = dma.done.wait (%p1545_p7), %s240_s25, 512  }
  0x4c   : > { %1234 = vsyncadd (%p1545_p7), %s240_s25, 4294966784  ;;  %s991_s10 = sshll.u32 %s239_s9, 4  ;;  %s249_s28 = scalar_lea.sflag [#allocation6], %s239_s9 }
  0x4d   : > { %s1444_s30 = scalar_lea.vmem [#allocation5], %s991_s10 }
  0x4e   : > { %1236 = dma.done.wait (%p1545_p7), %s249_s28, 256  }
  0x4f   : > { %1238 = vsyncadd (%p1545_p7), %s249_s28, 4294967040  ;;  %vm310_vm0 = vcmask 64512   ;;  %v309_v0 = vld [vmem:[%s1538_s3] sm:$0xff]  ;;  %v306_v2 = vld [vmem:[%s243_s29 + $0x8] sm:$0xff]  ;;  %vm408_vm1 = vcmask 130048   ;;  %v1267_v17 = vmov 0.0  }
  0x50   : > { %v305_v1 = vld [vmem:[%s243_s29] sm:$0xff]  ;;  %1028 = vmatprep.subr.mxu0 %v309_v0  ;;  %v307_v3 = vld [vmem:[%s243_s29 + $0x10] sm:$0xff]  ;;  %v308_v4 = vld [vmem:[%s243_s29 + $0x18] sm:$0xff]  ;;  %p295_p9 = scmp.lt.s32.totalorder %s1253_s18, 1 }
  0x51   : > { %1030 = vmatprep.mubr.msk.f32.mxu0 %vm310_vm0, %v305_v1  ;;  %1029 = vmatpush3.msra.mxu0 %v309_v0  ;;  %v413_v5 = vld [vmem:[%s1537_s2] sm:$0xff]  ;;  %v414_v11 = vld [vmem:[%s1537_s2 + $0x8] sm:$0xff] }
  0x52   : > { %1031 = vmatmul.mubr.msk.f32.vlgmr.msra.gmra.mrb[0].mxu0 %vm310_vm0, %v306_v2  ;;  %1038 = vmatprep.mubr.msk.f32.mxu1 %vm310_vm0, %v413_v5  ;;  %v1476_v15 = vld [vmem:[%s1444_s30] sm:$0xff]  ;;  %v1479_v16 = vld [vmem:[%s1444_s30 + $0x8] sm:$0xff]  ;;  %s1554_s18 = smov (!%p295_p9, %s1253_s18), 1 }
  0x53   : > { %1033 = vmatprep.mubr.msk.f32.mxu0 %vm310_vm0, %v307_v3  ;;  %vm808_vm2 = vcmp.ne.s32.totalorder %v1476_v15, 255  ;;  %vm810_vm3 = vcmp.lt.s32.totalorder %v1476_v15, 4  ;;  %vm809_vm5 = vcmp.ne.s32.totalorder %v1479_v16, 255  ;;  %vm811_vm6 = vcmp.lt.s32.totalorder %v1479_v16, 4  ;;  %s300_s13 = scalar_lea.vmem %s1539_s4, %s1554_s18 }
  0x54   : > { %vm812_vm4 = vmand %vm808_vm2, %vm810_vm3  ;;  %vm501_vm8 = vcmp.eq.s32.totalorder %v1479_v16, 0  ;;  %vm500_vm9 = vcmp.eq.s32.totalorder %v1476_v15, 0  ;;  %vm597_vm10 = vcmp.eq.s32.totalorder %v1479_v16, 1  ;;  %vm697_vm11 = vcmp.eq.s32.totalorder %v1479_v16, 2 }
  0x55   : > { %v1486_v18 = vsel %vm812_vm4, 1.0, %v1267_v17  ;;  %vm813_vm7 = vmand %vm809_vm5, %vm811_vm6  ;;  %vm596_vm12 = vcmp.eq.s32.totalorder %v1476_v15, 1  ;;  %vm696_vm13 = vcmp.eq.s32.totalorder %v1476_v15, 2  ;;  %vm797_vm14 = vcmp.eq.s32.totalorder %v1479_v16, 3 }
  0x56   : > { %1034 = vmatmul.mubr.msk.f32.gmra.mrb[2].mxu0 %vm310_vm0, %v308_v4  ;;  %v843_v19 = vsel %vm408_vm1, %v1486_v18, 0.0  ;;  %v1491_v20 = vsel %vm813_vm7, 1.0, %v1267_v17  ;;  %vm796_vm15 = vcmp.eq.s32.totalorder %v1476_v15, 3 }
  0x57   : > { %1048 = vmatprep.mubr.msk.f32.mxu0 %vm310_vm0, %v413_v5  ;;  %844 = vadd.xlane.f32.xlu1 %v843_v19  ;;  %v846_v21 = vsel %vm408_vm1, %v1491_v20, 0.0 }
  0x5b   : > { %847 = vadd.xlane.f32.xlu1 %v846_v21 }
 0x125   : > { %v1032_v6 = vpop.f32.mrb[0].mxu0 }
 0x126   : > { %410 = vst.msk [vmem:[#allocation2 + $0x8] sm:$0xff] %vm408_vm1, %v1032_v6  ;;  %v389_v7 = vpop.f32.mrb[1].mxu0 }
 0x127   : > { %409 = vst.msk [vmem:[#allocation2] sm:$0xff] %vm408_vm1, %v389_v7 }
 0x129   : > { %v1035_v8 = vpop.f32.mrb[2].mxu0 }
 0x12a   : > { %412 = vst.msk [vmem:[#allocation2 + $0x18] sm:$0xff] %vm408_vm1, %v1035_v8  ;;  %v399_v9 = vpop.f32.mrb[3].mxu0 }
 0x12b   : > { %411 = vst.msk [vmem:[#allocation2 + $0x10] sm:$0xff] %vm408_vm1, %v399_v9 }
 0x12d   : > { %v504_v12 = vld [vmem:[#allocation2 + $0x8] sm:$0xff] }
 0x12e   : > { %v417_v10 = vld [vmem:[#allocation2] sm:$0xff] }
 0x12f   : > { %1036 = vmatprep.subr.mxu1 %v417_v10 }
 0x130   : > { %1037 = vmatpush3.msra.mxu1 %v417_v10 }
 0x131   : > { %1039 = vmatmul.mubr.msk.f32.vlgmr.msra.gmra.mrb[0].mxu1 %vm310_vm0, %v414_v11  ;;  %1041 = vmatprep.subr.mxu1 %v504_v12  ;;  %v702_v13 = vld [vmem:[#allocation2 + $0x18] sm:$0xff] }
 0x132   : > { %1042 = vmatpush3.msra.mxu1 %v504_v12  ;;  %v602_v14 = vld [vmem:[#allocation2 + $0x10] sm:$0xff]  ;;  %1043 = vmatprep.mubr.msk.f32.mxu1 %vm310_vm0, %v413_v5 }
 0x133   : > { %1046 = vmatprep.subr.mxu0 %v602_v14  ;;  %1051 = vmatprep.subr.mxu1 %v702_v13 }
 0x134   : > { %1047 = vmatpush3.msra.mxu0 %v602_v14 }
 0x135   : > { %1044 = vmatmul.mubr.msk.f32.vlgmr.msra.gmra.mrb[2].mxu1 %vm310_vm0, %v414_v11  ;;  %1049 = vmatmul.mubr.msk.f32.vlgmr.msra.gmra.mrb[4].mxu0 %vm310_vm0, %v414_v11 }
 0x136   : > { %1052 = vmatpush3.msra.mxu1 %v702_v13  ;;  %1053 = vmatprep.mubr.msk.f32.mxu1 %vm310_vm0, %v413_v5 }
 0x139   : > { %1054 = vmatmul.mubr.msk.f32.vlgmr.msra.gmra.mrb[4].mxu1 %vm310_vm0, %v414_v11 }
 0x204   : > { %v1040_v22 = vpop.f32.mrb[0].mxu1 }
 0x205   : > { %v503_v23 = vsel %vm501_vm8, %v1040_v22, 0.0  ;;  %v491_v24 = vpop.f32.mrb[1].mxu1 }
 0x206   : > { %v502_v25 = vsel %vm500_vm9, %v491_v24, 0.0 }
 0x208   : > { %v1045_v26 = vpop.f32.mrb[2].mxu1  ;;  %v1050_v27 = vpop.f32.mrb[4].mxu0 }
 0x209   : > { %v581_v28 = vmax.f32 %v1040_v22, %v1045_v26  ;;  %v599_v29 = vsel %vm597_vm10, %v1045_v26, 0.0  ;;  %v571_v30 = vpop.f32.mrb[3].mxu1  ;;  %v699_v31 = vsel %vm697_vm11, %v1050_v27, 0.0  ;;  %v669_v32 = vpop.f32.mrb[5].mxu0 }
 0x20a   : > { %v601_v33 = vadd.f32 %v599_v29, %v503_v23  ;;  %v580_v34 = vmax.f32 %v491_v24, %v571_v30  ;;  %v598_v35 = vsel %vm596_vm12, %v571_v30, 0.0  ;;  %v698_v36 = vsel %vm696_vm13, %v669_v32, 0.0 }
 0x20b   : > { %v583_v37 = vsub.f32 %v1040_v22, %v581_v28  ;;  %v589_v38 = vsub.f32 %v1045_v26, %v581_v28  ;;  %v600_v39 = vadd.f32 %v598_v35, %v502_v25  ;;  %v679_v40 = vmax.f32 %v581_v28, %v1050_v27 }
 0x20c   : > { %v582_v41 = vsub.f32 %v491_v24, %v580_v34  ;;  %v588_v42 = vsub.f32 %v571_v30, %v580_v34  ;;  %v701_v43 = vadd.f32 %v699_v31, %v601_v33  ;;  %v678_v44 = vmax.f32 %v580_v34, %v669_v32  ;;  %v1055_v45 = vpop.f32.mrb[4].mxu1 }
 0x20d   : > { %v586_v46 = vmul.f32 1.442695, %v583_v37  ;;  %v592_v47 = vmul.f32 1.442695, %v589_v38  ;;  %v681_v48 = vsub.f32 %v581_v28, %v679_v40  ;;  %v689_v49 = vsub.f32 %v1050_v27, %v679_v40  ;;  %v769_v50 = vpop.f32.mrb[5].mxu1 }
 0x20e   : > { %v584_v51 = vmul.f32 1.442695, %v582_v41  ;;  %v590_v52 = vmul.f32 1.442695, %v588_v42  ;;  %v680_v53 = vsub.f32 %v580_v34, %v678_v44  ;;  %v688_v54 = vsub.f32 %v669_v32, %v678_v44 }
 0x20f   : > { %1119 = vpow2.f32 %v586_v46  ;;  %v684_v55 = vmul.f32 1.442695, %v681_v48  ;;  %v692_v56 = vmul.f32 1.442695, %v689_v49  ;;  %v700_v57 = vadd.f32 %v698_v36, %v600_v39 }
 0x210   : > { %1121 = vpow2.f32 %v592_v47  ;;  %v682_v58 = vmul.f32 1.442695, %v680_v53  ;;  %v690_v59 = vmul.f32 1.442695, %v688_v54  ;;  %v779_v60 = vmax.f32 %v679_v40, %v1055_v45  ;;  %v845_v47 = vpop.xlane.xlu1 %844 }
 0x211   : > { %1123 = vpow2.f32 %v584_v51  ;;  %v799_v61 = vsel %vm797_vm14, %v1055_v45, 0.0  ;;  %v778_v62 = vmax.f32 %v678_v44, %v769_v50  ;;  %v798_v63 = vsel %vm796_vm15, %v769_v50, 0.0 }
 0x212   : > { %1125 = vpow2.f32 %v590_v52  ;;  %v781_v0 = vsub.f32 %v679_v40, %v779_v60  ;;  %v789_v1 = vsub.f32 %v1055_v45, %v779_v60  ;;  %v801_v2 = vadd.f32 %v799_v61, %v701_v43 }
 0x213   : > { %1127 = vpow2.f32 %v684_v55  ;;  %v780_v3 = vsub.f32 %v678_v44, %v778_v62  ;;  %v788_v4 = vsub.f32 %v769_v50, %v778_v62  ;;  %v800_v5 = vadd.f32 %v798_v63, %v700_v57 }
 0x214   : > { %1129 = vpow2.f32 %v692_v56  ;;  %v784_v6 = vmul.f32 1.442695, %v781_v0  ;;  %v792_v7 = vmul.f32 1.442695, %v789_v1  ;;  %v848_v48 = vpop.xlane.xlu1 %847  ;;  %v822_v53 = vlaneseq }
 0x215   : > { %1131 = vpow2.f32 %v682_v58  ;;  %v782_v8 = vmul.f32 1.442695, %v780_v3  ;;  %v790_v9 = vmul.f32 1.442695, %v788_v4  ;;  %v849_v49 = vadd.f32 %v848_v48, %v845_v47 }
 0x216   : > { %1133 = vpow2.f32 %v690_v59 }
 0x217   : > { %1135 = vpow2.f32 %v784_v6  ;;  %v850_v50 = vrot.slane %v849_v49, 4 }
 0x218   : > { %1137 = vpow2.f32 %v792_v7 }
 0x219   : > { %v1120_v10 = vpop.eup %1119  ;;  %1139 = vpow2.f32 %v782_v8  ;;  %v851_v51 = vadd.f32 %v850_v50, %v849_v49 }
 0x21a   : > { %v1122_v11 = vpop.eup %1121  ;;  %1141 = vpow2.f32 %v790_v9 }
 0x21b   : > { %v1124_v12 = vpop.eup %1123  ;;  %v595_v13 = vadd.f32 %v1122_v11, %v1120_v10  ;;  %v852_v54 = vrot.slane %v851_v51, 2 }
 0x21c   : > { %v1126_v14 = vpop.eup %1125 }
 0x21d   : > { %v1128_v15 = vpop.eup %1127  ;;  %v594_v16 = vadd.f32 %v1126_v14, %v1124_v12  ;;  %v853_v57 = vadd.f32 %v852_v54, %v851_v51 }
 0x21e   : > { %v1130_v19 = vpop.eup %1129  ;;  %v687_v21 = vmul.f32 %v1128_v15, %v595_v13 }
 0x21f   : > { %v1132_v22 = vpop.eup %1131  ;;  %v854_v59 = vrot.slane %v853_v57, 1 }
 0x220   : > { %v1134_v23 = vpop.eup %1133  ;;  %v695_v24 = vadd.f32 %v1130_v19, %v687_v21  ;;  %v686_v25 = vmul.f32 %v1132_v22, %v594_v16 }
 0x221   : > { %v1136_v26 = vpop.eup %1135  ;;  %v855_v0 = vadd.f32 %v854_v59, %v853_v57 }
 0x222   : > { %v1138_v27 = vpop.eup %1137  ;;  %v694_v28 = vadd.f32 %v1134_v23, %v686_v25  ;;  %v787_v29 = vmul.f32 %v1136_v26, %v695_v24 }
 0x223   : > { %v1140_v30 = vpop.eup %1139 }
 0x224   : > { %v786_v31 = vmul.f32 %v1140_v30, %v694_v28  ;;  %v795_v32 = vadd.f32 %v1138_v27, %v787_v29  ;;  %v1142_v33 = vpop.eup %1141 }
 0x226   : > { %v794_v34 = vadd.f32 %v1142_v33, %v786_v31  ;;  %1143 = vlog2.f32 %v795_v32 }
 0x228   : > { %1145 = vlog2.f32 %v794_v34 }
 0x230   : > { %v1144_v35 = vpop.eup %1143 }
 0x231   : > { %v805_v36 = vmul.f32 0.6931472, %v1144_v35 }
 0x232   : > { %v1146_v37 = vpop.eup %1145 }
 0x233   : > { %v803_v38 = vmul.f32 0.6931472, %v1146_v37  ;;  %v807_v39 = vadd.f32 %v805_v36, %v779_v60 }
 0x235   : > { %v806_v40 = vadd.f32 %v803_v38, %v778_v62  ;;  %v819_v41 = vsub.f32 %v807_v39, %v801_v2 }
 0x237   : > { %v818_v42 = vsub.f32 %v806_v40, %v800_v5  ;;  %v821_v45 = vmul.f32 %v1491_v20, %v819_v41 }
 0x239   : > { %v820_v43 = vmul.f32 %v1486_v18, %v818_v42  ;;  %v831_v46 = vsel %vm408_vm1, %v821_v45, 0.0  ;;  %v823_v18 = vand.u32 127, %v822_v53 }
 0x23b   : > { %v828_v44 = vsel %vm408_vm1, %v820_v43, 0.0  ;;  %vm824_vm0 = vcmp.eq.s32.totalorder %v823_v18, 0  ;;  %vm858_vm1 = vcmask 8192  }
 0x23c   : > { %829 = vadd.xlane.f32.xlu0 %v828_v44  ;;  %v1006_v61 = vsel %vm824_vm0, 1.0, %v1267_v17 }
 0x23d   : > { %v842_v63 = vsub.f32 1.0, %v1006_v61 }
 0x23f   : > { %v856_v3 = vmul.f32 %v855_v0, %v842_v63 }
 0x240   : > { %832 = vadd.xlane.f32.xlu0 %v831_v46 }
 0x2c9   : > { %v830_v52 = vpop.xlane.xlu0 %829 }
 0x2cd   : > { %v833_v55 = vpop.xlane.xlu0 %832 }
 0x2ce   : > { %v834_v56 = vadd.f32 %v833_v55, %v830_v52 }
 0x2d0   : > { %v835_v58 = vrot.slane %v834_v56, 4 }
 0x2d2   : > { %v836_v20 = vadd.f32 %v835_v58, %v834_v56 }
 0x2d4   : > { %v837_v60 = vrot.slane %v836_v20, 2 }
 0x2d6   : > { %v838_v62 = vadd.f32 %v837_v60, %v836_v20 }
 0x2d8   : > { %v839_v1 = vrot.slane %v838_v62, 1 }
 0x2da   : > { %v840_v2 = vadd.f32 %v839_v1, %v838_v62 }
 0x2dc   : > { %v841_v4 = vmul.f32 %v1006_v61, %v840_v2 }
 0x2de   : > { %v857_v5 = vadd.f32 %v856_v3, %v841_v4 }
 0x2e0   : > { %859 = vst.msk [vmem:[%s300_s13] sm:$0x1] %vm858_vm1, %v857_v5 }
 0x2e1 PF: > { %s20_s20 = sadd.s32 1, %s1261_s20   ;;  %s1546_s15 = smov %s1245_s16 }
 0x2e2   : > { %p17_p11 = scmp.ge.s32.totalorder %s20_s20, 4   ;;  %s1547_s16 = smov %s1249_s17 }
 0x2e3   : > { %s1548_s17 = smov %s1342_s27  ;;  %s1549_s18 = smov %s1257_s19 }
 0x2e4   : > { %s1550_s19 = smov %s1552_s22  ;;  %19 = sbr.rel (!%p17_p11) target bundleno = 6 (0x6), region = 96 }
 0x2eb   :  { %883 = vsyncpa [#allocation4], 1 }
 0x2ec   :  { %885 = vsyncpa [#allocation4 + $0x1], 1 }
 0x2ed   :  { %886 = vsyncpa [#allocation6], 1 }
 0x2ee   :  { %888 = vsyncpa [#allocation6 + $0x1], 1 }

// kernel: criterion_forward.5
= control target key start
LH: loop header
LB: loop body
LE: loop exit
PB: predicated region body
PF: predicated region fallthrough
CT: control target
= control target key end

     0   :  { %s1378_s21 = smov 0   ;;  %s1380_s22 = smov 0   ;;  %s1561_s0 = inlined_call_operand.vmem [shape: f32[2,32,8], index: 0, kind: input, shape index: {}]   ;;  %s1562_s1 = inlined_call_operand.vmem [shape: s32[2,16,16], index: 1, kind: input, shape index: {}]   ;;  %s1563_s2 = inlined_call_operand.vmem [shape: f32[16,8], index: 2, kind: input, shape index: {}]   ;;  %s1564_s3 = inlined_call_operand.vmem [shape: f32[8,16], index: 3, kind: input, shape index: {}]   ;;  %s1565_s4 = inlined_call_operand.vmem [shape: f32[2,4,4], index: 4, kind: input, shape index: {}]   ;;  %s1566_s5 = inlined_call_operand.vmem [shape: f32[2,1,4], index: 5, kind: input, shape index: {}]   ;;  %s1567_s6 = inlined_call_operand.vmem [shape: f32[2,1,1,1], index: 6, kind: output, shape index: {}]  }
   0x1   :  { %s1382_s23 = smov 0  }
   0x2 LB: > { %s28_s24 = sadd.s32 1, %s1329_s22  ;;  %p1169_p0 = scmp.ge.s32.totalorder %s1333_s23, 1  ;;  %s1333_s23 = sphi %s1382_s23, %s16_s23   ;;  %s1329_s22 = sphi %s1380_s22, %s1569_s22   ;;  %s1325_s21 = sphi %s1378_s21, %s1568_s21  }
   0x3   : > { %p30_p1 = scmp.ge.s32.totalorder %s28_s24, 2  ;;  %p271_p2 = scmp.lt.s32.totalorder %s1333_s23, 3 }
   0x5   : > { %s1571_s24 = smov (%p30_p1, %s28_s24), 0  ;;  %p272_p3 = pnand %p1169_p0, %p271_p2 }
   0x6   : > { %v365_v0 = vld [vmem:[%s1564_s3] sm:$0xff] (!%p272_p3)  ;;  %p323_p4 = scmp.lt.s32.totalorder (!%p272_p3), %s1325_s21, 1  ;;  %vm366_vm0 = vcmask (!%p272_p3), 64512   ;;  %v1335_v6 = vmov (!%p272_p3), 1   ;;  %v1336_v7 = vmov (!%p272_p3), 0   ;;  %s1337_s13 = smov (!%p272_p3), 127  }
   0x7   : > { %275 = sbr.rel (%p272_p3) target bundleno = 650 (0x28a), region = 44  ;;  %1211 = vmatprep.subr.mxu0 (!%p272_p3), %v365_v0  ;;  %v1412_v5 = vld [vmem:[%s1563_s2] sm:$0xff] (!%p272_p3)  ;;  %1304 = vset.pattern.permute.xlu1 (!%p272_p3), %v1335_v6  ;;  %s1338_s14 = smov (!%p272_p3), 125   ;;  %v1340_v13 = vmov (!%p272_p3), 2   ;;  %v1341_v14 = vmov (!%p272_p3), 3   ;;  %vm464_vm1 = vcmask (!%p272_p3), 130048  }
   0x8   : > { %1212 = vmatpush3.msra.mxu0 (!%p272_p3), %v365_v0  ;;  %1221 = vmatprep.mubr.msk.f32.mxu1 (!%p272_p3), %vm366_vm0, %v1412_v5  ;;  %s1339_s15 = smov (!%p272_p3), 126   ;;  %v470_v20 = vld [vmem:[%s1563_s2 + $0x8] sm:$0xff] (!%p272_p3)  ;;  %v1342_v38 = vmov (!%p272_p3), 0.0   ;;  %vm1042_vm14 = vcmask (!%p272_p3), 0  }
   0x9   : > { %1303 = vset.pattern.permute.xlu0 (!%p272_p3), %v1336_v7 }
   0xe   : > { %s1573_s21 = smov (!%p323_p4, %s1325_s21), 1 }
   0xf   : > { %s1192_s27 = sshll.u32 %s1573_s21, 5  ;;  %s1174_s9 = sshll.u32 %s1573_s21, 2 }
  0x10   : > { %s327_s30 = scalar_lea.vmem %s1561_s0, %s1192_s27  ;;  %s347_s12 = scalar_lea.vmem %s1565_s4, %s1174_s9 }
  0x11   : > { %v361_v1 = vld [vmem:[%s327_s30] sm:$0xff]  ;;  %v362_v2 = vld [vmem:[%s327_s30 + $0x8] sm:$0xff]  ;;  %v363_v3 = vld [vmem:[%s327_s30 + $0x10] sm:$0xff]  ;;  %s350_s18 = scalar_lea.vmem %s1566_s5, %s1573_s21  ;;  %s1193_s25 = sshll.u32 %s1573_s21, 4 }
  0x12   : > { %1213 = vmatprep.mubr.msk.f32.mxu0 %vm366_vm0, %v361_v1  ;;  %v364_v4 = vld [vmem:[%s327_s30 + $0x18] sm:$0xff]  ;;  %v610_v8 = vld [vmem:[%s347_s12] sm:$0x1]  ;;  %v728_v9 = vld [vmem:[%s347_s12 + $0x1] sm:$0x1]  ;;  %s336_s29 = scalar_lea.vmem %s1562_s1, %s1193_s25  ;;  %s356_s27 = scalar_lea.vmem %s1567_s6, %s1573_s21 }
  0x13   : > { %1214 = vmatmul.mubr.msk.f32.vlgmr.msra.gmra.mrb[0].mxu0 %vm366_vm0, %v362_v2  ;;  %619 = vrot.lane.b32.xlu0 %v610_v8, %s1337_s13  ;;  %1239 = vpush %v610_v8  ;;  %v846_v10 = vld [vmem:[%s347_s12 + $0x2] sm:$0x1]  ;;  %v1422_v11 = vld [vmem:[%s347_s12 + $0x3] sm:$0x1]  ;;  %v1179_v12 = vld [vmem:[%s350_s18] ss:$0 sm:$0xff] }
  0x14   : > { %1216 = vmatprep.mubr.msk.f32.mxu0 %vm366_vm0, %v363_v3  ;;  %637 = vrot.lane.b32.xlu1 %v610_v8, %s1338_s14  ;;  %v471_v36 = vld [vmem:[%s336_s29] sm:$0xff]  ;;  %v472_v37 = vld [vmem:[%s336_s29 + $0x8] sm:$0xff] }
  0x15   : > { %vm473_vm2 = vcmp.eq.s32.totalorder %v471_v36, 0  ;;  %vm474_vm3 = vcmp.eq.s32.totalorder %v472_v37, 0  ;;  %vm491_vm4 = vcmp.eq.s32.totalorder %v471_v36, 1  ;;  %vm492_vm5 = vcmp.eq.s32.totalorder %v472_v37, 1 }
  0x16   : > { %v1469_v39 = vsel %vm473_vm2, 1.0, %v1342_v38  ;;  %v1471_v40 = vsel %vm474_vm3, 1.0, %v1342_v38  ;;  %v1474_v42 = vsel %vm491_vm4, 1.0, %v1342_v38  ;;  %v1476_v43 = vsel %vm492_vm5, 1.0, %v1342_v38 }
  0x17   : > { %1217 = vmatmul.mubr.msk.f32.gmra.mrb[2].mxu0 %vm366_vm0, %v364_v4  ;;  %628 = vrot.lane.b32.xlu0 %v610_v8, %s1339_s15  ;;  %vm503_vm6 = vcmp.eq.s32.totalorder %v471_v36, 2  ;;  %vm504_vm7 = vcmp.eq.s32.totalorder %v472_v37, 2  ;;  %vm515_vm8 = vcmp.eq.s32.totalorder %v471_v36, 3  ;;  %vm516_vm9 = vcmp.eq.s32.totalorder %v472_v37, 3 }
  0x18   : > { %1231 = vmatprep.mubr.msk.f32.mxu0 %vm366_vm0, %v1412_v5  ;;  %737 = vrot.lane.b32.xlu1 %v728_v9, %s1337_s13  ;;  %v1489_v49 = vsel %vm503_vm6, 1.0, %v1342_v38  ;;  %v1493_v50 = vsel %vm504_vm7, 1.0, %v1342_v38  ;;  %v1498_v54 = vsel %vm515_vm8, 1.0, %v1342_v38  ;;  %v1500_v55 = vsel %vm516_vm9, 1.0, %v1342_v38 }
  0x1b   : > { %746 = vrot.lane.b32.xlu0 %v728_v9, %s1339_s15 }
  0x1c   : > { %755 = vrot.lane.b32.xlu1 %v728_v9, %s1338_s14 }
  0x1f   : > { %855 = vrot.lane.b32.xlu0 %v846_v10, %s1337_s13 }
  0x20   : > { %864 = vrot.lane.b32.xlu1 %v846_v10, %s1339_s15 }
  0x23   : > { %873 = vrot.lane.b32.xlu0 %v846_v10, %s1338_s14 }
  0x24   : > { %973 = vrot.lane.b32.xlu1 %v1422_v11, %s1337_s13 }
  0x27   : > { %982 = vrot.lane.b32.xlu0 %v1422_v11, %s1339_s15 }
  0x28   : > { %991 = vrot.lane.b32.xlu1 %v1422_v11, %s1338_s14 }
  0x2b   : > { %484 = vperm.xlu0 %1303, %v1179_v12  }
  0x2c   : > { %496 = vperm.xlu1 %1304, %v1179_v12  }
  0x2f   : > { %1306 = vset.pattern.permute.xlu0 %v1341_v14 }
  0x30   : > { %1305 = vset.pattern.permute.xlu1 %v1340_v13  ;;  %520 = vperm.xlu0 %1306, %v1179_v12  }
  0x31   : > { %508 = vperm.xlu1 %1305, %v1179_v12  }
  0x44   : > { %s1448_s26 = spop %1239 }
  0x45   : > { %v613_v41 = vstv %s1448_s26 }
  0x46   : > { %v615_v45 = vmul.f32 %v613_v41, %v1469_v39  ;;  %v616_v46 = vmul.f32 %v613_v41, %v1471_v40 }
  0x85   : > { %v620_v21 = vpop.permute.xlu0 %619 }
  0x86   : > { %v638_v22 = vpop.permute.xlu1 %637  ;;  %1241 = vpush %v620_v21 }
  0x89   : > { %v629_v26 = vpop.permute.xlu0 %628 }
  0x8a   : > { %v738_v27 = vpop.permute.xlu1 %737  ;;  %1243 = vpush %v629_v26 }
  0x8b   : > { %1245 = vpush %v638_v22 }
  0x8c   : > { %1247 = vpush %v728_v9 }
  0x8d   : > { %v747_v28 = vpop.permute.xlu0 %746  ;;  %1249 = vpush %v738_v27 }
  0x8e   : > { %v756_v29 = vpop.permute.xlu1 %755  ;;  %1251 = vpush %v747_v28 }
  0x8f   : > { %1253 = vpush %v756_v29 }
  0x90   : > { %1255 = vpush %v846_v10 }
  0x91   : > { %v856_v30 = vpop.permute.xlu0 %855 }
  0x92   : > { %v865_v31 = vpop.permute.xlu1 %864  ;;  %1257 = vpush %v856_v30 }
  0x93   : > { %1259 = vpush %v865_v31 }
  0x95   : > { %v874_v32 = vpop.permute.xlu0 %873 }
  0x96   : > { %v974_v33 = vpop.permute.xlu1 %973  ;;  %1261 = vpush %v874_v32 }
  0x97   : > { %1263 = vpush %v1422_v11 }
  0x98   : > { %1265 = vpush %v974_v33 }
  0x99   : > { %v983_v34 = vpop.permute.xlu0 %982 }
  0x9a   : > { %v992_v35 = vpop.permute.xlu1 %991  ;;  %1267 = vpush %v983_v34 }
  0x9b   : > { %1269 = vpush %v992_v35 }
  0xb7   : > { %s1453_s30 = spop %1241 }
  0xb8   : > { %v622_v44 = vstv %s1453_s30 }
  0xb9   : > { %v624_v47 = vmul.f32 %v622_v44, %v1474_v42  ;;  %v625_v48 = vmul.f32 %v622_v44, %v1476_v43 }
  0xbb   : > { %s1455_s7 = spop %1243  ;;  %v626_v57 = vadd.f32 %v624_v47, %v615_v45  ;;  %v627_v58 = vadd.f32 %v625_v48, %v616_v46 }
  0xbc   : > { %s1457_s8 = spop %1245  ;;  %v631_v51 = vstv %s1455_s7 }
  0xbd   : > { %s1459_s9 = spop %1247  ;;  %v640_v56 = vstv %s1457_s8  ;;  %v633_v61 = vmul.f32 %v631_v51, %v1489_v49  ;;  %v634_v62 = vmul.f32 %v631_v51, %v1493_v50 }
  0xbe   : > { %s1461_s10 = spop %1249  ;;  %v731_v59 = vstv %s1459_s9  ;;  %v642_v1 = vmul.f32 %v640_v56, %v1498_v54 }
  0xbf   : > { %s1463_s11 = spop %1251  ;;  %v740_v60 = vstv %s1461_s10  ;;  %v733_v6 = vmul.f32 %v731_v59, %v1469_v39  ;;  %v734_v7 = vmul.f32 %v731_v59, %v1471_v40  ;;  %v636_v21 = vadd.f32 %v634_v62, %v627_v58 }
  0xc0   : > { %s1465_s12 = spop %1253  ;;  %v743_v8 = vmul.f32 %v740_v60, %v1476_v43  ;;  %v742_v9 = vmul.f32 %v740_v60, %v1474_v42  ;;  %v749_v10 = vstv %s1463_s11  ;;  %v635_v33 = vadd.f32 %v633_v61, %v626_v57 }
  0xc1   : > { %s1467_s13 = spop %1255  ;;  %v758_v26 = vstv %s1465_s12 }
  0xc2   : > { %v849_v52 = vstv %s1467_s13  ;;  %v745_v22 = vadd.f32 %v743_v8, %v734_v7  ;;  %v761_v38 = vmul.f32 %v758_v26, %v1500_v55  ;;  %v760_v44 = vmul.f32 %v758_v26, %v1498_v54 }
  0xc3   : > { %s1479_s14 = spop %1257  ;;  %v852_v63 = vmul.f32 %v849_v52, %v1471_v40  ;;  %v851_v11 = vmul.f32 %v849_v52, %v1469_v39  ;;  %v644_v57 = vadd.f32 %v642_v1, %v635_v33 }
  0xc4   : > { %s1481_s15 = spop %1259  ;;  %v858_v53 = vstv %s1479_s14 }
  0xc5   : > { %v861_v0 = vmul.f32 %v858_v53, %v1476_v43  ;;  %v867_v2 = vstv %s1481_s15  ;;  %v860_v12 = vmul.f32 %v858_v53, %v1474_v42 }
  0xc6   : > { %v870_v14 = vmul.f32 %v867_v2, %v1493_v50  ;;  %v869_v28 = vmul.f32 %v867_v2, %v1489_v49 }
  0xc7   : > { %s1483_s16 = spop %1261  ;;  %v863_v13 = vadd.f32 %v861_v0, %v852_v63  ;;  %v862_v27 = vadd.f32 %v860_v12, %v851_v11 }
  0xc8   : > { %s1491_s17 = spop %1263 }
  0xc9   : > { %s1266_s18 = spop %1265  ;;  %v967_v3 = vstv %s1491_s17  ;;  %v872_v29 = vadd.f32 %v870_v14, %v863_v13  ;;  %v871_v45 = vadd.f32 %v869_v28, %v862_v27 }
  0xca   : > { %v976_v4 = vstv %s1266_s18 }
  0xcb   : > { %s1268_s19 = spop %1267 }
  0xcc   : > { %s1270_s20 = spop %1269 }
  0xcd   : > { %v994_v36 = vstv %s1270_s20 }
  0xce   : > { %v997_v53 = vmul.f32 %v994_v36, %v1500_v55  ;;  %v996_v59 = vmul.f32 %v994_v36, %v1498_v54 }
  0xe6   : > { %v1215_v15 = vpop.f32.mrb[0].mxu0 }
  0xe7   : > { %466 = vst.msk [vmem:[#allocation2 + $0x8] sm:$0xff] %vm464_vm1, %v1215_v15  ;;  %v445_v16 = vpop.f32.mrb[1].mxu0  ;;  %v970_v15 = vmul.f32 %v967_v3, %v1471_v40 }
  0xe8   : > { %465 = vst.msk [vmem:[#allocation2] sm:$0xff] %vm464_vm1, %v445_v16  ;;  %v979_v16 = vmul.f32 %v976_v4, %v1476_v43 }
  0xea   : > { %v1218_v17 = vpop.f32.mrb[2].mxu0  ;;  %v981_v31 = vadd.f32 %v979_v16, %v970_v15 }
  0xeb   : > { %468 = vst.msk [vmem:[#allocation2 + $0x18] sm:$0xff] %vm464_vm1, %v1218_v17  ;;  %v455_v18 = vpop.f32.mrb[3].mxu0  ;;  %v876_v17 = vstv %s1483_s16 }
  0xec   : > { %467 = vst.msk [vmem:[#allocation2 + $0x10] sm:$0xff] %vm464_vm1, %v455_v18  ;;  %v969_v18 = vmul.f32 %v967_v3, %v1469_v39  ;;  %v879_v30 = vmul.f32 %v876_v17, %v1500_v55  ;;  %v878_v46 = vmul.f32 %v876_v17, %v1498_v54 }
  0xee   : > { %v652_v23 = vld [vmem:[#allocation2 + $0x8] sm:$0xff]  ;;  %v880_v3 = vadd.f32 %v878_v46, %v871_v45 }
  0xef   : > { %v527_v19 = vld [vmem:[#allocation2] sm:$0xff] }
  0xf0   : > { %1219 = vmatprep.subr.mxu1 %v527_v19 }
  0xf1   : > { %1220 = vmatpush3.msra.mxu1 %v527_v19  ;;  %v978_v19 = vmul.f32 %v976_v4, %v1474_v42 }
  0xf2   : > { %1222 = vmatmul.mubr.msk.f32.vlgmr.msra.gmra.mrb[0].mxu1 %vm366_vm0, %v470_v20  ;;  %1224 = vmatprep.subr.mxu1 %v652_v23  ;;  %v888_v24 = vld [vmem:[#allocation2 + $0x18] sm:$0xff] }
  0xf3   : > { %1225 = vmatpush3.msra.mxu1 %v652_v23  ;;  %v770_v25 = vld [vmem:[#allocation2 + $0x10] sm:$0xff]  ;;  %1226 = vmatprep.mubr.msk.f32.mxu1 %vm366_vm0, %v1412_v5  ;;  %v751_v23 = vmul.f32 %v749_v10, %v1489_v49  ;;  %v980_v34 = vadd.f32 %v978_v19, %v969_v18 }
  0xf4   : > { %1229 = vmatprep.subr.mxu0 %v770_v25  ;;  %1234 = vmatprep.subr.mxu1 %v888_v24 }
  0xf5   : > { %1230 = vmatpush3.msra.mxu0 %v770_v25  ;;  %v744_v25 = vadd.f32 %v742_v9, %v733_v6 }
  0xf6   : > { %1227 = vmatmul.mubr.msk.f32.vlgmr.msra.gmra.mrb[2].mxu1 %vm366_vm0, %v470_v20  ;;  %1232 = vmatmul.mubr.msk.f32.vlgmr.msra.gmra.mrb[4].mxu0 %vm366_vm0, %v470_v20 }
  0xf7   : > { %1235 = vmatpush3.msra.mxu1 %v888_v24  ;;  %1236 = vmatprep.mubr.msk.f32.mxu1 %vm366_vm0, %v1412_v5  ;;  %v643_v5 = vmul.f32 %v640_v56, %v1500_v55  ;;  %v752_v24 = vmul.f32 %v749_v10, %v1493_v50  ;;  %v753_v41 = vadd.f32 %v751_v23, %v744_v25 }
  0xf8   : > { %v881_v56 = vadd.f32 %v879_v30, %v872_v29  ;;  %v497_v29 = vpop.permute.xlu1 %496  ;;  %v485_v30 = vpop.permute.xlu0 %484 }
  0xf9   : > { %v754_v37 = vadd.f32 %v752_v24, %v745_v22  ;;  %v645_v48 = vadd.f32 %v643_v5, %v636_v21  ;;  %v762_v0 = vadd.f32 %v760_v44, %v753_v41  ;;  %v487_v33 = vmul.f32 %v485_v30, %v1469_v39 }
  0xfa   : > { %1237 = vmatmul.mubr.msk.f32.vlgmr.msra.gmra.mrb[4].mxu1 %vm366_vm0, %v470_v20  ;;  %v985_v20 = vstv %s1268_s19 }
  0xfb   : > { %v988_v32 = vmul.f32 %v985_v20, %v1493_v50  ;;  %v987_v35 = vmul.f32 %v985_v20, %v1489_v49  ;;  %v763_v61 = vadd.f32 %v761_v38, %v754_v37 }
  0xfd   : > { %v990_v52 = vadd.f32 %v988_v32, %v981_v31  ;;  %v989_v58 = vadd.f32 %v987_v35, %v980_v34  ;;  %v499_v31 = vmul.f32 %v497_v29, %v1474_v42  ;;  %v500_v32 = vmul.f32 %v497_v29, %v1476_v43  ;;  %v509_v35 = vpop.permute.xlu1 %508 }
  0xfe   : > { %v488_v34 = vmul.f32 %v485_v30, %v1471_v40  ;;  %v512_v44 = vmul.f32 %v509_v35, %v1493_v50  ;;  %v511_v46 = vmul.f32 %v509_v35, %v1489_v49 }
  0xff   : > { %v999_v8 = vadd.f32 %v997_v53, %v990_v52  ;;  %v998_v11 = vadd.f32 %v996_v59, %v989_v58  ;;  %v501_v38 = vadd.f32 %v499_v31, %v487_v33 }
 0x100   : > { %v502_v41 = vadd.f32 %v500_v32, %v488_v34 }
 0x101   : > { %v513_v50 = vadd.f32 %v511_v46, %v501_v38 }
 0x102   : > { %v514_v52 = vadd.f32 %v512_v44, %v502_v41 }
 0x1c5   : > { %v1223_v47 = vpop.f32.mrb[0].mxu1 }
 0x1c6   : > { %v601_v51 = vpop.f32.mrb[1].mxu1  ;;  %v647_v60 = vsub.f32 %v1223_v47, %v645_v48  ;;  %v521_v47 = vpop.permute.xlu0 %520 }
 0x1c7   : > { %v646_v62 = vsub.f32 %v601_v51, %v644_v57  ;;  %v524_v53 = vmul.f32 %v521_v47, %v1500_v55  ;;  %v523_v58 = vmul.f32 %v521_v47, %v1498_v54 }
 0x1c8   : > { %v649_v12 = vmul.f32 %v647_v60, %v647_v60 }
 0x1c9   : > { %v1228_v63 = vpop.f32.mrb[2].mxu1  ;;  %v1233_v2 = vpop.f32.mrb[4].mxu0  ;;  %v648_v13 = vmul.f32 %v646_v62, %v646_v62 }
 0x1ca   : > { %v765_v4 = vsub.f32 %v1228_v63, %v763_v61  ;;  %v719_v6 = vpop.f32.mrb[3].mxu1  ;;  %v883_v7 = vsub.f32 %v1233_v2, %v881_v56  ;;  %v837_v5 = vpop.f32.mrb[5].mxu0  ;;  %v526_v61 = vadd.f32 %v524_v53, %v514_v52  ;;  %v525_v63 = vadd.f32 %v523_v58, %v513_v50 }
 0x1cb   : > { %v764_v9 = vsub.f32 %v719_v6, %v762_v0  ;;  %v882_v10 = vsub.f32 %v837_v5, %v880_v3 }
 0x1cc   : > { %v767_v1 = vmul.f32 %v765_v4, %v765_v4  ;;  %v885_v17 = vmul.f32 %v883_v7, %v883_v7 }
 0x1cd   : > { %v766_v14 = vmul.f32 %v764_v9, %v764_v9  ;;  %v1238_v15 = vpop.f32.mrb[4].mxu1  ;;  %v884_v21 = vmul.f32 %v882_v10, %v882_v10 }
 0x1ce   : > { %v769_v16 = vadd.f32 %v767_v1, %v649_v12  ;;  %v1001_v18 = vsub.f32 %v1238_v15, %v999_v8  ;;  %v955_v19 = vpop.f32.mrb[5].mxu1 }
 0x1cf   : > { %v768_v20 = vadd.f32 %v766_v14, %v648_v13  ;;  %v1000_v22 = vsub.f32 %v955_v19, %v998_v11 }
 0x1d0   : > { %v887_v23 = vadd.f32 %v885_v17, %v769_v16  ;;  %v1003_v24 = vmul.f32 %v1001_v18, %v1001_v18 }
 0x1d1   : > { %v886_v25 = vadd.f32 %v884_v21, %v768_v20  ;;  %v1002_v26 = vmul.f32 %v1000_v22, %v1000_v22 }
 0x1d2   : > { %v1005_v27 = vadd.f32 %v1003_v24, %v887_v23 }
 0x1d3   : > { %v1004_v28 = vadd.f32 %v1002_v26, %v886_v25 }
 0x1d4   : > { %1307 = vrsqrt.f32 %v1005_v27  ;;  %vm1015_vm10 = vcmp.eq.f32.partialorder %v1005_v27, inf  ;;  %v1018_v48 = vand.u32 2147483648, %v1005_v27  ;;  %vm1017_vm11 = vcmp.eq.f32.partialorder %v1005_v27, 0.0 }
 0x1d5   : > { %1309 = vrsqrt.f32 %v1004_v28  ;;  %vm1008_vm12 = vcmp.eq.f32.partialorder %v1004_v28, inf  ;;  %v1011_v39 = vand.u32 2147483648, %v1004_v28  ;;  %vm1010_vm13 = vcmp.eq.f32.partialorder %v1004_v28, 0.0 }
 0x1de   : > { %v1308_v36 = vpop.eup %1307 }
 0x1df   : > { %v1310_v37 = vpop.eup %1309  ;;  %v1014_v45 = vmul.f32 %v1308_v36, %v1005_v27 }
 0x1e0   : > { %v1007_v42 = vmul.f32 %v1310_v37, %v1004_v28 }
 0x1e1   : > { %v1016_v51 = vsel %vm1015_vm10, %v1005_v27, %v1014_v45 }
 0x1e2   : > { %v1019_v43 = vsel %vm1017_vm11, %v1018_v48, %v1016_v51  ;;  %v1009_v40 = vsel %vm1008_vm12, %v1004_v28, %v1007_v42 }
 0x1e3   : > { %v1189_v56 = vadd.f32 -0.5, %v1019_v43  ;;  %v1012_v57 = vsel %vm1010_vm13, %v1011_v39, %v1009_v40 }
 0x1e4   : > { %v1188_v49 = vadd.f32 -0.5, %v1012_v57 }
 0x1e5   : > { %v1023_v59 = vmax.f32 %v1189_v56, 0.0 }
 0x1e6   : > { %v1022_v60 = vmax.f32 %v1188_v49, 0.0 }
 0x1e7   : > { %v1025_v62 = vmul.f32 %v1023_v59, %v1023_v59 }
 0x1e8   : > { %v1024_v0 = vmul.f32 %v1022_v60, %v1022_v60 }
 0x1e9   : > { %v1027_v2 = vmul.f32 %v1025_v62, %v526_v61 }
 0x1ea   : > { %v1026_v3 = vmul.f32 %v1024_v0, %v525_v63 }
 0x1eb   : > { %v1032_v4 = vsel %vm464_vm1, %v1027_v2, 0.0 }
 0x1ec   : > { %1033 = vadd.xlane.f32.xlu0 %v1032_v4  ;;  %v1029_v55 = vsel %vm464_vm1, %v1026_v3, 0.0 }
 0x1ed   : > { %1030 = vadd.xlane.f32.xlu1 %v1029_v55 }
 0x279   : > { %v1034_v6 = vpop.xlane.xlu0 %1033 }
 0x27a   : > { %v1031_v7 = vpop.xlane.xlu1 %1030 }
 0x27b   : > { %v1035_v5 = vadd.f32 %v1034_v6, %v1031_v7 }
 0x27d   : > { %v1036_v54 = vrot.slane %v1035_v5, 4 }
 0x27f   : > { %v1037_v8 = vadd.f32 %v1036_v54, %v1035_v5 }
 0x281   : > { %v1038_v9 = vrot.slane %v1037_v8, 2 }
 0x283   : > { %v1039_v10 = vadd.f32 %v1038_v9, %v1037_v8 }
 0x285   : > { %v1040_v11 = vrot.slane %v1039_v10, 1 }
 0x287   : > { %v1041_v12 = vadd.f32 %v1040_v11, %v1039_v10 }
 0x289   : > { %1043 = vst.msk [vmem:[%s356_s27] sm:$0x1] %vm1042_vm14, %v1041_v12 }
 0x28a PF: > { %s16_s23 = sadd.s32 1, %s1333_s23   ;;  %s1568_s21 = smov %s1329_s22 }
 0x28b   : > { %p13_p5 = scmp.ge.s32.totalorder %s16_s23, 4   ;;  %s1569_s22 = smov %s1571_s24 }
 0x28d   :  { %15 = sbr.rel (!%p13_p5) target bundleno = 2 (0x2), region = 90 }

</bundles_post_ra>
